<compile_context>
chip_gen: v7x
topology: tpu7x:2x2x1
jax: 0.10.0
libtpu: 0.0.40
codegen_flags: <defaults>
</compile_context>

<pallas_src>
import jax
import jax.numpy as jnp
from jax.experimental import pallas as pl
from jax.experimental.pallas import tpu as pltpu


HIDDEN = 256


def _round_up(x, m):
    return (x + m - 1) // m * m


def pres_mlp_kernel(h_ref, w1_ref, b1_ref, w2_ref, b2_ref, o_ref):
    """One batch tile.

    h_ref  : (TM, in_dim)   activations (bf16 or f32)
    w1_ref : (in_dim, 256)  first-layer weight (same dtype as h), VMEM-resident
    b1_ref : (1, 256)       first-layer bias (f32), VMEM-resident
    w2_ref : (1, 256)       second-layer weight as a row vector (f32), resident
    b2_ref : (1,)           second-layer bias, SMEM scalar (f32)
    o_ref  : (1, 1, TM)     lane-dense output tile (f32), batch on the lane axis
    """
    # First linear on the MXU, f32 accumulation.
    hid = jnp.dot(h_ref[...], w1_ref[...],
                  preferred_element_type=jnp.float32)            # (TM, 256) f32
    hid = jnp.maximum(hid + b1_ref[...], 0.0)                    # bias + ReLU

    # Second linear has output width 1: a width-1 MXU matmul wastes 255/256 of
    # the array, so use the (otherwise idle) VPU + XLU instead.
    z = jnp.sum(hid * w2_ref[...], axis=-1)                      # (TM,)
    p = jax.nn.sigmoid(z + b2_ref[0])                            # (TM,)

    # torch.sigmoid(z[:, :1]) — z already has a single column; slice is identity.
    # Store lane-dense (unmasked vst): batch lives on the lane axis of o_ref.
    o_ref[...] = p.reshape(o_ref.shape).astype(o_ref.dtype)


def pres_mlp(h, w1, b1, w2, b2, *, tile_m=512, use_bf16_inputs=True):
    """h: (B, in_dim) f32 -> (B, 1) f32 presence probabilities.

    Weights arrive in math layout: w1 (in_dim, 256), b1 (1, 256),
    w2 (256, 1), b2 (1, 1)  (i.e. nn.Linear weights pre-transposed).
    """
    B, in_dim = h.shape
    assert w1.shape == (in_dim, HIDDEN)
    assert b1.shape == (1, HIDDEN)
    assert w2.shape == (HIDDEN, 1)
    assert b2.shape == (1, 1)

    # Batch tile: 512 suits all of v5e/v6e/v7x; shrink (to a multiple of 128,
    # which keeps the output lane-dense) for tiny batches to avoid over-padding.
    tm = _round_up(min(tile_m, _round_up(B, 128)), 128)
    b_pad = _round_up(B, tm)
    nb = b_pad // tm
    if b_pad != B:
        h = jnp.pad(h, ((0, b_pad - B), (0, 0)))

    in_dtype = jnp.bfloat16 if use_bf16_inputs else h.dtype
    h_in = h.astype(in_dtype)                                 # halves HBM bytes
    w1_in = w1.astype(in_dtype)
    b1_in = b1.astype(jnp.float32)
    w2_row = w2.reshape(1, HIDDEN).astype(jnp.float32)        # lane-major row
    b2_s = b2.reshape(1).astype(jnp.float32)                  # scalar -> SMEM

    out3 = pl.pallas_call(
        pres_mlp_kernel,
        out_shape=jax.ShapeDtypeStruct((nb, 1, tm), jnp.float32),
        grid_spec=pltpu.PrefetchScalarGridSpec(
            num_scalar_prefetch=0,
            grid=(nb,),
            in_specs=[
                # h: one (tm, in_dim) tile per grid step (pipelined DMA).
                pl.BlockSpec((tm, in_dim), lambda i: (i, 0)),
                # Weights/biases: same block every step -> VMEM-resident.
                pl.BlockSpec((in_dim, HIDDEN), lambda i: (0, 0)),
                pl.BlockSpec((1, HIDDEN), lambda i: (0, 0)),
                pl.BlockSpec((1, HIDDEN), lambda i: (0, 0)),
                # Single scalar bias lives in SMEM (no padded VMEM tile / DMA).
                pl.BlockSpec(memory_space=pltpu.MemorySpace.SMEM),
            ],
            out_specs=pl.BlockSpec((1, 1, tm), lambda i: (i, 0, 0)),
        ),
        compiler_params=pltpu.CompilerParams(
            # Batch tiles are independent: lets v7x split the grid over its
            # 2 TensorCores; no effect (but harmless) on v5e/v6e.
            dimension_semantics=("parallel",),
        ),
    )(h_in, w1_in, b1_in, w2_row, b2_s)

    # (nb, 1, tm) lane-dense slab -> (B, 1); element (i, 0, t) is row i*tm + t.
    return out3.reshape(nb * tm)[:B].reshape(B, 1)


def init_params(key, in_dim, dataset="MNIST"):
    """Deterministic init mirroring PresMLP.__init__ semantics."""
    k1, k2 = jax.random.split(key)
    bound1 = 1.0 / jnp.sqrt(jnp.float32(in_dim))
    w1 = jax.random.uniform(k1, (in_dim, HIDDEN), jnp.float32, -bound1, bound1)
    b1 = jax.random.uniform(k2, (1, HIDDEN), jnp.float32, -bound1, bound1)
    init_bias = 6.0
    if dataset in ["KMNIST"]:
        init_bias = 4.0
    if dataset in ["Omniglot", "Quickdraw"]:
        init_bias = 7.0
    w2 = jnp.zeros((HIDDEN, 1), jnp.float32)                  # last layer zeroed
    b2 = jnp.full((1, 1), init_bias, jnp.float32)
    return w1, b1, w2, b2


if __name__ == "__main__":
    key = jax.random.PRNGKey(0)
    in_dim = 32
    k1, k2, k3, k4 = jax.random.split(key, 4)

    # --- Check 1: batch that exercises the grid (2 tiles) and the padding path,
    #     with a non-zero second layer so both linears are numerically tested. --
    B = 1000
    h = jax.random.normal(k1, (B, in_dim), jnp.float32)
    bound = 1.0 / jnp.sqrt(jnp.float32(in_dim))
    w1 = jax.random.uniform(k2, (in_dim, HIDDEN), jnp.float32, -bound, bound)
    b1 = jax.random.uniform(k3, (1, HIDDEN), jnp.float32, -bound, bound)
    w2 = 0.05 * jax.random.normal(k4, (HIDDEN, 1), jnp.float32)
    b2 = jnp.full((1, 1), 0.5, jnp.float32)

    out = jax.block_until_ready(pres_mlp(h, w1, b1, w2, b2))

    # Reference with the kernel's bf16-input / f32-accumulate numerics.
    h_r = h.astype(jnp.bfloat16).astype(jnp.float32)
    w1_r = w1.astype(jnp.bfloat16).astype(jnp.float32)
    hid = jnp.maximum(h_r @ w1_r + b1, 0.0)
    z_ref = jnp.sum(hid * w2.reshape(1, HIDDEN), axis=-1, keepdims=True) + b2
    ref = jax.nn.sigmoid(z_ref)
    assert out.shape == (B, 1)
    assert jnp.allclose(out, ref, atol=1e-4, rtol=1e-4), float(
        jnp.max(jnp.abs(out - ref)))

    # --- Check 2: module-faithful init (w2 = 0, b2 = 6) at the toy RNN batch. --
    B2 = 8
    h2 = jax.random.normal(k1, (B2, in_dim), jnp.float32)
    w1i, b1i, w2i, b2i = init_params(k2, in_dim, dataset="MNIST")
    out2 = jax.block_until_ready(pres_mlp(h2, w1i, b1i, w2i, b2i))
    ref2 = jnp.full((B2, 1), jax.nn.sigmoid(6.0), jnp.float32)
    assert out2.shape == (B2, 1)
    assert jnp.allclose(out2, ref2, atol=1e-5, rtol=1e-5)

    print("KERNEL_OK")
</pallas_src>

<mosaic_0001>
module attributes {stable_mosaic.version = 11 : i64} {
  func.func @pres_mlp_kernel(%arg0: i32, %arg1: memref<512x32xbf16, #tpu.memory_space<vmem>>, %arg2: memref<32x256xbf16, #tpu.memory_space<vmem>>, %arg3: memref<1x256xf32, #tpu.memory_space<vmem>>, %arg4: memref<1x256xf32, #tpu.memory_space<vmem>>, %arg5: memref<1xf32, #tpu.memory_space<smem>>, %arg6: memref<1x1x512xf32, #tpu.memory_space<vmem>>) attributes {dimension_semantics = [#tpu.dimension_semantics<parallel>], iteration_bounds = array<i64: 2>, scalar_prefetch = 0 : i64, scratch_operands = 0 : i64, tpu.core_type = #tpu.core_type<tc>, window_params = [{transform_indices = @transform_0, window_bounds = array<i64: 512, 32>}, {pipeline_mode = #tpu.pipeline_mode<synchronous>, transform_indices = @transform_1, window_bounds = array<i64: 32, 256>}, {pipeline_mode = #tpu.pipeline_mode<synchronous>, transform_indices = @transform_2, window_bounds = array<i64: 1, 256>}, {pipeline_mode = #tpu.pipeline_mode<synchronous>, transform_indices = @transform_3, window_bounds = array<i64: 1, 256>}, {transform_indices = @transform_4, window_bounds = array<i64: 1>}, {transform_indices = @transform_5, window_bounds = array<i64: 1, 1, 512>}]} {
    %c0 = arith.constant 0 : index
    %c0_0 = arith.constant 0 : index
    %0 = vector.load %arg1[%c0, %c0_0] : memref<512x32xbf16, #tpu.memory_space<vmem>>, vector<512x32xbf16>
    %c0_1 = arith.constant 0 : index
    %c0_2 = arith.constant 0 : index
    %1 = vector.load %arg2[%c0_1, %c0_2] : memref<32x256xbf16, #tpu.memory_space<vmem>>, vector<32x256xbf16>
    %cst = arith.constant dense<0.000000e+00> : vector<512x256xf32>
    %2 = tpu.matmul %0, %1, %cst {dimension_numbers = #tpu.dot_dimension_numbers<[1], [0], [0], [1], [0, 0, 1, 1], [], []>} : vector<512x32xbf16>, vector<32x256xbf16>, vector<512x256xf32> -> vector<512x256xf32>
    %c0_3 = arith.constant 0 : index
    %c0_4 = arith.constant 0 : index
    %3 = vector.load %arg3[%c0_3, %c0_4] : memref<1x256xf32, #tpu.memory_space<vmem>>, vector<1x256xf32>
    %4 = vector.broadcast %3 : vector<1x256xf32> to vector<512x256xf32>
    %5 = arith.addf %2, %4 : vector<512x256xf32>
    %cst_5 = arith.constant 0.000000e+00 : f32
    %6 = vector.broadcast %cst_5 : f32 to vector<512x256xf32>
    %7 = arith.maximumf %5, %6 : vector<512x256xf32>
    %c0_6 = arith.constant 0 : index
    %c0_7 = arith.constant 0 : index
    %8 = vector.load %arg4[%c0_6, %c0_7] : memref<1x256xf32, #tpu.memory_space<vmem>>, vector<1x256xf32>
    %9 = vector.broadcast %8 : vector<1x256xf32> to vector<512x256xf32>
    %10 = arith.mulf %7, %9 : vector<512x256xf32>
    %cst_8 = arith.constant dense<0.000000e+00> : vector<512xf32>
    %11 = vector.multi_reduction <add>, %10, %cst_8 [1] : vector<512x256xf32> to vector<512xf32>
    %c0_9 = arith.constant 0 : index
    %12 = memref.load %arg5[%c0_9] : memref<1xf32, #tpu.memory_space<smem>>
    %13 = vector.broadcast %12 : f32 to vector<512xf32>
    %14 = arith.addf %11, %13 : vector<512xf32>
    %15 = arith.negf %14 : vector<512xf32>
    %16 = math.exp %15 : vector<512xf32>
    %cst_10 = arith.constant 1.000000e+00 : f32
    %17 = vector.broadcast %cst_10 : f32 to vector<512xf32>
    %18 = arith.addf %17, %16 : vector<512xf32>
    %19 = arith.divf %17, %18 : vector<512xf32>
    %20 = vector.shape_cast %19 : vector<512xf32> to vector<1x1x512xf32>
    %c0_11 = arith.constant 0 : index
    %c0_12 = arith.constant 0 : index
    %c0_13 = arith.constant 0 : index
    %21 = vector.load %arg6[%c0_11, %c0_12, %c0_13] : memref<1x1x512xf32, #tpu.memory_space<vmem>>, vector<1x1x512xf32>
    tpu.vector_store %arg6[%c0_11, %c0_12, %c0_13], %20 {strides = array<i32>} : memref<1x1x512xf32, #tpu.memory_space<vmem>>, vector<1x1x512xf32>,
    return
  }
  func.func @transform_0(%arg0: i32) -> (i32, i32) {
    %c0_i32 = arith.constant 0 : i32
    %c0_i32_0 = arith.constant 0 : i32
    return %arg0, %c0_i32 : i32, i32
  }
  func.func @transform_1(%arg0: i32) -> (i32, i32) {
    %c0_i32 = arith.constant 0 : i32
    %c0_i32_0 = arith.constant 0 : i32
    %c0_i32_1 = arith.constant 0 : i32
    return %c0_i32, %c0_i32_0 : i32, i32
  }
  func.func @transform_2(%arg0: i32) -> (i32, i32) {
    %c0_i32 = arith.constant 0 : i32
    %c0_i32_0 = arith.constant 0 : i32
    %c0_i32_1 = arith.constant 0 : i32
    return %c0_i32, %c0_i32_0 : i32, i32
  }
  func.func @transform_3(%arg0: i32) -> (i32, i32) {
    %c0_i32 = arith.constant 0 : i32
    %c0_i32_0 = arith.constant 0 : i32
    %c0_i32_1 = arith.constant 0 : i32
    return %c0_i32, %c0_i32_0 : i32, i32
  }
  func.func @transform_4(%arg0: i32) -> i32 {
    %c0_i32 = arith.constant 0 : i32
    %c0_i32_0 = arith.constant 0 : i32
    return %c0_i32 : i32
  }
  func.func @transform_5(%arg0: i32) -> (i32, i32, i32) {
    %c0_i32 = arith.constant 0 : i32
    %c0_i32_0 = arith.constant 0 : i32
    %c0_i32_1 = arith.constant 0 : i32
    return %arg0, %c0_i32, %c0_i32_0 : i32, i32, i32
  }
}

</mosaic_0001>

<bundles_post_ra>
// kernel: tpu_custom_call.1
= control target key start
LH: loop header
LB: loop body
LE: loop exit
PB: predicated region body
PF: predicated region fallthrough
CT: control target
= control target key end

     0   :  { %s10720_s0 = inlined_call_operand.vmem [shape: bf16[1024,32], index: 0, kind: input, shape index: {}]   ;;  %s10721_s1 = inlined_call_operand.vmem [shape: bf16[32,256], index: 1, kind: input, shape index: {}]   ;;  %s10722_s2 = inlined_call_operand.vmem [shape: f32[1,256], index: 2, kind: input, shape index: {}]   ;;  %s10723_s3 = inlined_call_operand.vmem [shape: f32[1,256], index: 3, kind: input, shape index: {}]   ;;  %s10724_s4 = inlined_call_operand.<no memory space> [shape: f32[1], index: 4, kind: input, shape index: {}]   ;;  %s10725_s5 = inlined_call_operand.hbm [shape: f32[2,1,512], index: 5, kind: output, shape index: {}]  }
   0x1   :  { %10 = sst [smem:[#allocation2]] %s10724_s4 }
   0x2   :  { %11 = vsyncpa [#allocation4], 0 }
   0x3   :  { %13 = vsyncpa [#allocation4 + $0x1], 0  ;;  %s8325_s20 = smov 0   ;;  %s8327_s21 = smov 0  }
   0x4   :  { %s8329_s22 = smov 0   ;;  %s8331_s23 = smov 0  }
   0x5 LB: > { %s7738_s4 = sadd.s32 4294967295, %s8287_s23   ;;  %s7739_s24 = sadd.s32 4294967294, %s8287_s23   ;;  %s8287_s23 = sphi %s8331_s23, %s10745_s23   ;;  %s8283_s22 = sphi %s8329_s22, %s10744_s22   ;;  %s8279_s21 = sphi %s8327_s21, %s10743_s21   ;;  %s8275_s20 = sphi %s8325_s20, %s10742_s20  }
   0x6   : > { %s8348_s25 = sadd.s32 1, %s8287_s23   ;;  %s136_s26 = sadd.s32 1, %s8283_s22 }
   0x7   : > { %s133_s27 = ssub.s32 %s8287_s23, %s8348_s25  ;;  %p146_p0 = scmp.ne.s32.totalorder %s8283_s22, %s8279_s21 }
   0x8   : > { %p134_p1 = scmp.eq.s32.totalorder %s133_s27, 0  ;;  %p147_p2 = scmp.eq.s32.totalorder %s7738_s4, 1 }
   0x9   : > { %p152_p3 = scmp.ne.s32.totalorder %s8279_s21, %s8275_s20  ;;  %p153_p4 = scmp.eq.s32.totalorder %s7739_s24, 1 }
   0xa   : > { %s8358_s28 = scalar_select %p134_p1, %s8283_s22, %s136_s26  }
   0xb   : > { %p8360_p5 = por %p147_p2, %p146_p0  ;;  %p8364_p6 = por %p153_p4, %p152_p3 }
   0xc   : > { %p7742_p7 = scmp.ge.s32.totalorder %s8287_s23, 1  ;;  %p192_p8 = scmp.lt.s32.totalorder %s8287_s23, 3 }
   0xe   : > { %p193_p9 = pnand %p7742_p7, %p192_p8 }
  0x10   : > { %196 = sbr.rel (%p193_p9) target bundleno = 988 (0x3dc), region = 40 }
  0x17   : > { %v7931_v0 = vld [vmem:[%s10721_s1 + $0x4] ss:$8 sps:$4 sm:$0xff]   ;;  %s8373_s8 = sshll.u32 %s7738_s4, 6  ;;  %v7933_v1 = vld [vmem:[%s10721_s1] ss:$8 sps:$4 sm:$0xff]   ;;  %v8289_v2 = vmov 0   ;;  %v10726_v37 = vlaneseq }
  0x18   : > { %616 = vmatprep.mubr.bf16.mxu0 %v8289_v2  ;;  %776 = vmatprep.mubr.bf16.mxu1 %v8289_v2  ;;  %p221_p10 = scmp.lt.s32.totalorder %s8373_s8, 127  ;;  %v7934_v3 = vld [vmem:[%s10721_s1 + $0x14] ss:$8 sps:$4 sm:$0xff]   ;;  %v7936_v4 = vld [vmem:[%s10721_s1 + $0x10] ss:$8 sps:$4 sm:$0xff]   ;;  %vm487_vm0 = vcmask 261120   ;;  %s10678_s14 = scalar_lea.hbm %s10725_s5, %s8373_s8 }
  0x19   : > { %584 = vmatprep.subr.bf16.mxu0 %v7931_v0  ;;  %7884 = vmatprep.subr.bf16.mxu1 %v7931_v0  ;;  %v8490_v38 = vshrl.u32 %v10726_v37, 7  ;;  %v295_v40 = vld [vmem:[%s10722_s2] sm:$0x3]  ;;  %s1397_s6 = sld [smem:[#allocation2]]  ;;  %vm7298_vm1 = vcmask 130112   ;;  %vm7305_vm2 = vcmask 195712  }
  0x1a   : > { %585 = vmatpush1.bf16.msra.mxu0 %v7933_v1  ;;  %7886 = vmatpush1.bf16.msra.mxu1 %v7933_v1  ;;  %s222_s15 = scalar_select %p221_p10, %s8373_s8, 127  ;;  %v1065_v43 = vld [vmem:[%s10723_s3] sm:$0x3]  ;;  %vm7312_vm3 = vcmask 261312   ;;  %vm7319_vm4 = vcmask 326912   ;;  %vm7326_vm5 = vcmask 392512  }
  0x1b   : > { %586 = vmatprep.subr.bf16.mxu0 %v7934_v3  ;;  %7885 = vmatprep.subr.bf16.mxu1 %v7934_v3  ;;  %v8493_v39 = vsub.s32 0, %v8490_v38  ;;  %v8499_v41 = vsub.s32 1, %v8490_v38  ;;  %vm7333_vm6 = vcmask 458112   ;;  %vm7340_vm7 = vcmask 523712   ;;  %s217_s7 = sand.u32 1, %s8279_s21   ;;  %s8291_s17 = smov [#allocation3]  }
  0x1c   : > { %s7745_s16 = sshll.u32 %s222_s15, 2  ;;  %7929 = vset.pattern.permute.xlu0 %v8289_v2  ;;  %7930 = vset.pattern.permute.xlu1 %v8289_v2  ;;  %vm7347_vm8 = vcmask 589312   ;;  %vm7354_vm9 = vcmask 654912   ;;  %vm7361_vm10 = vcmask 720512   ;;  %vm7368_vm11 = vcmask 786112   ;;  %s7743_s9 = sshll.u32 %s217_s7, 2 }
  0x1d   : > { %s8393_s19 = scalar_lea.vmem %s10720_s0, %s7745_s16  ;;  %v8502_v42 = vrot.slane %v295_v40, %v8493_v39  ;;  %v8508_v44 = vrot.slane %v295_v40, %v8499_v41  ;;  %v8513_v49 = vrot.slane %v1065_v43, %v8493_v39  ;;  %v8518_v54 = vrot.slane %v1065_v43, %v8499_v41  ;;  %s219_s10 = scalar_lea.vmem [#allocation3], %s7743_s9 }
  0x1e   : > { %587 = vmatpush1.bf16.msra.mxu0 %v7936_v4  ;;  %7887 = vmatpush1.bf16.msra.mxu1 %v7936_v4  ;;  %v7937_v5 = vld [vmem:[%s8393_s19] sm:$0xff]   ;;  %v7939_v7 = vld [vmem:[%s8393_s19 + $0x8] sm:$0xff]   ;;  %v7941_v9 = vld [vmem:[%s8393_s19 + $0x10] sm:$0xff]   ;;  %vm7375_vm12 = vcmask 851712   ;;  %vm7382_vm13 = vcmask 917312   ;;  %vm7389_vm14 = vcmask 982912  }
  0x1f   : > { %v7938_v6 = vld [vmem:[%s8393_s19 + $0x80] sm:$0xff]   ;;  %v7940_v8 = vld [vmem:[%s8393_s19 + $0x88] sm:$0xff]   ;;  %v7942_v10 = vld [vmem:[%s8393_s19 + $0x90] sm:$0xff]   ;;  %vm7396_vm15 = vcmask 1048512   ;;  %s7680_s11 = sshll.u32 %s219_s10, 4  ;;  %s7666_s15 = scalar_lea.sflag [#allocation4], %s217_s7  ;;  %s10680_s11 = int_to_ptr.vmem [resolvable:$true] %s7680_s11 }
  0x20   : > { %v7943_v11 = vld [vmem:[%s8393_s19 + $0x18] sm:$0xff]   ;;  %v7945_v13 = vld [vmem:[%s8393_s19 + $0x20] sm:$0xff]   ;;  %v7947_v15 = vld [vmem:[%s8393_s19 + $0x28] sm:$0xff]   ;;  %s8225_s16 = scalar_lea.vmem %s10680_s11, 64  ;;  %s8229_s18 = sshll.u32 %s8291_s17, 4  ;;  %s8230_s18 = int_to_ptr.vmem [resolvable:$false] %s8229_s18 }
  0x21   : > { %7782 = vmatmul.mubr.msk.bf16.vlgmr.msra.gmra.mrb[0].mxu0 %vm487_vm0, %v7937_v5  ;;  %7798 = vmatmul.mubr.msk.bf16.vlgmr.msra.gmra.mrb[0].mxu1 %vm487_vm0, %v7938_v6  ;;  %v7944_v12 = vld [vmem:[%s8393_s19 + $0x98] sm:$0xff]   ;;  %v7946_v14 = vld [vmem:[%s8393_s19 + $0xa0] sm:$0xff]   ;;  %v7948_v16 = vld [vmem:[%s8393_s19 + $0xa8] sm:$0xff]   ;;  %p8226_p11 = scmp.ne.s32.totalorder %s10680_s11, %s8225_s16  ;;  %p8232_p0 = scmp.lt.s32.totalorder %s10680_s11, %s8230_s18 }
  0x22   : > { %626 = vmatprep.mubr.bf16.mxu0 %v8289_v2  ;;  %786 = vmatprep.mubr.bf16.mxu1 %v8289_v2  ;;  %v7949_v17 = vld [vmem:[%s8393_s19 + $0x30] sm:$0xff]   ;;  %v7951_v19 = vld [vmem:[%s8393_s19 + $0x38] sm:$0xff]   ;;  %v7953_v21 = vld [vmem:[%s8393_s19 + $0x40] sm:$0xff]  }
  0x23   : > { %v7950_v18 = vld [vmem:[%s8393_s19 + $0xb0] sm:$0xff]   ;;  %v7952_v20 = vld [vmem:[%s8393_s19 + $0xb8] sm:$0xff]   ;;  %v7954_v22 = vld [vmem:[%s8393_s19 + $0xc0] sm:$0xff]   ;;  %p8227_p12 = pnand %p8226_p11, %p8360_p5 }
  0x24   : > { %v7955_v23 = vld [vmem:[%s8393_s19 + $0x48] sm:$0xff]   ;;  %v7957_v25 = vld [vmem:[%s8393_s19 + $0x50] sm:$0xff]   ;;  %v7959_v27 = vld [vmem:[%s8393_s19 + $0x58] sm:$0xff]  }
  0x25   : > { %v7956_v24 = vld [vmem:[%s8393_s19 + $0xc8] sm:$0xff]   ;;  %v7958_v26 = vld [vmem:[%s8393_s19 + $0xd0] sm:$0xff]   ;;  %v7960_v28 = vld [vmem:[%s8393_s19 + $0xd8] sm:$0xff]   ;;  %p8228_p13 = pneg %p8227_p12 }
  0x26   : > { %v7961_v29 = vld [vmem:[%s8393_s19 + $0x60] sm:$0xff]   ;;  %v7963_v31 = vld [vmem:[%s8393_s19 + $0x68] sm:$0xff]   ;;  %v7965_v33 = vld [vmem:[%s8393_s19 + $0x70] sm:$0xff]  }
  0x27   : > { %v7962_v30 = vld [vmem:[%s8393_s19 + $0xe0] sm:$0xff]   ;;  %v7964_v32 = vld [vmem:[%s8393_s19 + $0xe8] sm:$0xff]   ;;  %v7966_v34 = vld [vmem:[%s8393_s19 + $0xf0] sm:$0xff]  }
  0x28   : > { %v7967_v35 = vld [vmem:[%s8393_s19 + $0x78] sm:$0xff]  }
  0x29   : > { %7783 = vmatmul.mubr.msk.bf16.gmra.mrb[4].mxu0 %vm487_vm0, %v7939_v7  ;;  %7799 = vmatmul.mubr.msk.bf16.gmra.mrb[4].mxu1 %vm487_vm0, %v7940_v8  ;;  %v7968_v36 = vld [vmem:[%s8393_s19 + $0xf8] sm:$0xff]   ;;  %s8231_s19 = scalar_lea.vmem %s8230_s18, 128 }
  0x2a   : > { %636 = vmatprep.mubr.bf16.mxu0 %v8289_v2  ;;  %796 = vmatprep.mubr.bf16.mxu1 %v8289_v2  ;;  %p8233_p1 = scmp.lt.s32.totalorder %s8231_s19, %s8225_s16 }
  0x2c   : > { %p8234_p2 = por %p8233_p1, %p8232_p0 }
  0x2e   : > { %p8235_p3 = pnand %p8234_p2, %p8228_p13 }
  0x31   : > { %7784 = vmatmul.mubr.msk.bf16.gmra.mrb[8].mxu0 %vm487_vm0, %v7941_v9  ;;  %7800 = vmatmul.mubr.msk.bf16.gmra.mrb[8].mxu1 %vm487_vm0, %v7942_v10 }
  0x32   : > { %646 = vmatprep.mubr.bf16.mxu0 %v8289_v2  ;;  %806 = vmatprep.mubr.bf16.mxu1 %v8289_v2 }
  0x39   : > { %7785 = vmatmul.mubr.msk.bf16.gmra.mrb[12].mxu0 %vm487_vm0, %v7943_v11  ;;  %7801 = vmatmul.mubr.msk.bf16.gmra.mrb[12].mxu1 %vm487_vm0, %v7944_v12 }
  0x3a   : > { %656 = vmatprep.mubr.bf16.mxu0 %v8289_v2  ;;  %816 = vmatprep.mubr.bf16.mxu1 %v8289_v2 }
  0x41   : > { %7786 = vmatmul.mubr.msk.bf16.gmra.mrb[16].mxu0 %vm487_vm0, %v7945_v13  ;;  %7802 = vmatmul.mubr.msk.bf16.gmra.mrb[16].mxu1 %vm487_vm0, %v7946_v14 }
  0x42   : > { %666 = vmatprep.mubr.bf16.mxu0 %v8289_v2  ;;  %826 = vmatprep.mubr.bf16.mxu1 %v8289_v2 }
  0x49   : > { %7787 = vmatmul.mubr.msk.bf16.gmra.mrb[20].mxu0 %vm487_vm0, %v7947_v15  ;;  %7803 = vmatmul.mubr.msk.bf16.gmra.mrb[20].mxu1 %vm487_vm0, %v7948_v16 }
  0x4a   : > { %676 = vmatprep.mubr.bf16.mxu0 %v8289_v2  ;;  %836 = vmatprep.mubr.bf16.mxu1 %v8289_v2 }
  0x51   : > { %7788 = vmatmul.mubr.msk.bf16.gmra.mrb[24].mxu0 %vm487_vm0, %v7949_v17  ;;  %7804 = vmatmul.mubr.msk.bf16.gmra.mrb[24].mxu1 %vm487_vm0, %v7950_v18 }
  0x52   : > { %686 = vmatprep.mubr.bf16.mxu0 %v8289_v2  ;;  %846 = vmatprep.mubr.bf16.mxu1 %v8289_v2 }
  0x59   : > { %7789 = vmatmul.mubr.msk.bf16.gmra.mrb[28].mxu0 %vm487_vm0, %v7951_v19  ;;  %7805 = vmatmul.mubr.msk.bf16.gmra.mrb[28].mxu1 %vm487_vm0, %v7952_v20 }
  0x5a   : > { %696 = vmatprep.mubr.bf16.mxu0 %v8289_v2  ;;  %856 = vmatprep.mubr.bf16.mxu1 %v8289_v2 }
  0x61   : > { %7790 = vmatmul.mubr.msk.bf16.gmra.mrb[32].mxu0 %vm487_vm0, %v7953_v21  ;;  %7806 = vmatmul.mubr.msk.bf16.gmra.mrb[32].mxu1 %vm487_vm0, %v7954_v22 }
  0x62   : > { %706 = vmatprep.mubr.bf16.mxu0 %v8289_v2  ;;  %866 = vmatprep.mubr.bf16.mxu1 %v8289_v2 }
  0x69   : > { %7791 = vmatmul.mubr.msk.bf16.gmra.mrb[36].mxu0 %vm487_vm0, %v7955_v23  ;;  %7807 = vmatmul.mubr.msk.bf16.gmra.mrb[36].mxu1 %vm487_vm0, %v7956_v24 }
  0x6a   : > { %716 = vmatprep.mubr.bf16.mxu0 %v8289_v2  ;;  %876 = vmatprep.mubr.bf16.mxu1 %v8289_v2 }
  0x71   : > { %7792 = vmatmul.mubr.msk.bf16.gmra.mrb[40].mxu0 %vm487_vm0, %v7957_v25  ;;  %7808 = vmatmul.mubr.msk.bf16.gmra.mrb[40].mxu1 %vm487_vm0, %v7958_v26 }
  0x72   : > { %726 = vmatprep.mubr.bf16.mxu0 %v8289_v2  ;;  %886 = vmatprep.mubr.bf16.mxu1 %v8289_v2 }
  0x79   : > { %7793 = vmatmul.mubr.msk.bf16.gmra.mrb[44].mxu0 %vm487_vm0, %v7959_v27  ;;  %7809 = vmatmul.mubr.msk.bf16.gmra.mrb[44].mxu1 %vm487_vm0, %v7960_v28 }
  0x7a   : > { %736 = vmatprep.mubr.bf16.mxu0 %v8289_v2  ;;  %896 = vmatprep.mubr.bf16.mxu1 %v8289_v2 }
  0x81   : > { %7794 = vmatmul.mubr.msk.bf16.gmra.mrb[48].mxu0 %vm487_vm0, %v7961_v29  ;;  %7810 = vmatmul.mubr.msk.bf16.gmra.mrb[48].mxu1 %vm487_vm0, %v7962_v30 }
  0x82   : > { %746 = vmatprep.mubr.bf16.mxu0 %v8289_v2  ;;  %906 = vmatprep.mubr.bf16.mxu1 %v8289_v2 }
  0x89   : > { %7795 = vmatmul.mubr.msk.bf16.gmra.mrb[52].mxu0 %vm487_vm0, %v7963_v31  ;;  %7811 = vmatmul.mubr.msk.bf16.gmra.mrb[52].mxu1 %vm487_vm0, %v7964_v32 }
  0x8a   : > { %756 = vmatprep.mubr.bf16.mxu0 %v8289_v2  ;;  %916 = vmatprep.mubr.bf16.mxu1 %v8289_v2 }
  0x91   : > { %7796 = vmatmul.mubr.msk.bf16.gmra.mrb[56].mxu0 %vm487_vm0, %v7965_v33  ;;  %7812 = vmatmul.mubr.msk.bf16.gmra.mrb[56].mxu1 %vm487_vm0, %v7966_v34 }
  0x92   : > { %766 = vmatprep.mubr.bf16.mxu0 %v8289_v2  ;;  %926 = vmatprep.mubr.bf16.mxu1 %v8289_v2 }
  0x99   : > { %7797 = vmatmul.mubr.msk.bf16.gmra.mrb[60].mxu0 %vm487_vm0, %v7967_v35  ;;  %7813 = vmatmul.mubr.msk.bf16.gmra.mrb[60].mxu1 %vm487_vm0, %v7968_v36 }
  0xf4   : > { %v618_v45 = vpop.f32.mrb[0].mxu0  ;;  %v778_v46 = vpop.f32.mrb[0].mxu1 }
  0xf5   : > { %v619_v47 = vadd.f32 %v618_v45, %v8502_v42  ;;  %v779_v48 = vadd.f32 %v778_v46, %v8502_v42  ;;  %v620_v50 = vpop.f32.mrb[1].mxu0  ;;  %v780_v51 = vpop.f32.mrb[1].mxu1 }
  0xf6   : > { %v621_v52 = vadd.f32 %v620_v50, %v8508_v44  ;;  %v781_v53 = vadd.f32 %v780_v51, %v8508_v44  ;;  %v622_v55 = vpop.f32.mrb[2].mxu0  ;;  %v782_v56 = vpop.f32.mrb[2].mxu1 }
  0xf7   : > { %v937_v57 = vmax.f32 %v619_v47, 0.0  ;;  %v1001_v58 = vmax.f32 %v779_v48, 0.0  ;;  %v623_v59 = vadd.f32 %v622_v55, %v8502_v42  ;;  %v783_v60 = vadd.f32 %v782_v56, %v8502_v42  ;;  %v624_v61 = vpop.f32.mrb[3].mxu0  ;;  %v784_v62 = vpop.f32.mrb[3].mxu1 }
  0xf8   : > { %v938_v63 = vmax.f32 %v621_v52, 0.0  ;;  %v1002_v0 = vmax.f32 %v781_v53, 0.0  ;;  %v625_v1 = vadd.f32 %v624_v61, %v8508_v44  ;;  %v785_v2 = vadd.f32 %v784_v62, %v8508_v44 }
  0xf9   : > { %v1141_v3 = vmul.f32 %v8513_v49, %v1001_v58  ;;  %v939_v4 = vmax.f32 %v623_v59, 0.0  ;;  %v1003_v5 = vmax.f32 %v783_v60, 0.0  ;;  %v1077_v6 = vmul.f32 %v8513_v49, %v937_v57 }
  0xfa   : > { %v1142_v7 = vmul.f32 %v8518_v54, %v1002_v0  ;;  %v940_v8 = vmax.f32 %v625_v1, 0.0  ;;  %v1004_v9 = vmax.f32 %v785_v2, 0.0  ;;  %v1078_v10 = vmul.f32 %v8518_v54, %v938_v63 }
  0xfb   : > { %v1079_v11 = vmul.f32 %v8513_v49, %v939_v4  ;;  %v1143_v12 = vmul.f32 %v8513_v49, %v1003_v5 }
  0xfc   : > { %v1080_v13 = vmul.f32 %v8518_v54, %v940_v8  ;;  %v628_v14 = vpop.f32.mrb[4].mxu0  ;;  %v788_v15 = vpop.f32.mrb[4].mxu1  ;;  %v1205_v16 = vadd.f32 %v1078_v10, %v1077_v6  ;;  %v1144_v17 = vmul.f32 %v8518_v54, %v1004_v9  ;;  %v1301_v18 = vadd.f32 %v1142_v7, %v1141_v3 }
  0xfd   : > { %v629_v19 = vadd.f32 %v628_v14, %v8502_v42  ;;  %v630_v20 = vpop.f32.mrb[5].mxu0  ;;  %v789_v21 = vadd.f32 %v788_v15, %v8502_v42  ;;  %v790_v22 = vpop.f32.mrb[5].mxu1 }
  0xfe   : > { %v631_v23 = vadd.f32 %v630_v20, %v8508_v44  ;;  %v632_v24 = vpop.f32.mrb[6].mxu0  ;;  %v791_v25 = vadd.f32 %v790_v22, %v8508_v44  ;;  %1206 = vadd.xlane.f32.xlu0 %v1205_v16  ;;  %v792_v26 = vpop.f32.mrb[6].mxu1  ;;  %v1304_v27 = vadd.f32 %v1144_v17, %v1143_v12  ;;  %v1208_v28 = vadd.f32 %v1080_v13, %v1079_v11 }
  0xff   : > { %v941_v29 = vmax.f32 %v629_v19, 0.0  ;;  %v1005_v30 = vmax.f32 %v789_v21, 0.0  ;;  %v633_v31 = vadd.f32 %v632_v24, %v8502_v42  ;;  %v634_v32 = vpop.f32.mrb[7].mxu0  ;;  %v793_v33 = vadd.f32 %v792_v26, %v8502_v42  ;;  %v794_v34 = vpop.f32.mrb[7].mxu1 }
 0x100   : > { %v942_v35 = vmax.f32 %v631_v23, 0.0  ;;  %v1006_v36 = vmax.f32 %v791_v25, 0.0  ;;  %v635_v40 = vadd.f32 %v634_v32, %v8508_v44  ;;  %v795_v43 = vadd.f32 %v794_v34, %v8508_v44  ;;  %1305 = vadd.xlane.f32.xlu1 %v1304_v27 }
 0x101   : > { %v1081_v45 = vmul.f32 %v8513_v49, %v941_v29  ;;  %v1145_v46 = vmul.f32 %v8513_v49, %v1005_v30  ;;  %v943_v47 = vmax.f32 %v633_v31, 0.0  ;;  %v1007_v48 = vmax.f32 %v793_v33, 0.0 }
 0x102   : > { %v1082_v50 = vmul.f32 %v8518_v54, %v942_v35  ;;  %v1146_v51 = vmul.f32 %v8518_v54, %v1006_v36  ;;  %v944_v52 = vmax.f32 %v635_v40, 0.0  ;;  %v1008_v53 = vmax.f32 %v795_v43, 0.0  ;;  %1302 = vadd.xlane.f32.xlu0 %v1301_v18 }
 0x103   : > { %v1083_v55 = vmul.f32 %v8513_v49, %v943_v47  ;;  %v1147_v61 = vmul.f32 %v8513_v49, %v1007_v48 }
 0x104   : > { %v1084_v56 = vmul.f32 %v8518_v54, %v944_v52  ;;  %v638_v57 = vpop.f32.mrb[8].mxu0  ;;  %v798_v58 = vpop.f32.mrb[8].mxu1  ;;  %v1211_v59 = vadd.f32 %v1082_v50, %v1081_v45  ;;  %v1307_v60 = vadd.f32 %v1146_v51, %v1145_v46  ;;  %v1148_v62 = vmul.f32 %v8518_v54, %v1008_v53 }
 0x105   : > { %v639_v63 = vadd.f32 %v638_v57, %v8502_v42  ;;  %v640_v0 = vpop.f32.mrb[9].mxu0  ;;  %v799_v1 = vadd.f32 %v798_v58, %v8502_v42  ;;  %v800_v2 = vpop.f32.mrb[9].mxu1 }
 0x106   : > { %v641_v3 = vadd.f32 %v640_v0, %v8508_v44  ;;  %v642_v4 = vpop.f32.mrb[10].mxu0  ;;  %v801_v5 = vadd.f32 %v800_v2, %v8508_v44  ;;  %1212 = vadd.xlane.f32.xlu1 %v1211_v59  ;;  %1209 = vadd.xlane.f32.xlu0 %v1208_v28  ;;  %v802_v6 = vpop.f32.mrb[10].mxu1  ;;  %v1214_v7 = vadd.f32 %v1084_v56, %v1083_v55 }
 0x107   : > { %v945_v8 = vmax.f32 %v639_v63, 0.0  ;;  %v1009_v9 = vmax.f32 %v799_v1, 0.0  ;;  %v643_v10 = vadd.f32 %v642_v4, %v8502_v42  ;;  %v644_v11 = vpop.f32.mrb[11].mxu0  ;;  %v803_v12 = vadd.f32 %v802_v6, %v8502_v42  ;;  %v804_v13 = vpop.f32.mrb[11].mxu1 }
 0x108   : > { %v946_v14 = vmax.f32 %v641_v3, 0.0  ;;  %v1010_v15 = vmax.f32 %v801_v5, 0.0  ;;  %v645_v16 = vadd.f32 %v644_v11, %v8508_v44  ;;  %v805_v17 = vadd.f32 %v804_v13, %v8508_v44 }
 0x109   : > { %v1085_v18 = vmul.f32 %v8513_v49, %v945_v8  ;;  %v1149_v19 = vmul.f32 %v8513_v49, %v1009_v9  ;;  %v947_v20 = vmax.f32 %v643_v10, 0.0  ;;  %v1011_v21 = vmax.f32 %v803_v12, 0.0 }
 0x10a   : > { %v1086_v22 = vmul.f32 %v8518_v54, %v946_v14  ;;  %v1150_v23 = vmul.f32 %v8518_v54, %v1010_v15  ;;  %v948_v24 = vmax.f32 %v645_v16, 0.0  ;;  %v1012_v25 = vmax.f32 %v805_v17, 0.0  ;;  %1215 = vadd.xlane.f32.xlu1 %v1214_v7  ;;  %1308 = vadd.xlane.f32.xlu0 %v1307_v60 }
 0x10b   : > { %v1087_v26 = vmul.f32 %v8513_v49, %v947_v20  ;;  %v1310_v27 = vadd.f32 %v1148_v62, %v1147_v61  ;;  %v1151_v33 = vmul.f32 %v8513_v49, %v1011_v21 }
 0x10c   : > { %v1088_v28 = vmul.f32 %v8518_v54, %v948_v24  ;;  %v648_v29 = vpop.f32.mrb[12].mxu0  ;;  %v808_v30 = vpop.f32.mrb[12].mxu1  ;;  %v1217_v31 = vadd.f32 %v1086_v22, %v1085_v18  ;;  %v1313_v32 = vadd.f32 %v1150_v23, %v1149_v19  ;;  %v1152_v34 = vmul.f32 %v8518_v54, %v1012_v25 }
 0x10d   : > { %v649_v35 = vadd.f32 %v648_v29, %v8502_v42  ;;  %v650_v36 = vpop.f32.mrb[13].mxu0  ;;  %v809_v40 = vadd.f32 %v808_v30, %v8502_v42  ;;  %v810_v43 = vpop.f32.mrb[13].mxu1 }
 0x10e   : > { %v651_v45 = vadd.f32 %v650_v36, %v8508_v44  ;;  %v652_v46 = vpop.f32.mrb[14].mxu0  ;;  %v811_v47 = vadd.f32 %v810_v43, %v8508_v44  ;;  %1311 = vadd.xlane.f32.xlu1 %v1310_v27  ;;  %1218 = vadd.xlane.f32.xlu0 %v1217_v31  ;;  %v812_v48 = vpop.f32.mrb[14].mxu1  ;;  %v1220_v50 = vadd.f32 %v1088_v28, %v1087_v26 }
 0x10f   : > { %v949_v51 = vmax.f32 %v649_v35, 0.0  ;;  %v1013_v52 = vmax.f32 %v809_v40, 0.0  ;;  %v653_v53 = vadd.f32 %v652_v46, %v8502_v42  ;;  %v654_v55 = vpop.f32.mrb[15].mxu0  ;;  %v813_v56 = vadd.f32 %v812_v48, %v8502_v42  ;;  %v814_v57 = vpop.f32.mrb[15].mxu1 }
 0x110   : > { %v950_v58 = vmax.f32 %v651_v45, 0.0  ;;  %v1014_v59 = vmax.f32 %v811_v47, 0.0  ;;  %v655_v60 = vadd.f32 %v654_v55, %v8508_v44  ;;  %v815_v61 = vadd.f32 %v814_v57, %v8508_v44 }
 0x111   : > { %v1089_v62 = vmul.f32 %v8513_v49, %v949_v51  ;;  %v1153_v63 = vmul.f32 %v8513_v49, %v1013_v52  ;;  %v951_v0 = vmax.f32 %v653_v53, 0.0  ;;  %v1015_v1 = vmax.f32 %v813_v56, 0.0 }
 0x112   : > { %v1090_v2 = vmul.f32 %v8518_v54, %v950_v58  ;;  %v1154_v3 = vmul.f32 %v8518_v54, %v1014_v59  ;;  %v952_v4 = vmax.f32 %v655_v60, 0.0  ;;  %v1016_v5 = vmax.f32 %v815_v61, 0.0  ;;  %1221 = vadd.xlane.f32.xlu1 %v1220_v50  ;;  %1314 = vadd.xlane.f32.xlu0 %v1313_v32 }
 0x113   : > { %v1091_v6 = vmul.f32 %v8513_v49, %v951_v0  ;;  %v1316_v7 = vadd.f32 %v1152_v34, %v1151_v33  ;;  %v1155_v13 = vmul.f32 %v8513_v49, %v1015_v1 }
 0x114   : > { %v1092_v8 = vmul.f32 %v8518_v54, %v952_v4  ;;  %v658_v9 = vpop.f32.mrb[16].mxu0  ;;  %v818_v10 = vpop.f32.mrb[16].mxu1  ;;  %v1223_v11 = vadd.f32 %v1090_v2, %v1089_v62  ;;  %v1319_v12 = vadd.f32 %v1154_v3, %v1153_v63  ;;  %v1156_v14 = vmul.f32 %v8518_v54, %v1016_v5 }
 0x115   : > { %v659_v15 = vadd.f32 %v658_v9, %v8502_v42  ;;  %v660_v16 = vpop.f32.mrb[17].mxu0  ;;  %v819_v17 = vadd.f32 %v818_v10, %v8502_v42  ;;  %v820_v18 = vpop.f32.mrb[17].mxu1 }
 0x116   : > { %v661_v19 = vadd.f32 %v660_v16, %v8508_v44  ;;  %v662_v20 = vpop.f32.mrb[18].mxu0  ;;  %v821_v21 = vadd.f32 %v820_v18, %v8508_v44  ;;  %1317 = vadd.xlane.f32.xlu1 %v1316_v7  ;;  %1224 = vadd.xlane.f32.xlu0 %v1223_v11  ;;  %v822_v22 = vpop.f32.mrb[18].mxu1  ;;  %v1226_v23 = vadd.f32 %v1092_v8, %v1091_v6 }
 0x117   : > { %v953_v24 = vmax.f32 %v659_v15, 0.0  ;;  %v1017_v25 = vmax.f32 %v819_v17, 0.0  ;;  %v663_v26 = vadd.f32 %v662_v20, %v8502_v42  ;;  %v664_v27 = vpop.f32.mrb[19].mxu0  ;;  %v823_v28 = vadd.f32 %v822_v22, %v8502_v42  ;;  %v824_v29 = vpop.f32.mrb[19].mxu1 }
 0x118   : > { %v954_v30 = vmax.f32 %v661_v19, 0.0  ;;  %v1018_v31 = vmax.f32 %v821_v21, 0.0  ;;  %v665_v32 = vadd.f32 %v664_v27, %v8508_v44  ;;  %v825_v33 = vadd.f32 %v824_v29, %v8508_v44 }
 0x119   : > { %v1093_v34 = vmul.f32 %v8513_v49, %v953_v24  ;;  %v1157_v35 = vmul.f32 %v8513_v49, %v1017_v25  ;;  %v955_v36 = vmax.f32 %v663_v26, 0.0  ;;  %v1019_v40 = vmax.f32 %v823_v28, 0.0 }
 0x11a   : > { %v1094_v43 = vmul.f32 %v8518_v54, %v954_v30  ;;  %v1158_v45 = vmul.f32 %v8518_v54, %v1018_v31  ;;  %v956_v46 = vmax.f32 %v665_v32, 0.0  ;;  %v1020_v47 = vmax.f32 %v825_v33, 0.0  ;;  %1227 = vadd.xlane.f32.xlu1 %v1226_v23  ;;  %1320 = vadd.xlane.f32.xlu0 %v1319_v12 }
 0x11b   : > { %v1095_v48 = vmul.f32 %v8513_v49, %v955_v36  ;;  %v1322_v50 = vadd.f32 %v1156_v14, %v1155_v13  ;;  %v1159_v57 = vmul.f32 %v8513_v49, %v1019_v40 }
 0x11c   : > { %v1096_v51 = vmul.f32 %v8518_v54, %v956_v46  ;;  %v668_v52 = vpop.f32.mrb[20].mxu0  ;;  %v828_v53 = vpop.f32.mrb[20].mxu1  ;;  %v1229_v55 = vadd.f32 %v1094_v43, %v1093_v34  ;;  %v1325_v56 = vadd.f32 %v1158_v45, %v1157_v35  ;;  %v1160_v58 = vmul.f32 %v8518_v54, %v1020_v47 }
 0x11d   : > { %v669_v59 = vadd.f32 %v668_v52, %v8502_v42  ;;  %v670_v60 = vpop.f32.mrb[21].mxu0  ;;  %v829_v61 = vadd.f32 %v828_v53, %v8502_v42  ;;  %v830_v62 = vpop.f32.mrb[21].mxu1 }
 0x11e   : > { %v671_v63 = vadd.f32 %v670_v60, %v8508_v44  ;;  %v672_v0 = vpop.f32.mrb[22].mxu0  ;;  %v831_v1 = vadd.f32 %v830_v62, %v8508_v44  ;;  %1323 = vadd.xlane.f32.xlu1 %v1322_v50  ;;  %1230 = vadd.xlane.f32.xlu0 %v1229_v55  ;;  %v832_v2 = vpop.f32.mrb[22].mxu1  ;;  %v1232_v3 = vadd.f32 %v1096_v51, %v1095_v48 }
 0x11f   : > { %v957_v4 = vmax.f32 %v669_v59, 0.0  ;;  %v1021_v5 = vmax.f32 %v829_v61, 0.0  ;;  %v673_v6 = vadd.f32 %v672_v0, %v8502_v42  ;;  %v674_v7 = vpop.f32.mrb[23].mxu0  ;;  %v833_v8 = vadd.f32 %v832_v2, %v8502_v42  ;;  %v834_v9 = vpop.f32.mrb[23].mxu1 }
 0x120   : > { %v958_v10 = vmax.f32 %v671_v63, 0.0  ;;  %v1022_v11 = vmax.f32 %v831_v1, 0.0  ;;  %v675_v12 = vadd.f32 %v674_v7, %v8508_v44  ;;  %v835_v13 = vadd.f32 %v834_v9, %v8508_v44 }
 0x121   : > { %v1097_v14 = vmul.f32 %v8513_v49, %v957_v4  ;;  %v1161_v15 = vmul.f32 %v8513_v49, %v1021_v5  ;;  %v959_v16 = vmax.f32 %v673_v6, 0.0  ;;  %v1023_v17 = vmax.f32 %v833_v8, 0.0 }
 0x122   : > { %v1098_v18 = vmul.f32 %v8518_v54, %v958_v10  ;;  %v1162_v19 = vmul.f32 %v8518_v54, %v1022_v11  ;;  %v960_v20 = vmax.f32 %v675_v12, 0.0  ;;  %v1024_v21 = vmax.f32 %v835_v13, 0.0  ;;  %1233 = vadd.xlane.f32.xlu1 %v1232_v3  ;;  %1326 = vadd.xlane.f32.xlu0 %v1325_v56 }
 0x123   : > { %v1099_v22 = vmul.f32 %v8513_v49, %v959_v16  ;;  %v1328_v23 = vadd.f32 %v1160_v58, %v1159_v57  ;;  %v1163_v29 = vmul.f32 %v8513_v49, %v1023_v17 }
 0x124   : > { %v1100_v24 = vmul.f32 %v8518_v54, %v960_v20  ;;  %v678_v25 = vpop.f32.mrb[24].mxu0  ;;  %v838_v26 = vpop.f32.mrb[24].mxu1  ;;  %v1235_v27 = vadd.f32 %v1098_v18, %v1097_v14  ;;  %v1331_v28 = vadd.f32 %v1162_v19, %v1161_v15  ;;  %v1164_v30 = vmul.f32 %v8518_v54, %v1024_v21 }
 0x125   : > { %v679_v31 = vadd.f32 %v678_v25, %v8502_v42  ;;  %v680_v32 = vpop.f32.mrb[25].mxu0  ;;  %v839_v33 = vadd.f32 %v838_v26, %v8502_v42  ;;  %v840_v34 = vpop.f32.mrb[25].mxu1 }
 0x126   : > { %v681_v35 = vadd.f32 %v680_v32, %v8508_v44  ;;  %v682_v36 = vpop.f32.mrb[26].mxu0  ;;  %v841_v40 = vadd.f32 %v840_v34, %v8508_v44  ;;  %1329 = vadd.xlane.f32.xlu1 %v1328_v23  ;;  %1236 = vadd.xlane.f32.xlu0 %v1235_v27  ;;  %v842_v43 = vpop.f32.mrb[26].mxu1  ;;  %v1238_v45 = vadd.f32 %v1100_v24, %v1099_v22 }
 0x127   : > { %v961_v46 = vmax.f32 %v679_v31, 0.0  ;;  %v1025_v47 = vmax.f32 %v839_v33, 0.0  ;;  %v683_v48 = vadd.f32 %v682_v36, %v8502_v42  ;;  %v684_v50 = vpop.f32.mrb[27].mxu0  ;;  %v843_v51 = vadd.f32 %v842_v43, %v8502_v42  ;;  %v844_v52 = vpop.f32.mrb[27].mxu1 }
 0x128   : > { %v962_v53 = vmax.f32 %v681_v35, 0.0  ;;  %v1026_v55 = vmax.f32 %v841_v40, 0.0  ;;  %v685_v56 = vadd.f32 %v684_v50, %v8508_v44  ;;  %v845_v57 = vadd.f32 %v844_v52, %v8508_v44 }
 0x129   : > { %v1101_v58 = vmul.f32 %v8513_v49, %v961_v46  ;;  %v1165_v59 = vmul.f32 %v8513_v49, %v1025_v47  ;;  %v963_v60 = vmax.f32 %v683_v48, 0.0  ;;  %v1027_v61 = vmax.f32 %v843_v51, 0.0 }
 0x12a   : > { %v1102_v62 = vmul.f32 %v8518_v54, %v962_v53  ;;  %v1166_v63 = vmul.f32 %v8518_v54, %v1026_v55  ;;  %v964_v0 = vmax.f32 %v685_v56, 0.0  ;;  %v1028_v1 = vmax.f32 %v845_v57, 0.0  ;;  %1239 = vadd.xlane.f32.xlu1 %v1238_v45  ;;  %1332 = vadd.xlane.f32.xlu0 %v1331_v28 }
 0x12b   : > { %v1103_v2 = vmul.f32 %v8513_v49, %v963_v60  ;;  %v1334_v3 = vadd.f32 %v1164_v30, %v1163_v29  ;;  %v1167_v9 = vmul.f32 %v8513_v49, %v1027_v61 }
 0x12c   : > { %v1104_v4 = vmul.f32 %v8518_v54, %v964_v0  ;;  %v688_v5 = vpop.f32.mrb[28].mxu0  ;;  %v848_v6 = vpop.f32.mrb[28].mxu1  ;;  %v1241_v7 = vadd.f32 %v1102_v62, %v1101_v58  ;;  %v1337_v8 = vadd.f32 %v1166_v63, %v1165_v59  ;;  %v1168_v10 = vmul.f32 %v8518_v54, %v1028_v1 }
 0x12d   : > { %v689_v11 = vadd.f32 %v688_v5, %v8502_v42  ;;  %v690_v12 = vpop.f32.mrb[29].mxu0  ;;  %v849_v13 = vadd.f32 %v848_v6, %v8502_v42  ;;  %v850_v14 = vpop.f32.mrb[29].mxu1 }
 0x12e   : > { %v691_v15 = vadd.f32 %v690_v12, %v8508_v44  ;;  %v692_v16 = vpop.f32.mrb[30].mxu0  ;;  %v851_v17 = vadd.f32 %v850_v14, %v8508_v44  ;;  %1335 = vadd.xlane.f32.xlu1 %v1334_v3  ;;  %1242 = vadd.xlane.f32.xlu0 %v1241_v7  ;;  %v852_v18 = vpop.f32.mrb[30].mxu1  ;;  %v1244_v19 = vadd.f32 %v1104_v4, %v1103_v2 }
 0x12f   : > { %v965_v20 = vmax.f32 %v689_v11, 0.0  ;;  %v1029_v21 = vmax.f32 %v849_v13, 0.0  ;;  %v693_v22 = vadd.f32 %v692_v16, %v8502_v42  ;;  %v694_v23 = vpop.f32.mrb[31].mxu0  ;;  %v853_v24 = vadd.f32 %v852_v18, %v8502_v42  ;;  %v854_v25 = vpop.f32.mrb[31].mxu1 }
 0x130   : > { %v966_v26 = vmax.f32 %v691_v15, 0.0  ;;  %v1030_v27 = vmax.f32 %v851_v17, 0.0  ;;  %v695_v28 = vadd.f32 %v694_v23, %v8508_v44  ;;  %v855_v29 = vadd.f32 %v854_v25, %v8508_v44 }
 0x131   : > { %v1105_v30 = vmul.f32 %v8513_v49, %v965_v20  ;;  %v1169_v31 = vmul.f32 %v8513_v49, %v1029_v21  ;;  %v967_v32 = vmax.f32 %v693_v22, 0.0  ;;  %v1031_v33 = vmax.f32 %v853_v24, 0.0 }
 0x132   : > { %v1106_v34 = vmul.f32 %v8518_v54, %v966_v26  ;;  %v1170_v35 = vmul.f32 %v8518_v54, %v1030_v27  ;;  %v968_v36 = vmax.f32 %v695_v28, 0.0  ;;  %v1032_v40 = vmax.f32 %v855_v29, 0.0  ;;  %1245 = vadd.xlane.f32.xlu1 %v1244_v19  ;;  %1338 = vadd.xlane.f32.xlu0 %v1337_v8 }
 0x133   : > { %v1107_v43 = vmul.f32 %v8513_v49, %v967_v32  ;;  %v1340_v45 = vadd.f32 %v1168_v10, %v1167_v9  ;;  %v1171_v52 = vmul.f32 %v8513_v49, %v1031_v33 }
 0x134   : > { %v1108_v46 = vmul.f32 %v8518_v54, %v968_v36  ;;  %v698_v47 = vpop.f32.mrb[32].mxu0  ;;  %v858_v48 = vpop.f32.mrb[32].mxu1  ;;  %v1247_v50 = vadd.f32 %v1106_v34, %v1105_v30  ;;  %v1343_v51 = vadd.f32 %v1170_v35, %v1169_v31  ;;  %v1172_v53 = vmul.f32 %v8518_v54, %v1032_v40 }
 0x135   : > { %v699_v55 = vadd.f32 %v698_v47, %v8502_v42  ;;  %v700_v56 = vpop.f32.mrb[33].mxu0  ;;  %v859_v57 = vadd.f32 %v858_v48, %v8502_v42  ;;  %v860_v58 = vpop.f32.mrb[33].mxu1 }
 0x136   : > { %v701_v59 = vadd.f32 %v700_v56, %v8508_v44  ;;  %v702_v60 = vpop.f32.mrb[34].mxu0  ;;  %v861_v61 = vadd.f32 %v860_v58, %v8508_v44  ;;  %1341 = vadd.xlane.f32.xlu1 %v1340_v45  ;;  %1248 = vadd.xlane.f32.xlu0 %v1247_v50  ;;  %v862_v62 = vpop.f32.mrb[34].mxu1  ;;  %v1250_v63 = vadd.f32 %v1108_v46, %v1107_v43 }
 0x137   : > { %v969_v0 = vmax.f32 %v699_v55, 0.0  ;;  %v1033_v1 = vmax.f32 %v859_v57, 0.0  ;;  %v703_v2 = vadd.f32 %v702_v60, %v8502_v42  ;;  %v704_v3 = vpop.f32.mrb[35].mxu0  ;;  %v863_v4 = vadd.f32 %v862_v62, %v8502_v42  ;;  %v864_v5 = vpop.f32.mrb[35].mxu1 }
 0x138   : > { %v970_v6 = vmax.f32 %v701_v59, 0.0  ;;  %v1034_v7 = vmax.f32 %v861_v61, 0.0  ;;  %v705_v8 = vadd.f32 %v704_v3, %v8508_v44  ;;  %v865_v9 = vadd.f32 %v864_v5, %v8508_v44 }
 0x139   : > { %v1109_v10 = vmul.f32 %v8513_v49, %v969_v0  ;;  %v1173_v11 = vmul.f32 %v8513_v49, %v1033_v1  ;;  %v971_v12 = vmax.f32 %v703_v2, 0.0  ;;  %v1035_v13 = vmax.f32 %v863_v4, 0.0 }
 0x13a   : > { %v1110_v14 = vmul.f32 %v8518_v54, %v970_v6  ;;  %v1174_v15 = vmul.f32 %v8518_v54, %v1034_v7  ;;  %v972_v16 = vmax.f32 %v705_v8, 0.0  ;;  %v1036_v17 = vmax.f32 %v865_v9, 0.0  ;;  %1251 = vadd.xlane.f32.xlu1 %v1250_v63  ;;  %1344 = vadd.xlane.f32.xlu0 %v1343_v51 }
 0x13b   : > { %v1111_v18 = vmul.f32 %v8513_v49, %v971_v12  ;;  %v1346_v19 = vadd.f32 %v1172_v53, %v1171_v52  ;;  %v1175_v25 = vmul.f32 %v8513_v49, %v1035_v13 }
 0x13c   : > { %v1112_v20 = vmul.f32 %v8518_v54, %v972_v16  ;;  %v708_v21 = vpop.f32.mrb[36].mxu0  ;;  %v868_v22 = vpop.f32.mrb[36].mxu1  ;;  %v1253_v23 = vadd.f32 %v1110_v14, %v1109_v10  ;;  %v1349_v24 = vadd.f32 %v1174_v15, %v1173_v11  ;;  %v1176_v26 = vmul.f32 %v8518_v54, %v1036_v17 }
 0x13d   : > { %v709_v27 = vadd.f32 %v708_v21, %v8502_v42  ;;  %v710_v28 = vpop.f32.mrb[37].mxu0  ;;  %v869_v29 = vadd.f32 %v868_v22, %v8502_v42  ;;  %v870_v30 = vpop.f32.mrb[37].mxu1 }
 0x13e   : > { %v711_v31 = vadd.f32 %v710_v28, %v8508_v44  ;;  %v712_v32 = vpop.f32.mrb[38].mxu0  ;;  %v871_v33 = vadd.f32 %v870_v30, %v8508_v44  ;;  %1347 = vadd.xlane.f32.xlu1 %v1346_v19  ;;  %1254 = vadd.xlane.f32.xlu0 %v1253_v23  ;;  %v872_v34 = vpop.f32.mrb[38].mxu1  ;;  %v1256_v35 = vadd.f32 %v1112_v20, %v1111_v18 }
 0x13f   : > { %v973_v36 = vmax.f32 %v709_v27, 0.0  ;;  %v1037_v40 = vmax.f32 %v869_v29, 0.0  ;;  %v713_v43 = vadd.f32 %v712_v32, %v8502_v42  ;;  %v714_v45 = vpop.f32.mrb[39].mxu0  ;;  %v873_v46 = vadd.f32 %v872_v34, %v8502_v42  ;;  %v874_v47 = vpop.f32.mrb[39].mxu1 }
 0x140   : > { %v974_v48 = vmax.f32 %v711_v31, 0.0  ;;  %v1038_v50 = vmax.f32 %v871_v33, 0.0  ;;  %v715_v51 = vadd.f32 %v714_v45, %v8508_v44  ;;  %v875_v52 = vadd.f32 %v874_v47, %v8508_v44 }
 0x141   : > { %v1113_v53 = vmul.f32 %v8513_v49, %v973_v36  ;;  %v1177_v55 = vmul.f32 %v8513_v49, %v1037_v40  ;;  %v975_v56 = vmax.f32 %v713_v43, 0.0  ;;  %v1039_v57 = vmax.f32 %v873_v46, 0.0 }
 0x142   : > { %v1114_v58 = vmul.f32 %v8518_v54, %v974_v48  ;;  %v1178_v59 = vmul.f32 %v8518_v54, %v1038_v50  ;;  %v976_v60 = vmax.f32 %v715_v51, 0.0  ;;  %v1040_v61 = vmax.f32 %v875_v52, 0.0  ;;  %1257 = vadd.xlane.f32.xlu1 %v1256_v35  ;;  %1350 = vadd.xlane.f32.xlu0 %v1349_v24 }
 0x143   : > { %v1115_v62 = vmul.f32 %v8513_v49, %v975_v56  ;;  %v1352_v63 = vadd.f32 %v1176_v26, %v1175_v25  ;;  %v1179_v5 = vmul.f32 %v8513_v49, %v1039_v57 }
 0x144   : > { %v1116_v0 = vmul.f32 %v8518_v54, %v976_v60  ;;  %v718_v1 = vpop.f32.mrb[40].mxu0  ;;  %v878_v2 = vpop.f32.mrb[40].mxu1  ;;  %v1259_v3 = vadd.f32 %v1114_v58, %v1113_v53  ;;  %v1355_v4 = vadd.f32 %v1178_v59, %v1177_v55  ;;  %v1180_v6 = vmul.f32 %v8518_v54, %v1040_v61 }
 0x145   : > { %v719_v7 = vadd.f32 %v718_v1, %v8502_v42  ;;  %v720_v8 = vpop.f32.mrb[41].mxu0  ;;  %v879_v9 = vadd.f32 %v878_v2, %v8502_v42  ;;  %v880_v10 = vpop.f32.mrb[41].mxu1 }
 0x146   : > { %v721_v11 = vadd.f32 %v720_v8, %v8508_v44  ;;  %v722_v12 = vpop.f32.mrb[42].mxu0  ;;  %v881_v13 = vadd.f32 %v880_v10, %v8508_v44  ;;  %1353 = vadd.xlane.f32.xlu1 %v1352_v63  ;;  %1260 = vadd.xlane.f32.xlu0 %v1259_v3  ;;  %v882_v14 = vpop.f32.mrb[42].mxu1  ;;  %v1262_v15 = vadd.f32 %v1116_v0, %v1115_v62 }
 0x147   : > { %v977_v16 = vmax.f32 %v719_v7, 0.0  ;;  %v1041_v17 = vmax.f32 %v879_v9, 0.0  ;;  %v723_v18 = vadd.f32 %v722_v12, %v8502_v42  ;;  %v724_v19 = vpop.f32.mrb[43].mxu0  ;;  %v883_v20 = vadd.f32 %v882_v14, %v8502_v42  ;;  %v884_v21 = vpop.f32.mrb[43].mxu1 }
 0x148   : > { %v978_v22 = vmax.f32 %v721_v11, 0.0  ;;  %v1042_v23 = vmax.f32 %v881_v13, 0.0  ;;  %v725_v24 = vadd.f32 %v724_v19, %v8508_v44  ;;  %v885_v25 = vadd.f32 %v884_v21, %v8508_v44 }
 0x149   : > { %v1117_v26 = vmul.f32 %v8513_v49, %v977_v16  ;;  %v1181_v27 = vmul.f32 %v8513_v49, %v1041_v17  ;;  %v979_v28 = vmax.f32 %v723_v18, 0.0  ;;  %v1043_v29 = vmax.f32 %v883_v20, 0.0 }
 0x14a   : > { %v1118_v30 = vmul.f32 %v8518_v54, %v978_v22  ;;  %v1182_v31 = vmul.f32 %v8518_v54, %v1042_v23  ;;  %v980_v32 = vmax.f32 %v725_v24, 0.0  ;;  %v1044_v33 = vmax.f32 %v885_v25, 0.0  ;;  %1263 = vadd.xlane.f32.xlu1 %v1262_v15  ;;  %1356 = vadd.xlane.f32.xlu0 %v1355_v4 }
 0x14b   : > { %v1119_v34 = vmul.f32 %v8513_v49, %v979_v28  ;;  %v1358_v35 = vadd.f32 %v1180_v6, %v1179_v5  ;;  %v1183_v47 = vmul.f32 %v8513_v49, %v1043_v29 }
 0x14c   : > { %v1120_v36 = vmul.f32 %v8518_v54, %v980_v32  ;;  %v728_v40 = vpop.f32.mrb[44].mxu0  ;;  %v888_v43 = vpop.f32.mrb[44].mxu1  ;;  %v1265_v45 = vadd.f32 %v1118_v30, %v1117_v26  ;;  %v1361_v46 = vadd.f32 %v1182_v31, %v1181_v27  ;;  %v1184_v48 = vmul.f32 %v8518_v54, %v1044_v33 }
 0x14d   : > { %v729_v50 = vadd.f32 %v728_v40, %v8502_v42  ;;  %v730_v51 = vpop.f32.mrb[45].mxu0  ;;  %v889_v52 = vadd.f32 %v888_v43, %v8502_v42  ;;  %v890_v53 = vpop.f32.mrb[45].mxu1 }
 0x14e   : > { %v731_v55 = vadd.f32 %v730_v51, %v8508_v44  ;;  %v732_v56 = vpop.f32.mrb[46].mxu0  ;;  %v891_v57 = vadd.f32 %v890_v53, %v8508_v44  ;;  %1359 = vadd.xlane.f32.xlu1 %v1358_v35  ;;  %1266 = vadd.xlane.f32.xlu0 %v1265_v45  ;;  %v892_v58 = vpop.f32.mrb[46].mxu1  ;;  %v1268_v59 = vadd.f32 %v1120_v36, %v1119_v34 }
 0x14f   : > { %v981_v60 = vmax.f32 %v729_v50, 0.0  ;;  %v1045_v61 = vmax.f32 %v889_v52, 0.0  ;;  %v733_v62 = vadd.f32 %v732_v56, %v8502_v42  ;;  %v734_v63 = vpop.f32.mrb[47].mxu0  ;;  %v893_v0 = vadd.f32 %v892_v58, %v8502_v42  ;;  %v894_v1 = vpop.f32.mrb[47].mxu1 }
 0x150   : > { %v982_v2 = vmax.f32 %v731_v55, 0.0  ;;  %v1046_v3 = vmax.f32 %v891_v57, 0.0  ;;  %v735_v4 = vadd.f32 %v734_v63, %v8508_v44  ;;  %v895_v5 = vadd.f32 %v894_v1, %v8508_v44 }
 0x151   : > { %v1121_v6 = vmul.f32 %v8513_v49, %v981_v60  ;;  %v1185_v7 = vmul.f32 %v8513_v49, %v1045_v61  ;;  %v983_v8 = vmax.f32 %v733_v62, 0.0  ;;  %v1047_v9 = vmax.f32 %v893_v0, 0.0 }
 0x152   : > { %v1122_v10 = vmul.f32 %v8518_v54, %v982_v2  ;;  %v1186_v11 = vmul.f32 %v8518_v54, %v1046_v3  ;;  %v984_v12 = vmax.f32 %v735_v4, 0.0  ;;  %v1048_v13 = vmax.f32 %v895_v5, 0.0  ;;  %1269 = vadd.xlane.f32.xlu1 %v1268_v59  ;;  %1362 = vadd.xlane.f32.xlu0 %v1361_v46 }
 0x153   : > { %v1123_v14 = vmul.f32 %v8513_v49, %v983_v8  ;;  %v1364_v15 = vadd.f32 %v1184_v48, %v1183_v47  ;;  %v1187_v21 = vmul.f32 %v8513_v49, %v1047_v9 }
 0x154   : > { %v1124_v16 = vmul.f32 %v8518_v54, %v984_v12  ;;  %v738_v17 = vpop.f32.mrb[48].mxu0  ;;  %v898_v18 = vpop.f32.mrb[48].mxu1  ;;  %v1271_v19 = vadd.f32 %v1122_v10, %v1121_v6  ;;  %v1367_v20 = vadd.f32 %v1186_v11, %v1185_v7  ;;  %v1188_v22 = vmul.f32 %v8518_v54, %v1048_v13 }
 0x155   : > { %v739_v23 = vadd.f32 %v738_v17, %v8502_v42  ;;  %v740_v24 = vpop.f32.mrb[49].mxu0  ;;  %v899_v25 = vadd.f32 %v898_v18, %v8502_v42  ;;  %v900_v26 = vpop.f32.mrb[49].mxu1 }
 0x156   : > { %v741_v27 = vadd.f32 %v740_v24, %v8508_v44  ;;  %v742_v28 = vpop.f32.mrb[50].mxu0  ;;  %v901_v29 = vadd.f32 %v900_v26, %v8508_v44  ;;  %1365 = vadd.xlane.f32.xlu1 %v1364_v15  ;;  %1272 = vadd.xlane.f32.xlu0 %v1271_v19  ;;  %v902_v30 = vpop.f32.mrb[50].mxu1  ;;  %v1274_v31 = vadd.f32 %v1124_v16, %v1123_v14 }
 0x157   : > { %v985_v32 = vmax.f32 %v739_v23, 0.0  ;;  %v1049_v33 = vmax.f32 %v899_v25, 0.0  ;;  %v743_v34 = vadd.f32 %v742_v28, %v8502_v42  ;;  %v744_v35 = vpop.f32.mrb[51].mxu0  ;;  %v903_v36 = vadd.f32 %v902_v30, %v8502_v42  ;;  %v904_v40 = vpop.f32.mrb[51].mxu1 }
 0x158   : > { %v986_v43 = vmax.f32 %v741_v27, 0.0  ;;  %v1050_v45 = vmax.f32 %v901_v29, 0.0  ;;  %v745_v46 = vadd.f32 %v744_v35, %v8508_v44  ;;  %v905_v47 = vadd.f32 %v904_v40, %v8508_v44 }
 0x159   : > { %v1125_v48 = vmul.f32 %v8513_v49, %v985_v32  ;;  %v1189_v50 = vmul.f32 %v8513_v49, %v1049_v33  ;;  %v987_v51 = vmax.f32 %v743_v34, 0.0  ;;  %v1051_v52 = vmax.f32 %v903_v36, 0.0 }
 0x15a   : > { %v1126_v53 = vmul.f32 %v8518_v54, %v986_v43  ;;  %v1190_v55 = vmul.f32 %v8518_v54, %v1050_v45  ;;  %v988_v56 = vmax.f32 %v745_v46, 0.0  ;;  %v1052_v57 = vmax.f32 %v905_v47, 0.0  ;;  %1275 = vadd.xlane.f32.xlu1 %v1274_v31  ;;  %1368 = vadd.xlane.f32.xlu0 %v1367_v20 }
 0x15b   : > { %v1127_v58 = vmul.f32 %v8513_v49, %v987_v51  ;;  %v1370_v59 = vadd.f32 %v1188_v22, %v1187_v21  ;;  %v1191_v1 = vmul.f32 %v8513_v49, %v1051_v52 }
 0x15c   : > { %v1128_v60 = vmul.f32 %v8518_v54, %v988_v56  ;;  %v748_v61 = vpop.f32.mrb[52].mxu0  ;;  %v908_v62 = vpop.f32.mrb[52].mxu1  ;;  %v1277_v63 = vadd.f32 %v1126_v53, %v1125_v48  ;;  %v1373_v0 = vadd.f32 %v1190_v55, %v1189_v50  ;;  %v1192_v2 = vmul.f32 %v8518_v54, %v1052_v57 }
 0x15d   : > { %v749_v3 = vadd.f32 %v748_v61, %v8502_v42  ;;  %v750_v4 = vpop.f32.mrb[53].mxu0  ;;  %v909_v5 = vadd.f32 %v908_v62, %v8502_v42  ;;  %v910_v6 = vpop.f32.mrb[53].mxu1 }
 0x15e   : > { %v751_v7 = vadd.f32 %v750_v4, %v8508_v44  ;;  %v752_v8 = vpop.f32.mrb[54].mxu0  ;;  %v911_v9 = vadd.f32 %v910_v6, %v8508_v44  ;;  %1371 = vadd.xlane.f32.xlu1 %v1370_v59  ;;  %1278 = vadd.xlane.f32.xlu0 %v1277_v63  ;;  %v912_v10 = vpop.f32.mrb[54].mxu1  ;;  %v1280_v11 = vadd.f32 %v1128_v60, %v1127_v58 }
 0x15f   : > { %v989_v12 = vmax.f32 %v749_v3, 0.0  ;;  %v1053_v13 = vmax.f32 %v909_v5, 0.0  ;;  %v753_v14 = vadd.f32 %v752_v8, %v8502_v42  ;;  %v754_v15 = vpop.f32.mrb[55].mxu0  ;;  %v913_v16 = vadd.f32 %v912_v10, %v8502_v42  ;;  %v914_v17 = vpop.f32.mrb[55].mxu1 }
 0x160   : > { %v990_v18 = vmax.f32 %v751_v7, 0.0  ;;  %v1054_v19 = vmax.f32 %v911_v9, 0.0  ;;  %v755_v20 = vadd.f32 %v754_v15, %v8508_v44  ;;  %v915_v21 = vadd.f32 %v914_v17, %v8508_v44 }
 0x161   : > { %v1129_v22 = vmul.f32 %v8513_v49, %v989_v12  ;;  %v1193_v23 = vmul.f32 %v8513_v49, %v1053_v13  ;;  %v991_v24 = vmax.f32 %v753_v14, 0.0  ;;  %v1055_v25 = vmax.f32 %v913_v16, 0.0 }
 0x162   : > { %v1130_v26 = vmul.f32 %v8518_v54, %v990_v18  ;;  %v1194_v27 = vmul.f32 %v8518_v54, %v1054_v19  ;;  %v992_v28 = vmax.f32 %v755_v20, 0.0  ;;  %v1056_v29 = vmax.f32 %v915_v21, 0.0  ;;  %1281 = vadd.xlane.f32.xlu1 %v1280_v11  ;;  %1374 = vadd.xlane.f32.xlu0 %v1373_v0 }
 0x163   : > { %v1131_v30 = vmul.f32 %v8513_v49, %v991_v24  ;;  %v1376_v31 = vadd.f32 %v1192_v2, %v1191_v1  ;;  %v1195_v40 = vmul.f32 %v8513_v49, %v1055_v25 }
 0x164   : > { %v1132_v32 = vmul.f32 %v8518_v54, %v992_v28  ;;  %v758_v33 = vpop.f32.mrb[56].mxu0  ;;  %v1283_v34 = vadd.f32 %v1130_v26, %v1129_v22  ;;  %v918_v35 = vpop.f32.mrb[56].mxu1  ;;  %v1379_v36 = vadd.f32 %v1194_v27, %v1193_v23  ;;  %v1196_v43 = vmul.f32 %v8518_v54, %v1056_v29 }
 0x165   : > { %v759_v45 = vadd.f32 %v758_v33, %v8502_v42  ;;  %v760_v46 = vpop.f32.mrb[57].mxu0  ;;  %v919_v47 = vadd.f32 %v918_v35, %v8502_v42  ;;  %v920_v48 = vpop.f32.mrb[57].mxu1 }
 0x166   : > { %v761_v50 = vadd.f32 %v760_v46, %v8508_v44  ;;  %1377 = vadd.xlane.f32.xlu1 %v1376_v31  ;;  %1284 = vadd.xlane.f32.xlu0 %v1283_v34  ;;  %v762_v51 = vpop.f32.mrb[58].mxu0  ;;  %v921_v52 = vadd.f32 %v920_v48, %v8508_v44  ;;  %v1286_v53 = vadd.f32 %v1132_v32, %v1131_v30  ;;  %v922_v55 = vpop.f32.mrb[58].mxu1 }
 0x167   : > { %v993_v56 = vmax.f32 %v759_v45, 0.0  ;;  %v763_v57 = vadd.f32 %v762_v51, %v8502_v42  ;;  %v764_v58 = vpop.f32.mrb[59].mxu0  ;;  %v1057_v59 = vmax.f32 %v919_v47, 0.0  ;;  %v923_v60 = vadd.f32 %v922_v55, %v8502_v42  ;;  %v924_v61 = vpop.f32.mrb[59].mxu1 }
 0x168   : > { %v994_v62 = vmax.f32 %v761_v50, 0.0  ;;  %v765_v63 = vadd.f32 %v764_v58, %v8508_v44  ;;  %v1058_v0 = vmax.f32 %v921_v52, 0.0  ;;  %v925_v1 = vadd.f32 %v924_v61, %v8508_v44 }
 0x169   : > { %v1133_v2 = vmul.f32 %v8513_v49, %v993_v56  ;;  %v995_v3 = vmax.f32 %v763_v57, 0.0  ;;  %v1197_v4 = vmul.f32 %v8513_v49, %v1057_v59  ;;  %v1059_v5 = vmax.f32 %v923_v60, 0.0 }
 0x16a   : > { %v1134_v6 = vmul.f32 %v8518_v54, %v994_v62  ;;  %v996_v7 = vmax.f32 %v765_v63, 0.0  ;;  %v1198_v8 = vmul.f32 %v8518_v54, %v1058_v0  ;;  %1287 = vadd.xlane.f32.xlu1 %v1286_v53  ;;  %1380 = vadd.xlane.f32.xlu0 %v1379_v36  ;;  %v1060_v9 = vmax.f32 %v925_v1, 0.0 }
 0x16b   : > { %v1135_v10 = vmul.f32 %v8513_v49, %v995_v3  ;;  %v1199_v11 = vmul.f32 %v8513_v49, %v1059_v5  ;;  %v1382_v12 = vadd.f32 %v1196_v43, %v1195_v40  ;;  %v8772_v61 = vstv %s1397_s6 }
 0x16c   : > { %v1136_v13 = vmul.f32 %v8518_v54, %v996_v7  ;;  %v1200_v14 = vmul.f32 %v8518_v54, %v1060_v9  ;;  %v768_v15 = vpop.f32.mrb[60].mxu0  ;;  %v1289_v16 = vadd.f32 %v1134_v6, %v1133_v2  ;;  %v928_v17 = vpop.f32.mrb[60].mxu1  ;;  %v1385_v18 = vadd.f32 %v1198_v8, %v1197_v4 }
 0x16d   : > { %v769_v19 = vadd.f32 %v768_v15, %v8502_v42  ;;  %v770_v20 = vpop.f32.mrb[61].mxu0  ;;  %v929_v21 = vadd.f32 %v928_v17, %v8502_v42  ;;  %v930_v22 = vpop.f32.mrb[61].mxu1 }
 0x16e   : > { %1383 = vadd.xlane.f32.xlu1 %v1382_v12  ;;  %1290 = vadd.xlane.f32.xlu0 %v1289_v16  ;;  %v771_v23 = vadd.f32 %v770_v20, %v8508_v44  ;;  %v1292_v24 = vadd.f32 %v1136_v13, %v1135_v10  ;;  %v772_v25 = vpop.f32.mrb[62].mxu0  ;;  %v931_v26 = vadd.f32 %v930_v22, %v8508_v44  ;;  %v932_v27 = vpop.f32.mrb[62].mxu1 }
 0x16f   : > { %v997_v28 = vmax.f32 %v769_v19, 0.0  ;;  %v773_v29 = vadd.f32 %v772_v25, %v8502_v42  ;;  %v774_v30 = vpop.f32.mrb[63].mxu0  ;;  %v1061_v31 = vmax.f32 %v929_v21, 0.0  ;;  %v1388_v32 = vadd.f32 %v1200_v14, %v1199_v11  ;;  %v934_v33 = vpop.f32.mrb[63].mxu1 }
 0x170   : > { %v998_v34 = vmax.f32 %v771_v23, 0.0  ;;  %v775_v35 = vadd.f32 %v774_v30, %v8508_v44  ;;  %v1062_v36 = vmax.f32 %v931_v26, 0.0  ;;  %v933_v40 = vadd.f32 %v932_v27, %v8502_v42 }
 0x171   : > { %v1137_v43 = vmul.f32 %v8513_v49, %v997_v28  ;;  %v999_v45 = vmax.f32 %v773_v29, 0.0  ;;  %v1201_v46 = vmul.f32 %v8513_v49, %v1061_v31  ;;  %v935_v47 = vadd.f32 %v934_v33, %v8508_v44 }
 0x172   : > { %v1138_v48 = vmul.f32 %v8518_v54, %v998_v34  ;;  %1293 = vadd.xlane.f32.xlu1 %v1292_v24  ;;  %v1000_v50 = vmax.f32 %v775_v35, 0.0  ;;  %1386 = vadd.xlane.f32.xlu0 %v1385_v18  ;;  %v1202_v51 = vmul.f32 %v8518_v54, %v1062_v36  ;;  %v1063_v52 = vmax.f32 %v933_v40, 0.0 }
 0x173   : > { %v1139_v53 = vmul.f32 %v8513_v49, %v999_v45  ;;  %v1064_v55 = vmax.f32 %v935_v47, 0.0  ;;  %v8290_v31 = vmov 1966171168   ;;  %v8786_v40 = vsub.s32 2, %v8490_v38 }
 0x174   : > { %v1140_v42 = vmul.f32 %v8518_v54, %v1000_v50  ;;  %v1203_v56 = vmul.f32 %v8513_v49, %v1063_v52  ;;  %v1295_v57 = vadd.f32 %v1138_v48, %v1137_v43  ;;  %v1391_v58 = vadd.f32 %v1202_v51, %v1201_v46 }
 0x175   : > { %v1204_v59 = vmul.f32 %v8518_v54, %v1064_v55  ;;  %v8791_v55 = vsub.s32 3, %v8490_v38 }
 0x176   : > { %1389 = vadd.xlane.f32.xlu1 %v1388_v32  ;;  %v1298_v44 = vadd.f32 %v1140_v42, %v1139_v53  ;;  %1296 = vadd.xlane.f32.xlu0 %v1295_v57  ;;  %v3964_v32 = vunpack.c.l.s4 %v8290_v31  ;;  %v8794_v42 = vsub.s32 4, %v8490_v38 }
 0x177   : > { %v1394_v60 = vadd.f32 %v1204_v59, %v1203_v56  ;;  %v8797_v56 = vsub.s32 5, %v8490_v38 }
 0x178   : > { %v3965_v50 = vunpack.c.0.s8 %v3964_v32 }
 0x17a   : > { %1299 = vadd.xlane.f32.xlu1 %v1298_v44  ;;  %1392 = vadd.xlane.f32.xlu0 %v1391_v58  ;;  %v8800_v44 = vsub.s32 6, %v8490_v38 }
 0x17e   : > { %1395 = vadd.xlane.f32.xlu1 %v1394_v60 }
 0x18b   : > { %v1207_v62 = vpop.xlane.xlu0 %1206 }
 0x18c   : > { %v1399_v63 = vadd.f32 %v8772_v61, %v1207_v62 }
 0x18d   : > { %v1306_v0 = vpop.xlane.xlu1 %1305 }
 0x18e   : > { %v7814_v1 = vmul.f32 -1.442695, %v1399_v63  ;;  %v1432_v49 = vadd.f32 %v8772_v61, %v1306_v0 }
 0x18f   : > { %v1303_v2 = vpop.xlane.xlu0 %1302 }
 0x190   : > { %7969 = vpow2.f32 %v7814_v1  ;;  %v7847_v54 = vmul.f32 -1.442695, %v1432_v49  ;;  %v1431_v3 = vadd.f32 %v8772_v61, %v1303_v2  ;;  %v8803_v1 = vsub.s32 7, %v8490_v38 }
 0x191   : > { %v8806_v49 = vsub.s32 %v3965_v50, %v8490_v38 }
 0x192   : > { %7971 = vpow2.f32 %v7847_v54  ;;  %v7846_v4 = vmul.f32 -1.442695, %v1431_v3 }
 0x193   : > { %v1213_v5 = vpop.xlane.xlu1 %1212  ;;  %v1210_v6 = vpop.xlane.xlu0 %1209  ;;  %10731 = vst [vmem:[#allocation6_spill] sm:$0xff] %v8806_v49 }
 0x194   : > { %7973 = vpow2.f32 %v7846_v4  ;;  %v1401_v7 = vadd.f32 %v8772_v61, %v1213_v5  ;;  %v1400_v8 = vadd.f32 %v8772_v61, %v1210_v6 }
 0x196   : > { %v7816_v9 = vmul.f32 -1.442695, %v1401_v7  ;;  %v7815_v10 = vmul.f32 -1.442695, %v1400_v8 }
 0x197   : > { %v1216_v11 = vpop.xlane.xlu1 %1215  ;;  %v1309_v12 = vpop.xlane.xlu0 %1308 }
 0x198   : > { %7975 = vpow2.f32 %v7816_v9  ;;  %v1402_v13 = vadd.f32 %v8772_v61, %v1216_v11  ;;  %v1433_v14 = vadd.f32 %v8772_v61, %v1309_v12 }
 0x199   : > { %7977 = vpow2.f32 %v7815_v10 }
 0x19a   : > { %v7970_v15 = vpop.eup %7969  ;;  %v7817_v16 = vmul.f32 -1.442695, %v1402_v13  ;;  %v7848_v17 = vmul.f32 -1.442695, %v1433_v14 }
 0x19b   : > { %v1655_v18 = vadd.f32 1.0, %v7970_v15  ;;  %v1312_v19 = vpop.xlane.xlu1 %1311  ;;  %v1219_v20 = vpop.xlane.xlu0 %1218 }
 0x19c   : > { %v7972_v21 = vpop.eup %7971  ;;  %7979 = vpow2.f32 %v7817_v16  ;;  %v1434_v22 = vadd.f32 %v8772_v61, %v1312_v19  ;;  %v1403_v23 = vadd.f32 %v8772_v61, %v1219_v20 }
 0x19d   : > { %7981 = vrcp.f32 %v1655_v18  ;;  %v1688_v24 = vadd.f32 1.0, %v7972_v21 }
 0x19e   : > { %v7974_v25 = vpop.eup %7973  ;;  %7983 = vpow2.f32 %v7848_v17  ;;  %v7849_v26 = vmul.f32 -1.442695, %v1434_v22  ;;  %v7818_v27 = vmul.f32 -1.442695, %v1403_v23 }
 0x19f   : > { %v1687_v28 = vadd.f32 1.0, %v7974_v25  ;;  %v1222_v29 = vpop.xlane.xlu1 %1221  ;;  %v1315_v30 = vpop.xlane.xlu0 %1314 }
 0x1a0   : > { %7985 = vpow2.f32 %v7849_v26  ;;  %v1404_v33 = vadd.f32 %v8772_v61, %v1222_v29  ;;  %v1435_v34 = vadd.f32 %v8772_v61, %v1315_v30 }
 0x1a1   : > { %7987 = vrcp.f32 %v1688_v24 }
 0x1a2   : > { %v7976_v35 = vpop.eup %7975  ;;  %7989 = vpow2.f32 %v7818_v27  ;;  %v7819_v36 = vmul.f32 -1.442695, %v1404_v33  ;;  %v7850_v46 = vmul.f32 -1.442695, %v1435_v34 }
 0x1a3   : > { %v7978_v43 = vpop.eup %7977  ;;  %7991 = vrcp.f32 %v1687_v28  ;;  %v1657_v45 = vadd.f32 1.0, %v7976_v35  ;;  %v1318_v47 = vpop.xlane.xlu1 %1317 }
 0x1a4   : > { %v1225_v48 = vpop.xlane.xlu0 %1224  ;;  %v1656_v51 = vadd.f32 1.0, %v7978_v43  ;;  %7993 = vpow2.f32 %v7819_v36  ;;  %v1436_v52 = vadd.f32 %v8772_v61, %v1318_v47 }
 0x1a5   : > { %v1405_v53 = vadd.f32 %v8772_v61, %v1225_v48  ;;  %7995 = vrcp.f32 %v1657_v45 }
 0x1a6   : > { %v7980_v57 = vpop.eup %7979  ;;  %7997 = vrcp.f32 %v1656_v51  ;;  %v7851_v58 = vmul.f32 -1.442695, %v1436_v52 }
 0x1a7   : > { %v7820_v59 = vmul.f32 -1.442695, %v1405_v53  ;;  %v7982_v60 = vpop.eup %7981  ;;  %v1658_v62 = vadd.f32 1.0, %v7980_v57  ;;  %7999 = vpow2.f32 %v7850_v46  ;;  %v1228_v63 = vpop.xlane.xlu1 %1227 }
 0x1a8   : > { %v1321_v0 = vpop.xlane.xlu0 %1320  ;;  %v7984_v2 = vpop.eup %7983  ;;  %8001 = vpow2.f32 %v7851_v58  ;;  %v1406_v54 = vadd.f32 %v8772_v61, %v1228_v63  ;;  %v1914_v4 = vrot.slane %v7982_v60, %v8493_v39  ;;  %v1918_v6 = vrot.slane %v7982_v60, %v8499_v41 }
 0x1a9   : > { %v1437_v3 = vadd.f32 %v8772_v61, %v1321_v0  ;;  %8003 = vrcp.f32 %v1658_v62  ;;  %v1689_v5 = vadd.f32 1.0, %v7984_v2  ;;  %v1922_v7 = vrot.slane %v7982_v60, %v8786_v40 }
 0x1aa   : > { %v7986_v8 = vpop.eup %7985  ;;  %8005 = vpow2.f32 %v7820_v59  ;;  %v7821_v9 = vmul.f32 -1.442695, %v1406_v54  ;;  %v1926_v11 = vrot.slane %v7982_v60, %v8791_v55  ;;  %v1930_v16 = vrot.slane %v7982_v60, %v8794_v42 }
 0x1ab   : > { %v7852_v10 = vmul.f32 -1.442695, %v1437_v3  ;;  %v8814_v12 = vpop.eup %7987  ;;  %8007 = vrcp.f32 %v1689_v5  ;;  %v1690_v13 = vadd.f32 1.0, %v7986_v8  ;;  %v1324_v14 = vpop.xlane.xlu1 %1323  ;;  %v1934_v17 = vrot.slane %v7982_v60, %v8797_v56 }
 0x1ac   : > { %v1231_v15 = vpop.xlane.xlu0 %1230  ;;  %v7990_v18 = vpop.eup %7989  ;;  %8009 = vpow2.f32 %v7821_v9  ;;  %v1438_v19 = vadd.f32 %v8772_v61, %v1324_v14  ;;  %v1938_v21 = vrot.slane %v7982_v60, %v8800_v44  ;;  %v1942_v24 = vrot.slane %v7982_v60, %v8803_v1 }
 0x1ad   : > { %v1407_v20 = vadd.f32 %v8772_v61, %v1231_v15  ;;  %v8821_v22 = vpop.eup %7991  ;;  %8011 = vrcp.f32 %v1690_v13  ;;  %v1659_v23 = vadd.f32 1.0, %v7990_v18  ;;  %v3959_v25 = vcombine.low %v1914_v4, %v1918_v6 }
 0x1ae   : > { %v7994_v26 = vpop.eup %7993  ;;  %8013 = vpow2.f32 %v7852_v10  ;;  %v7853_v27 = vmul.f32 -1.442695, %v1438_v19  ;;  %v3960_v29 = vcombine.low %v1922_v7, %v1926_v11  ;;  %v3961_v34 = vcombine.low %v1930_v16, %v1934_v17 }
 0x1af   : > { %v7822_v28 = vmul.f32 -1.442695, %v1407_v20  ;;  %v8824_v30 = vpop.eup %7995  ;;  %8015 = vrcp.f32 %v1659_v23  ;;  %v1660_v31 = vadd.f32 1.0, %v7994_v26  ;;  %v1234_v32 = vpop.xlane.xlu1 %1233  ;;  %v3962_v35 = vcombine.low %v1938_v21, %v1942_v24 }
 0x1b0   : > { %v1327_v33 = vpop.xlane.xlu0 %1326  ;;  %v8826_v36 = vpop.eup %7997  ;;  %8017 = vpow2.f32 %v7853_v27  ;;  %v1408_v43 = vadd.f32 %v8772_v61, %v1234_v32  ;;  %v3969_v46 = vrot.slane %v3959_v25, %v8806_v49  ;;  %v3976_v48 = vrot.slane %v3960_v29, %v8806_v49 }
 0x1b1   : > { %v1439_v45 = vadd.f32 %v8772_v61, %v1327_v33  ;;  %v8000_v47 = vpop.eup %7999  ;;  %8019 = vrcp.f32 %v1660_v31  ;;  %v3983_v50 = vrot.slane %v3961_v34, %v8806_v49  ;;  %v3990_v51 = vrot.slane %v3962_v35, %v8806_v49 }
 0x1b2   : > { %v8002_v52 = vpop.eup %8001  ;;  %v1691_v53 = vadd.f32 1.0, %v8000_v47  ;;  %8021 = vpow2.f32 %v7822_v28  ;;  %v7823_v57 = vmul.f32 -1.442695, %v1408_v43  ;;  %v3991_v0 = vcombine.low %v3969_v46, %v3976_v48 }
 0x1b3   : > { %v8834_v58 = vpop.eup %8003  ;;  %v1692_v59 = vadd.f32 1.0, %v8002_v52  ;;  %v7854_v60 = vmul.f32 -1.442695, %v1439_v45  ;;  %v1330_v62 = vpop.xlane.xlu1 %1329  ;;  %v3992_v2 = vcombine.low %v3983_v50, %v3990_v51  ;;  %v2970_v5 = vrot.slane %v8814_v12, %v8493_v39 }
 0x1b4   : > { %v1237_v63 = vpop.xlane.xlu0 %1236  ;;  %v8006_v54 = vpop.eup %8005  ;;  %8023 = vrcp.f32 %v1691_v53  ;;  %v1440_v3 = vadd.f32 %v8772_v61, %v1330_v62  ;;  %v3999_v8 = vrot.slane %v3991_v0, %v8806_v49  ;;  %v2974_v14 = vrot.slane %v8814_v12, %v8499_v41 }
 0x1b5   : > { %v1409_v4 = vadd.f32 %v8772_v61, %v1237_v63  ;;  %v8840_v6 = vpop.eup %8007  ;;  %8025 = vrcp.f32 %v1692_v59  ;;  %v1661_v7 = vadd.f32 1.0, %v8006_v54  ;;  %v4006_v9 = vrot.slane %v3992_v2, %v8806_v49 }
 0x1b6   : > { %v8010_v10 = vpop.eup %8009  ;;  %8027 = vpow2.f32 %v7823_v57  ;;  %v7855_v11 = vmul.f32 -1.442695, %v1440_v3  ;;  %v2978_v20 = vrot.slane %v8814_v12, %v8786_v40  ;;  %v2982_v21 = vrot.slane %v8814_v12, %v8791_v55 }
 0x1b7   : > { %v7824_v13 = vmul.f32 -1.442695, %v1409_v4  ;;  %v8846_v15 = vpop.eup %8011  ;;  %v1662_v16 = vadd.f32 1.0, %v8010_v10  ;;  %v4007_v17 = vcombine.low %v3999_v8, %v4006_v9  ;;  %v1240_v18 = vpop.xlane.xlu1 %1239  ;;  %8029 = vpow2.f32 %v7854_v60 }
 0x1b8   : > { %v1333_v19 = vpop.xlane.xlu0 %1332  ;;  %v8014_v23 = vpop.eup %8013  ;;  %v1410_v24 = vadd.f32 %v8772_v61, %v1240_v18  ;;  %v2986_v26 = vrot.slane %v8814_v12, %v8794_v42  ;;  %8031 = vrcp.f32 %v1661_v7  ;;  %v2990_v29 = vrot.slane %v8814_v12, %v8797_v56 }
 0x1b9   : > { %v1441_v25 = vadd.f32 %v8772_v61, %v1333_v19  ;;  %v8856_v27 = vpop.eup %8015  ;;  %v1693_v28 = vadd.f32 1.0, %v8014_v23  ;;  %7096 = vperm.xlu0 %7929, %v4007_v17   ;;  %v2994_v31 = vrot.slane %v8814_v12, %v8800_v44  ;;  %8033 = vpow2.f32 %v7855_v11 }
 0x1ba   : > { %v8018_v32 = vpop.eup %8017  ;;  %v7825_v33 = vmul.f32 -1.442695, %v1410_v24  ;;  %v2998_v34 = vrot.slane %v8814_v12, %v8803_v1  ;;  %8035 = vrcp.f32 %v1662_v16  ;;  %v5576_v45 = vcombine.low %v2970_v5, %v2974_v14 }
 0x1bb   : > { %v8864_v35 = vpop.eup %8019  ;;  %v1694_v43 = vadd.f32 1.0, %v8018_v32  ;;  %v5577_v46 = vcombine.low %v2978_v20, %v2982_v21  ;;  %8037 = vrcp.f32 %v1693_v28  ;;  %v7856_v48 = vmul.f32 -1.442695, %v1441_v25  ;;  %v1336_v9 = vpop.xlane.xlu1 %1335 }
 0x1bc   : > { %v8022_v47 = vpop.eup %8021  ;;  %v5578_v50 = vcombine.low %v2986_v26, %v2990_v29  ;;  %v5579_v51 = vcombine.low %v2994_v31, %v2998_v34  ;;  %8039 = vpow2.f32 %v7824_v13  ;;  %v5586_v52 = vrot.slane %v5576_v45, %v8806_v49  ;;  %v1243_v26 = vpop.xlane.xlu0 %1242 }
 0x1bd   : > { %v5593_v53 = vrot.slane %v5577_v46, %v8806_v49  ;;  %v2938_v57 = vrot.slane %v8821_v22, %v8493_v39  ;;  %8041 = vpow2.f32 %v7825_v33  ;;  %v2942_v62 = vrot.slane %v8821_v22, %v8499_v41 }
 0x1be   : > { %v8870_v12 = vpop.eup %8023  ;;  %v5600_v59 = vrot.slane %v5578_v50, %v8806_v49  ;;  %v5607_v60 = vrot.slane %v5579_v51, %v8806_v49  ;;  %8043 = vrcp.f32 %v1694_v43  ;;  %v2946_v2 = vrot.slane %v8821_v22, %v8786_v40 }
 0x1bf   : > { %v8876_v63 = vpop.eup %8025  ;;  %v5608_v0 = vcombine.low %v5586_v52, %v5593_v53  ;;  %v2950_v54 = vrot.slane %v8821_v22, %v8791_v55  ;;  %v1663_v4 = vadd.f32 1.0, %v8022_v47  ;;  %v2954_v7 = vrot.slane %v8821_v22, %v8794_v42 }
 0x1c0   : > { %v8028_v3 = vpop.eup %8027  ;;  %v5609_v5 = vcombine.low %v5600_v59, %v5607_v60  ;;  %v2958_v8 = vrot.slane %v8821_v22, %v8797_v56  ;;  %v2962_v13 = vrot.slane %v8821_v22, %v8800_v44  ;;  %v2966_v14 = vrot.slane %v8821_v22, %v8803_v1 }
 0x1c1   : > { %v1664_v10 = vadd.f32 1.0, %v8028_v3  ;;  %v5616_v11 = vrot.slane %v5608_v0, %v8806_v49  ;;  %v8030_v16 = vpop.eup %8029  ;;  %v5527_v18 = vcombine.low %v2938_v57, %v2942_v62  ;;  %v5528_v19 = vcombine.low %v2946_v2, %v2950_v54 }
 0x1c2   : > { %v5623_v17 = vrot.slane %v5609_v5, %v8806_v49  ;;  %v5529_v20 = vcombine.low %v2954_v7, %v2958_v8  ;;  %v8892_v21 = vpop.eup %8031  ;;  %v1695_v23 = vadd.f32 1.0, %v8030_v16  ;;  %8045 = vpow2.f32 %v7856_v48 }
 0x1c3   : > { %v5530_v24 = vcombine.low %v2962_v13, %v2966_v14  ;;  %v1442_v25 = vadd.f32 %v8772_v61, %v1336_v9  ;;  %v8034_v28 = vpop.eup %8033  ;;  %v5537_v31 = vrot.slane %v5527_v18, %v8806_v49  ;;  %v5544_v22 = vrot.slane %v5528_v19, %v8806_v49 }
 0x1c4   : > { %v5624_v29 = vcombine.low %v5616_v11, %v5623_v17  ;;  %v5551_v32 = vrot.slane %v5529_v20, %v8806_v49  ;;  %v8898_v33 = vpop.eup %8035  ;;  %8047 = vrcp.f32 %v1663_v4  ;;  %v1696_v34 = vadd.f32 1.0, %v8034_v28  ;;  %v1246_v4 = vpop.xlane.xlu1 %1245 }
 0x1c5   : > { %v5558_v43 = vrot.slane %v5530_v24, %v8806_v49  ;;  %v8901_v45 = vpop.eup %8037  ;;  %8049 = vrcp.f32 %v1664_v10  ;;  %v5559_v46 = vcombine.low %v5537_v31, %v5544_v22  ;;  %v1411_v47 = vadd.f32 %v8772_v61, %v1243_v26  ;;  %v1339_v10 = vpop.xlane.xlu0 %1338 }
 0x1c6   : > { %7195 = vperm.xlu0 %7929, %v5624_v29   ;;  %v8040_v48 = vpop.eup %8039  ;;  %v7857_v51 = vmul.f32 -1.442695, %v1442_v25  ;;  %v1946_v52 = vrot.slane %v8826_v36, %v8493_v39  ;;  %v1950_v53 = vrot.slane %v8826_v36, %v8499_v41  ;;  %8051 = vrcp.f32 %v1695_v23 }
 0x1c7   : > { %v5560_v50 = vcombine.low %v5551_v32, %v5558_v43  ;;  %v8042_v57 = vpop.eup %8041  ;;  %v5567_v59 = vrot.slane %v5559_v46, %v8806_v49  ;;  %v1954_v60 = vrot.slane %v8826_v36, %v8786_v40  ;;  %v1958_v62 = vrot.slane %v8826_v36, %v8791_v55 }
 0x1c8   : > { %v8913_v0 = vpop.eup %8043  ;;  %8053 = vrcp.f32 %v1696_v34  ;;  %v7826_v54 = vmul.f32 -1.442695, %v1411_v47  ;;  %v1962_v3 = vrot.slane %v8826_v36, %v8794_v42  ;;  %v1665_v5 = vadd.f32 1.0, %v8040_v48 }
 0x1c9   : > { %v5574_v2 = vrot.slane %v5560_v50, %v8806_v49  ;;  %v1966_v7 = vrot.slane %v8826_v36, %v8797_v56  ;;  %v1970_v8 = vrot.slane %v8826_v36, %v8800_v44  ;;  %v1974_v9 = vrot.slane %v8826_v36, %v8803_v1 }
 0x1ca   : > { %v1666_v11 = vadd.f32 1.0, %v8042_v57  ;;  %8055 = vpow2.f32 %v7857_v51  ;;  %v4008_v14 = vcombine.low %v1946_v52, %v1950_v53  ;;  %v4009_v16 = vcombine.low %v1954_v60, %v1958_v62  ;;  %v1342_v52 = vpop.xlane.xlu1 %1341  ;;  %v1249_v60 = vpop.xlane.xlu0 %1248 }
 0x1cb   : > { %v5575_v13 = vcombine.low %v5567_v59, %v5574_v2  ;;  %v4010_v17 = vcombine.low %v1962_v3, %v1966_v7  ;;  %v4011_v18 = vcombine.low %v1970_v8, %v1974_v9  ;;  %v1412_v19 = vadd.f32 %v8772_v61, %v1246_v4 }
 0x1cc   : > { %v8046_v20 = vpop.eup %8045  ;;  %8057 = vpow2.f32 %v7826_v54  ;;  %v4018_v23 = vrot.slane %v4008_v14, %v8806_v49  ;;  %v1443_v24 = vadd.f32 %v8772_v61, %v1339_v10  ;;  %v1978_v36 = vrot.slane %v8824_v30, %v8493_v39 }
 0x1cd   : > { %7192 = vperm.xlu1 %7930, %v5575_v13   ;;  %v4025_v25 = vrot.slane %v4009_v16, %v8806_v49  ;;  %v4032_v26 = vrot.slane %v4010_v17, %v8806_v49  ;;  %v4039_v28 = vrot.slane %v4011_v18, %v8806_v49  ;;  %v7827_v29 = vmul.f32 -1.442695, %v1412_v19 }
 0x1ce   : > { %v8932_v31 = vpop.eup %8047  ;;  %v7858_v22 = vmul.f32 -1.442695, %v1443_v24  ;;  %v1982_v32 = vrot.slane %v8824_v30, %v8499_v41  ;;  %v1986_v34 = vrot.slane %v8824_v30, %v8786_v40  ;;  %v1990_v43 = vrot.slane %v8824_v30, %v8791_v55 }
 0x1cf   : > { %v8940_v46 = vpop.eup %8049  ;;  %v1697_v47 = vadd.f32 1.0, %v8046_v20  ;;  %v4040_v48 = vcombine.low %v4018_v23, %v4025_v25  ;;  %v4041_v50 = vcombine.low %v4032_v26, %v4039_v28  ;;  %v1994_v51 = vrot.slane %v8824_v30, %v8794_v42 }
 0x1d0   : > { %8059 = vpow2.f32 %v7827_v29  ;;  %v1998_v53 = vrot.slane %v8824_v30, %v8797_v56  ;;  %v2002_v57 = vrot.slane %v8824_v30, %v8800_v44  ;;  %v2006_v59 = vrot.slane %v8824_v30, %v8803_v1  ;;  %v8950_v62 = vpop.eup %8051 }
 0x1d1   : > { %v4048_v2 = vrot.slane %v4040_v48, %v8806_v49  ;;  %v4055_v54 = vrot.slane %v4041_v50, %v8806_v49  ;;  %v4057_v3 = vcombine.low %v1978_v36, %v1982_v32  ;;  %v4058_v4 = vcombine.low %v1986_v34, %v1990_v43 }
 0x1d2   : > { %v8954_v7 = vpop.eup %8053  ;;  %8061 = vpow2.f32 %v7858_v22  ;;  %v4059_v8 = vcombine.low %v1994_v51, %v1998_v53  ;;  %v4060_v9 = vcombine.low %v2002_v57, %v2006_v59  ;;  %v1444_v10 = vadd.f32 %v8772_v61, %v1342_v52 }
 0x1d3   : > { %v4056_v13 = vcombine.low %v4048_v2, %v4055_v54  ;;  %v4067_v14 = vrot.slane %v4057_v3, %v8806_v49  ;;  %v4074_v30 = vrot.slane %v4058_v4, %v8806_v49  ;;  %v1413_v16 = vadd.f32 %v8772_v61, %v1249_v60 }
 0x1d4   : > { %v8056_v17 = vpop.eup %8055  ;;  %8063 = vrcp.f32 %v1665_v5  ;;  %v4081_v18 = vrot.slane %v4059_v8, %v8806_v49  ;;  %v4088_v19 = vrot.slane %v4060_v9, %v8806_v49  ;;  %v7859_v23 = vmul.f32 -1.442695, %v1444_v10 }
 0x1d5   : > { %8065 = vrcp.f32 %v1666_v11  ;;  %7099 = vperm.xlu1 %7930, %v4056_v13   ;;  %v4089_v20 = vcombine.low %v4067_v14, %v4074_v30  ;;  %v3034_v24 = vrot.slane %v8846_v15, %v8493_v39  ;;  %v3038_v26 = vrot.slane %v8846_v15, %v8499_v41  ;;  %v1252_v13 = vpop.xlane.xlu1 %1251 }
 0x1d6   : > { %v8058_v36 = vpop.eup %8057  ;;  %8067 = vrcp.f32 %v1697_v47  ;;  %v4090_v25 = vcombine.low %v4081_v18, %v4088_v19  ;;  %v3042_v5 = vrot.slane %v8846_v15, %v8786_v40  ;;  %v7828_v29 = vmul.f32 -1.442695, %v1413_v16 }
 0x1d7   : > { %v4097_v28 = vrot.slane %v4089_v20, %v8806_v49  ;;  %v3046_v11 = vrot.slane %v8846_v15, %v8791_v55  ;;  %v3050_v22 = vrot.slane %v8846_v15, %v8794_v42  ;;  %v1698_v32 = vadd.f32 1.0, %v8056_v17 }
 0x1d8   : > { %v4104_v34 = vrot.slane %v4090_v25, %v8806_v49  ;;  %v3054_v43 = vrot.slane %v8846_v15, %v8797_v56  ;;  %v3058_v47 = vrot.slane %v8846_v15, %v8800_v44  ;;  %8069 = vpow2.f32 %v7859_v23 }
 0x1d9   : > { %v3062_v48 = vrot.slane %v8846_v15, %v8803_v1  ;;  %v5674_v50 = vcombine.low %v3034_v24, %v3038_v26  ;;  %v5675_v51 = vcombine.low %v3042_v5, %v3046_v11  ;;  %v3002_v59 = vrot.slane %v8840_v6, %v8493_v39 }
 0x1da   : > { %v8060_v52 = vpop.eup %8059  ;;  %v4105_v53 = vcombine.low %v4097_v28, %v4104_v34  ;;  %v5676_v57 = vcombine.low %v3050_v22, %v3054_v43  ;;  %v3006_v60 = vrot.slane %v8840_v6, %v8499_v41  ;;  %8071 = vpow2.f32 %v7828_v29 }
 0x1db   : > { %v5677_v2 = vcombine.low %v3058_v47, %v3062_v48  ;;  %v5684_v54 = vrot.slane %v5674_v50, %v8806_v49  ;;  %v5691_v3 = vrot.slane %v5675_v51, %v8806_v49  ;;  %v1667_v8 = vadd.f32 1.0, %v8058_v36  ;;  %v1345_v36 = vpop.xlane.xlu0 %1344 }
 0x1dc   : > { %v8062_v4 = vpop.eup %8061  ;;  %7102 = vperm.xlu1 %7930, %v4105_v53   ;;  %v5698_v15 = vrot.slane %v5676_v57, %v8806_v49  ;;  %v3010_v9 = vrot.slane %v8840_v6, %v8786_v40  ;;  %v3014_v10 = vrot.slane %v8840_v6, %v8791_v55  ;;  %v1668_v14 = vadd.f32 1.0, %v8060_v52 }
 0x1dd   : > { %v5705_v30 = vrot.slane %v5677_v2, %v8806_v49  ;;  %v5706_v16 = vcombine.low %v5684_v54, %v5691_v3  ;;  %v3018_v17 = vrot.slane %v8840_v6, %v8794_v42  ;;  %v3022_v19 = vrot.slane %v8840_v6, %v8797_v56 }
 0x1de   : > { %v8994_v18 = vpop.eup %8063  ;;  %v3026_v20 = vrot.slane %v8840_v6, %v8800_v44  ;;  %v3030_v23 = vrot.slane %v8840_v6, %v8803_v1  ;;  %v5625_v24 = vcombine.low %v3002_v59, %v3006_v60  ;;  %v5626_v28 = vcombine.low %v3010_v9, %v3014_v10 }
 0x1df   : > { %v9002_v25 = vpop.eup %8065  ;;  %v5707_v26 = vcombine.low %v5698_v15, %v5705_v30  ;;  %v5714_v5 = vrot.slane %v5706_v16, %v8806_v49  ;;  %v1414_v29 = vadd.f32 %v8772_v61, %v1252_v13  ;;  %v1699_v22 = vadd.f32 1.0, %v8062_v4  ;;  %v1255_v13 = vpop.xlane.xlu0 %1254 }
 0x1e0   : > { %v9006_v11 = vpop.eup %8067  ;;  %v5627_v34 = vcombine.low %v3018_v17, %v3022_v19  ;;  %v5628_v43 = vcombine.low %v3026_v20, %v3030_v23  ;;  %v5635_v47 = vrot.slane %v5625_v24, %v8806_v49  ;;  %8073 = vrcp.f32 %v1698_v32 }
 0x1e1   : > { %v5721_v6 = vrot.slane %v5707_v26, %v8806_v49  ;;  %v5642_v48 = vrot.slane %v5626_v28, %v8806_v49  ;;  %v1445_v50 = vadd.f32 %v8772_v61, %v1345_v36  ;;  %8075 = vrcp.f32 %v1667_v8 }
 0x1e2   : > { %v5649_v51 = vrot.slane %v5627_v34, %v8806_v49  ;;  %v5656_v52 = vrot.slane %v5628_v43, %v8806_v49  ;;  %v7829_v53 = vmul.f32 -1.442695, %v1414_v29  ;;  %v8070_v57 = vpop.eup %8069  ;;  %8077 = vrcp.f32 %v1668_v14 }
 0x1e3   : > { %v5722_v59 = vcombine.low %v5714_v5, %v5721_v6  ;;  %v5657_v60 = vcombine.low %v5635_v47, %v5642_v48  ;;  %v2010_v2 = vrot.slane %v8834_v58, %v8493_v39  ;;  %8079 = vrcp.f32 %v1699_v22  ;;  %v1348_v5 = vpop.xlane.xlu1 %1347 }
 0x1e4   : > { %v5658_v32 = vcombine.low %v5649_v51, %v5656_v52  ;;  %v2014_v54 = vrot.slane %v8834_v58, %v8499_v41  ;;  %v2018_v3 = vrot.slane %v8834_v58, %v8786_v40  ;;  %v8072_v4 = vpop.eup %8071  ;;  %v7860_v15 = vmul.f32 -1.442695, %v1445_v50 }
 0x1e5   : > { %7201 = vperm.xlu0 %7929, %v5722_v59   ;;  %v5665_v8 = vrot.slane %v5657_v60, %v8806_v49  ;;  %v2022_v9 = vrot.slane %v8834_v58, %v8791_v55  ;;  %v2026_v10 = vrot.slane %v8834_v58, %v8794_v42  ;;  %8081 = vpow2.f32 %v7829_v53 }
 0x1e6   : > { %v5672_v14 = vrot.slane %v5658_v32, %v8806_v49  ;;  %v2030_v30 = vrot.slane %v8834_v58, %v8797_v56  ;;  %v2034_v16 = vrot.slane %v8834_v58, %v8800_v44  ;;  %v1700_v17 = vadd.f32 1.0, %v8070_v57 }
 0x1e7   : > { %v2038_v19 = vrot.slane %v8834_v58, %v8803_v1  ;;  %v4106_v20 = vcombine.low %v2010_v2, %v2014_v54  ;;  %v4107_v23 = vcombine.low %v2018_v3, %v2022_v9  ;;  %v9032_v24 = vadd.f32 1.0, %v8072_v4 }
 0x1e8   : > { %v5673_v36 = vcombine.low %v5665_v8, %v5672_v14  ;;  %v4108_v26 = vcombine.low %v2026_v10, %v2030_v30  ;;  %v1415_v28 = vadd.f32 %v8772_v61, %v1255_v13  ;;  %v3098_v43 = vrot.slane %v8876_v63, %v8493_v39 }
 0x1e9   : > { %v4109_v29 = vcombine.low %v2034_v16, %v2038_v19  ;;  %v4116_v22 = vrot.slane %v4106_v20, %v8806_v49  ;;  %v4123_v34 = vrot.slane %v4107_v23, %v8806_v49  ;;  %8083 = vpow2.f32 %v7860_v15 }
 0x1ea   : > { %7198 = vperm.xlu1 %7930, %v5673_v36   ;;  %v4130_v58 = vrot.slane %v4108_v26, %v8806_v49  ;;  %v3102_v47 = vrot.slane %v8876_v63, %v8499_v41  ;;  %v3106_v6 = vrot.slane %v8876_v63, %v8786_v40  ;;  %v9044_v48 = vpop.eup %8073  ;;  %v1446_v52 = vadd.f32 %v8772_v61, %v1348_v5 }
 0x1eb   : > { %v4137_v50 = vrot.slane %v4109_v29, %v8806_v49  ;;  %v4138_v51 = vcombine.low %v4116_v22, %v4123_v34  ;;  %v3110_v53 = vrot.slane %v8876_v63, %v8791_v55  ;;  %v9050_v57 = vpop.eup %8075  ;;  %v7830_v59 = vmul.f32 -1.442695, %v1415_v28  ;;  %v1258_v22 = vpop.xlane.xlu1 %1257 }
 0x1ec   : > { %v3114_v60 = vrot.slane %v8876_v63, %v8794_v42  ;;  %v3118_v2 = vrot.slane %v8876_v63, %v8797_v56  ;;  %v3122_v32 = vrot.slane %v8876_v63, %v8800_v44  ;;  %v9058_v54 = vpop.eup %8077  ;;  %v3126_v8 = vrot.slane %v8876_v63, %v8803_v1 }
 0x1ed   : > { %v4139_v3 = vcombine.low %v4130_v58, %v4137_v50  ;;  %v4146_v4 = vrot.slane %v4138_v51, %v8806_v49  ;;  %v5772_v15 = vcombine.low %v3098_v43, %v3102_v47  ;;  %v9063_v9 = vpop.eup %8079  ;;  %8085 = vrcp.f32 %v1700_v17 }
 0x1ee   : > { %v5773_v10 = vcombine.low %v3106_v6, %v3110_v53  ;;  %v5774_v13 = vcombine.low %v3114_v60, %v3118_v2  ;;  %v2042_v14 = vrot.slane %v8856_v27, %v8493_v39  ;;  %v5775_v16 = vcombine.low %v3122_v32, %v3126_v8  ;;  %v1351_v6 = vpop.xlane.xlu0 %1350 }
 0x1ef   : > { %v4153_v30 = vrot.slane %v4139_v3, %v8806_v49  ;;  %v5782_v19 = vrot.slane %v5772_v15, %v8806_v49  ;;  %v2046_v20 = vrot.slane %v8856_v27, %v8499_v41  ;;  %v8082_v23 = vpop.eup %8081  ;;  %v7861_v36 = vmul.f32 -1.442695, %v1446_v52 }
 0x1f0   : > { %v5789_v63 = vrot.slane %v5773_v10, %v8806_v49  ;;  %v5796_v26 = vrot.slane %v5774_v13, %v8806_v49  ;;  %v2050_v17 = vrot.slane %v8856_v27, %v8786_v40  ;;  %8087 = vpow2.f32 %v7830_v59 }
 0x1f1   : > { %v4154_v5 = vcombine.low %v4146_v4, %v4153_v30  ;;  %v5803_v28 = vrot.slane %v5775_v16, %v8806_v49  ;;  %v2054_v29 = vrot.slane %v8856_v27, %v8791_v55  ;;  %v2058_v43 = vrot.slane %v8856_v27, %v8794_v42 }
 0x1f2   : > { %v5804_v34 = vcombine.low %v5782_v19, %v5789_v63  ;;  %v2062_v58 = vrot.slane %v8856_v27, %v8797_v56  ;;  %v2066_v47 = vrot.slane %v8856_v27, %v8800_v44  ;;  %v1670_v50 = vadd.f32 1.0, %v8082_v23 }
 0x1f3   : > { %7105 = vperm.xlu1 %7930, %v4154_v5   ;;  %v5805_v51 = vcombine.low %v5796_v26, %v5803_v28  ;;  %v2070_v52 = vrot.slane %v8856_v27, %v8803_v1  ;;  %v4155_v53 = vcombine.low %v2042_v14, %v2046_v20  ;;  %v8084_v59 = vpop.eup %8083  ;;  %v4156_v2 = vcombine.low %v2050_v17, %v2054_v29  ;;  %v1354_v28 = vpop.xlane.xlu1 %1353 }
 0x1f4   : > { %v5812_v60 = vrot.slane %v5804_v34, %v8806_v49  ;;  %v4157_v32 = vcombine.low %v2058_v43, %v2062_v58  ;;  %v1416_v3 = vadd.f32 %v8772_v61, %v1258_v22  ;;  %v1447_v10 = vadd.f32 %v8772_v61, %v1351_v6 }
 0x1f5   : > { %v5819_v4 = vrot.slane %v5805_v51, %v8806_v49  ;;  %v4158_v8 = vcombine.low %v2066_v47, %v2070_v52  ;;  %v4165_v15 = vrot.slane %v4155_v53, %v8806_v49  ;;  %8089 = vrcp.f32 %v9032_v24 }
 0x1f6   : > { %v4172_v13 = vrot.slane %v4156_v2, %v8806_v49  ;;  %v4179_v27 = vrot.slane %v4157_v32, %v8806_v49  ;;  %v7831_v14 = vmul.f32 -1.442695, %v1416_v3  ;;  %8091 = vpow2.f32 %v7861_v36  ;;  %v1261_v2 = vpop.xlane.xlu0 %1260 }
 0x1f7   : > { %v5820_v30 = vcombine.low %v5812_v60, %v5819_v4  ;;  %v4186_v16 = vrot.slane %v4158_v8, %v8806_v49  ;;  %v7862_v19 = vmul.f32 -1.442695, %v1447_v10  ;;  %v9095_v20 = vpop.eup %8085  ;;  %8093 = vrcp.f32 %v1670_v50 }
 0x1f8   : > { %v4187_v23 = vcombine.low %v4165_v15, %v4172_v13  ;;  %v3066_v63 = vrot.slane %v8870_v12, %v8493_v39  ;;  %v3070_v24 = vrot.slane %v8870_v12, %v8499_v41  ;;  %v1701_v26 = vadd.f32 1.0, %v8084_v59 }
 0x1f9   : > { %7207 = vperm.xlu0 %7929, %v5820_v30   ;;  %v4188_v17 = vcombine.low %v4179_v27, %v4186_v16  ;;  %v3074_v36 = vrot.slane %v8870_v12, %v8786_v40  ;;  %v3078_v5 = vrot.slane %v8870_v12, %v8791_v55  ;;  %8095 = vpow2.f32 %v7831_v14 }
 0x1fa   : > { %v4195_v29 = vrot.slane %v4187_v23, %v8806_v49  ;;  %v3082_v22 = vrot.slane %v8870_v12, %v8794_v42  ;;  %v3086_v34 = vrot.slane %v8870_v12, %v8797_v56  ;;  %v8088_v43 = vpop.eup %8087  ;;  %8097 = vpow2.f32 %v7862_v19 }
 0x1fb   : > { %v4202_v58 = vrot.slane %v4188_v17, %v8806_v49  ;;  %v3090_v47 = vrot.slane %v8870_v12, %v8800_v44  ;;  %v3094_v6 = vrot.slane %v8870_v12, %v8803_v1  ;;  %v5723_v50 = vcombine.low %v3066_v63, %v3070_v24 }
 0x1fc   : > { %v5724_v51 = vcombine.low %v3074_v36, %v3078_v5  ;;  %v5725_v52 = vcombine.low %v3082_v22, %v3086_v34  ;;  %v1448_v53 = vadd.f32 %v8772_v61, %v1354_v28  ;;  %8099 = vrcp.f32 %v1701_v26 }
 0x1fd   : > { %v4203_v59 = vcombine.low %v4195_v29, %v4202_v58  ;;  %v5726_v60 = vcombine.low %v3090_v47, %v3094_v6  ;;  %v3162_v32 = vrot.slane %v8913_v0, %v8493_v39  ;;  %v5733_v3 = vrot.slane %v5723_v50, %v8806_v49 }
 0x1fe   : > { %v5740_v4 = vrot.slane %v5724_v51, %v8806_v49  ;;  %v5747_v8 = vrot.slane %v5725_v52, %v8806_v49  ;;  %v7863_v15 = vmul.f32 -1.442695, %v1448_v53  ;;  %v1671_v12 = vadd.f32 1.0, %v8088_v43 }
 0x1ff   : > { %7108 = vperm.xlu1 %7930, %v4203_v59   ;;  %v5754_v10 = vrot.slane %v5726_v60, %v8806_v49  ;;  %v3166_v13 = vrot.slane %v8913_v0, %v8499_v41  ;;  %v3170_v27 = vrot.slane %v8913_v0, %v8786_v40  ;;  %v9126_v14 = vpop.eup %8089  ;;  %v1417_v16 = vadd.f32 %v8772_v61, %v1261_v2 }
 0x200   : > { %v5755_v30 = vcombine.low %v5733_v3, %v5740_v4  ;;  %v3174_v19 = vrot.slane %v8913_v0, %v8791_v55  ;;  %v3178_v23 = vrot.slane %v8913_v0, %v8794_v42  ;;  %v9133_v63 = vpop.eup %8091  ;;  %8101 = vpow2.f32 %v7863_v15  ;;  %v1264_v15 = vpop.xlane.xlu1 %1263 }
 0x201   : > { %v5756_v24 = vcombine.low %v5747_v8, %v5754_v10  ;;  %v3182_v26 = vrot.slane %v8913_v0, %v8797_v56  ;;  %v3186_v17 = vrot.slane %v8913_v0, %v8800_v44  ;;  %v9139_v36 = vpop.eup %8093  ;;  %v3190_v28 = vrot.slane %v8913_v0, %v8803_v1 }
 0x202   : > { %v5763_v5 = vrot.slane %v5755_v30, %v8806_v49  ;;  %v5870_v29 = vcombine.low %v3162_v32, %v3166_v13  ;;  %v5871_v22 = vcombine.low %v3170_v27, %v3174_v19  ;;  %8103 = vrcp.f32 %v1671_v12 }
 0x203   : > { %v5770_v34 = vrot.slane %v5756_v24, %v8806_v49  ;;  %v5872_v43 = vcombine.low %v3178_v23, %v3182_v26  ;;  %v2074_v58 = vrot.slane %v8864_v35, %v8493_v39  ;;  %v8096_v47 = vpop.eup %8095  ;;  %v5873_v6 = vcombine.low %v3186_v17, %v3190_v28 }
 0x204   : > { %v5880_v50 = vrot.slane %v5870_v29, %v8806_v49  ;;  %v5887_v51 = vrot.slane %v5871_v22, %v8806_v49  ;;  %v2078_v52 = vrot.slane %v8864_v35, %v8499_v41  ;;  %v8098_v53 = vpop.eup %8097  ;;  %v2082_v60 = vrot.slane %v8864_v35, %v8786_v40 }
 0x205   : > { %v5771_v0 = vcombine.low %v5763_v5, %v5770_v34  ;;  %v5894_v59 = vrot.slane %v5872_v43, %v8806_v49  ;;  %v2086_v2 = vrot.slane %v8864_v35, %v8791_v55  ;;  %v7832_v32 = vmul.f32 -1.442695, %v1417_v16  ;;  %v1357_v16 = vpop.xlane.xlu0 %1356 }
 0x206   : > { %v5901_v3 = vrot.slane %v5873_v6, %v8806_v49  ;;  %v5902_v4 = vcombine.low %v5880_v50, %v5887_v51  ;;  %v2090_v8 = vrot.slane %v8864_v35, %v8794_v42  ;;  %v9159_v12 = vpop.eup %8099  ;;  %v1672_v10 = vadd.f32 1.0, %v8096_v47 }
 0x207   : > { %7204 = vperm.xlu1 %7930, %v5771_v0   ;;  %v2094_v13 = vrot.slane %v8864_v35, %v8797_v56  ;;  %v2098_v27 = vrot.slane %v8864_v35, %v8800_v44  ;;  %v2102_v30 = vrot.slane %v8864_v35, %v8803_v1  ;;  %v1703_v19 = vadd.f32 1.0, %v8098_v53 }
 0x208   : > { %v5903_v23 = vcombine.low %v5894_v59, %v5901_v3  ;;  %v5910_v24 = vrot.slane %v5902_v4, %v8806_v49  ;;  %v4204_v26 = vcombine.low %v2074_v58, %v2078_v52  ;;  %v4205_v17 = vcombine.low %v2082_v60, %v2086_v2 }
 0x209   : > { %v4206_v5 = vcombine.low %v2090_v8, %v2094_v13  ;;  %v4207_v28 = vcombine.low %v2098_v27, %v2102_v30  ;;  %v1418_v29 = vadd.f32 %v8772_v61, %v1264_v15  ;;  %8105 = vpow2.f32 %v7832_v32 }
 0x20a   : > { %v5917_v22 = vrot.slane %v5903_v23, %v8806_v49  ;;  %v4214_v34 = vrot.slane %v4204_v26, %v8806_v49  ;;  %v1449_v43 = vadd.f32 %v8772_v61, %v1357_v16  ;;  %v8102_v47 = vpop.eup %8101  ;;  %8107 = vrcp.f32 %v1672_v10 }
 0x20b   : > { %v4221_v35 = vrot.slane %v4205_v17, %v8806_v49  ;;  %v4228_v6 = vrot.slane %v4206_v5, %v8806_v49  ;;  %v4235_v58 = vrot.slane %v4207_v28, %v8806_v49  ;;  %v7833_v51 = vmul.f32 -1.442695, %v1418_v29 }
 0x20c   : > { %v5918_v50 = vcombine.low %v5910_v24, %v5917_v22  ;;  %v7864_v52 = vmul.f32 -1.442695, %v1449_v43  ;;  %v2202_v53 = vrot.slane %v8940_v46, %v8493_v39  ;;  %v9177_v0 = vpop.eup %8103  ;;  %8109 = vrcp.f32 %v1703_v19  ;;  %v1360_v22 = vpop.xlane.xlu1 %1359 }
 0x20d   : > { %v4236_v59 = vcombine.low %v4214_v34, %v4221_v35  ;;  %v4237_v60 = vcombine.low %v4228_v6, %v4235_v58  ;;  %v2206_v2 = vrot.slane %v8940_v46, %v8499_v41  ;;  %v1704_v32 = vadd.f32 1.0, %v8102_v47  ;;  %v1267_v35 = vpop.xlane.xlu0 %1266 }
 0x20e   : > { %7213 = vperm.xlu0 %7929, %v5918_v50   ;;  %v2210_v3 = vrot.slane %v8940_v46, %v8786_v40  ;;  %v2214_v4 = vrot.slane %v8940_v46, %v8791_v55  ;;  %v2218_v8 = vrot.slane %v8940_v46, %v8794_v42  ;;  %8111 = vpow2.f32 %v7833_v51 }
 0x20f   : > { %v4244_v15 = vrot.slane %v4236_v59, %v8806_v49  ;;  %v4251_v10 = vrot.slane %v4237_v60, %v8806_v49  ;;  %v2222_v13 = vrot.slane %v8940_v46, %v8797_v56  ;;  %8113 = vpow2.f32 %v7864_v52 }
 0x210   : > { %v2226_v27 = vrot.slane %v8940_v46, %v8800_v44  ;;  %v2230_v30 = vrot.slane %v8940_v46, %v8803_v1  ;;  %v4400_v16 = vcombine.low %v2202_v53, %v2206_v2  ;;  %v4401_v23 = vcombine.low %v2210_v3, %v2214_v4 }
 0x211   : > { %v4252_v19 = vcombine.low %v4244_v15, %v4251_v10  ;;  %v4402_v24 = vcombine.low %v2218_v8, %v2222_v13  ;;  %v2106_v26 = vrot.slane %v8892_v21, %v8493_v39  ;;  %v2110_v28 = vrot.slane %v8892_v21, %v8499_v41 }
 0x212   : > { %v4403_v17 = vcombine.low %v2226_v27, %v2230_v30  ;;  %v4410_v5 = vrot.slane %v4400_v16, %v8806_v49  ;;  %v2114_v29 = vrot.slane %v8892_v21, %v8786_v40  ;;  %v4417_v46 = vrot.slane %v4401_v23, %v8806_v49 }
 0x213   : > { %7111 = vperm.xlu1 %7930, %v4252_v19   ;;  %v4424_v34 = vrot.slane %v4402_v24, %v8806_v49  ;;  %v2118_v43 = vrot.slane %v8892_v21, %v8791_v55  ;;  %v2122_v47 = vrot.slane %v8892_v21, %v8794_v42  ;;  %v8106_v6 = vpop.eup %8105  ;;  %v2126_v50 = vrot.slane %v8892_v21, %v8797_v56 }
 0x214   : > { %v4431_v58 = vrot.slane %v4403_v17, %v8806_v49  ;;  %v2130_v51 = vrot.slane %v8892_v21, %v8800_v44  ;;  %v2134_v52 = vrot.slane %v8892_v21, %v8803_v1  ;;  %v9215_v53 = vpop.eup %8107  ;;  %v4432_v59 = vcombine.low %v4410_v5, %v4417_v46 }
 0x215   : > { %v4253_v60 = vcombine.low %v2106_v26, %v2110_v28  ;;  %v4254_v2 = vcombine.low %v2114_v29, %v2118_v43  ;;  %v1450_v3 = vadd.f32 %v8772_v61, %v1360_v22  ;;  %v4255_v8 = vcombine.low %v2122_v47, %v2126_v50 }
 0x216   : > { %v4433_v4 = vcombine.low %v4424_v34, %v4431_v58  ;;  %v4256_v15 = vcombine.low %v2130_v51, %v2134_v52  ;;  %v1419_v10 = vadd.f32 %v8772_v61, %v1267_v35  ;;  %v9219_v13 = vpop.eup %8109  ;;  %v4440_v27 = vrot.slane %v4432_v59, %v8806_v49 }
 0x217   : > { %v4263_v30 = vrot.slane %v4253_v60, %v8806_v49  ;;  %v4270_v21 = vrot.slane %v4254_v2, %v8806_v49  ;;  %v7865_v16 = vmul.f32 -1.442695, %v1450_v3  ;;  %v4277_v23 = vrot.slane %v4255_v8, %v8806_v49 }
 0x218   : > { %v4447_v19 = vrot.slane %v4433_v4, %v8806_v49  ;;  %v4284_v24 = vrot.slane %v4256_v15, %v8806_v49  ;;  %v7834_v26 = vmul.f32 -1.442695, %v1419_v10  ;;  %v8112_v17 = vpop.eup %8111  ;;  %v3226_v28 = vrot.slane %v8954_v7, %v8493_v39 }
 0x219   : > { %v4285_v5 = vcombine.low %v4263_v30, %v4270_v21  ;;  %8115 = vpow2.f32 %v7865_v16  ;;  %v3230_v29 = vrot.slane %v8954_v7, %v8499_v41  ;;  %v8114_v22 = vpop.eup %8113  ;;  %v1673_v46 = vadd.f32 1.0, %v8106_v6  ;;  %v1270_v16 = vpop.xlane.xlu1 %1269 }
 0x21a   : > { %v4448_v34 = vcombine.low %v4440_v27, %v4447_v19  ;;  %v4286_v43 = vcombine.low %v4277_v23, %v4284_v24  ;;  %8117 = vpow2.f32 %v7834_v26  ;;  %v3234_v35 = vrot.slane %v8954_v7, %v8786_v40 }
 0x21b   : > { %8119 = vrcp.f32 %v1704_v32  ;;  %v4293_v47 = vrot.slane %v4285_v5, %v8806_v49  ;;  %v3238_v58 = vrot.slane %v8954_v7, %v8791_v55  ;;  %v1674_v50 = vadd.f32 1.0, %v8112_v17 }
 0x21c   : > { %7123 = vperm.xlu0 %7929, %v4448_v34   ;;  %v4300_v51 = vrot.slane %v4286_v43, %v8806_v49  ;;  %v3242_v52 = vrot.slane %v8954_v7, %v8794_v42  ;;  %v3246_v6 = vrot.slane %v8954_v7, %v8797_v56  ;;  %v1705_v59 = vadd.f32 1.0, %v8114_v22 }
 0x21d   : > { %v3250_v32 = vrot.slane %v8954_v7, %v8800_v44  ;;  %v3254_v60 = vrot.slane %v8954_v7, %v8803_v1  ;;  %v5968_v2 = vcombine.low %v3226_v28, %v3230_v29  ;;  %v5969_v4 = vcombine.low %v3234_v35, %v3238_v58  ;;  %v1363_v29 = vpop.xlane.xlu0 %1362 }
 0x21e   : > { %v4301_v3 = vcombine.low %v4293_v47, %v4300_v51  ;;  %v5970_v8 = vcombine.low %v3242_v52, %v3246_v6  ;;  %v3130_v15 = vrot.slane %v8901_v45, %v8493_v39  ;;  %v3134_v30 = vrot.slane %v8901_v45, %v8499_v41 }
 0x21f   : > { %v5971_v10 = vcombine.low %v3250_v32, %v3254_v60  ;;  %v5978_v27 = vrot.slane %v5968_v2, %v8806_v49  ;;  %v3138_v21 = vrot.slane %v8901_v45, %v8786_v40  ;;  %v5985_v7 = vrot.slane %v5969_v4, %v8806_v49 }
 0x220   : > { %7114 = vperm.xlu1 %7930, %v4301_v3   ;;  %v5992_v19 = vrot.slane %v5970_v8, %v8806_v49  ;;  %v3142_v23 = vrot.slane %v8901_v45, %v8791_v55  ;;  %v3146_v24 = vrot.slane %v8901_v45, %v8794_v42  ;;  %v3150_v17 = vrot.slane %v8901_v45, %v8797_v56 }
 0x221   : > { %v5999_v26 = vrot.slane %v5971_v10, %v8806_v49  ;;  %v3154_v5 = vrot.slane %v8901_v45, %v8800_v44  ;;  %v3158_v28 = vrot.slane %v8901_v45, %v8803_v1  ;;  %v6000_v22 = vcombine.low %v5978_v27, %v5985_v7 }
 0x222   : > { %v5821_v34 = vcombine.low %v3130_v15, %v3134_v30  ;;  %v5822_v43 = vcombine.low %v3138_v21, %v3142_v23  ;;  %v1420_v47 = vadd.f32 %v8772_v61, %v1270_v16  ;;  %8121 = vrcp.f32 %v1673_v46 }
 0x223   : > { %v8116_v35 = vpop.eup %8115  ;;  %v6001_v58 = vcombine.low %v5992_v19, %v5999_v26  ;;  %v5823_v51 = vcombine.low %v3146_v24, %v3150_v17  ;;  %v5824_v52 = vcombine.low %v3154_v5, %v3158_v28  ;;  %v6008_v32 = vrot.slane %v6000_v22, %v8806_v49 }
 0x224   : > { %v8118_v6 = vpop.eup %8117  ;;  %v5831_v60 = vrot.slane %v5821_v34, %v8806_v49  ;;  %v5838_v2 = vrot.slane %v5822_v43, %v8806_v49  ;;  %v1451_v45 = vadd.f32 %v8772_v61, %v1363_v29  ;;  %8123 = vrcp.f32 %v1674_v50 }
 0x225   : > { %v9270_v3 = vpop.eup %8119  ;;  %v6015_v4 = vrot.slane %v6001_v58, %v8806_v49  ;;  %v5845_v8 = vrot.slane %v5823_v51, %v8806_v49  ;;  %v5852_v46 = vrot.slane %v5824_v52, %v8806_v49  ;;  %8125 = vrcp.f32 %v1705_v59 }
 0x226   : > { %v1706_v15 = vadd.f32 1.0, %v8116_v35  ;;  %v5853_v10 = vcombine.low %v5831_v60, %v5838_v2  ;;  %v7835_v27 = vmul.f32 -1.442695, %v1420_v47  ;;  %v9275_v30 = vadd.f32 1.0, %v8118_v6 }
 0x227   : > { %v6016_v21 = vcombine.low %v6008_v32, %v6015_v4  ;;  %v5854_v16 = vcombine.low %v5845_v8, %v5852_v46  ;;  %v2266_v7 = vrot.slane %v9002_v25, %v8493_v39  ;;  %v7866_v50 = vmul.f32 -1.442695, %v1451_v45  ;;  %v1366_v4 = vpop.xlane.xlu1 %1365  ;;  %v1273_v8 = vpop.xlane.xlu0 %1272 }
 0x228   : > { %v5861_v19 = vrot.slane %v5853_v10, %v8806_v49  ;;  %v2270_v23 = vrot.slane %v9002_v25, %v8499_v41  ;;  %v2274_v24 = vrot.slane %v9002_v25, %v8786_v40  ;;  %8127 = vpow2.f32 %v7835_v27 }
 0x229   : > { %7219 = vperm.xlu0 %7929, %v6016_v21   ;;  %v5868_v59 = vrot.slane %v5854_v16, %v8806_v49  ;;  %v2278_v26 = vrot.slane %v9002_v25, %v8791_v55  ;;  %v2282_v17 = vrot.slane %v9002_v25, %v8794_v42  ;;  %v2286_v5 = vrot.slane %v9002_v25, %v8797_v56 }
 0x22a   : > { %v2290_v28 = vrot.slane %v9002_v25, %v8800_v44  ;;  %v2294_v29 = vrot.slane %v9002_v25, %v8803_v1  ;;  %v4498_v22 = vcombine.low %v2266_v7, %v2270_v23  ;;  %v2138_v47 = vrot.slane %v8898_v33, %v8493_v39 }
 0x22b   : > { %v5869_v34 = vcombine.low %v5861_v19, %v5868_v59  ;;  %v4499_v43 = vcombine.low %v2274_v24, %v2278_v26  ;;  %v2142_v35 = vrot.slane %v8898_v33, %v8499_v41  ;;  %v4500_v58 = vcombine.low %v2282_v17, %v2286_v5 }
 0x22c   : > { %v4501_v51 = vcombine.low %v2290_v28, %v2294_v29  ;;  %v4508_v52 = vrot.slane %v4498_v22, %v8806_v49  ;;  %v2146_v6 = vrot.slane %v8898_v33, %v8786_v40  ;;  %v9302_v32 = vpop.eup %8121  ;;  %v2150_v60 = vrot.slane %v8898_v33, %v8791_v55 }
 0x22d   : > { %7210 = vperm.xlu1 %7930, %v5869_v34   ;;  %v4515_v25 = vrot.slane %v4499_v43, %v8806_v49  ;;  %v2154_v2 = vrot.slane %v8898_v33, %v8794_v42  ;;  %v2158_v45 = vrot.slane %v8898_v33, %v8797_v56  ;;  %v4522_v46 = vrot.slane %v4500_v58, %v8806_v49 }
 0x22e   : > { %v4529_v10 = vrot.slane %v4501_v51, %v8806_v49  ;;  %v2162_v27 = vrot.slane %v8898_v33, %v8800_v44  ;;  %v2166_v21 = vrot.slane %v8898_v33, %v8803_v1  ;;  %v9317_v16 = vpop.eup %8123  ;;  %v4302_v19 = vcombine.low %v2138_v47, %v2142_v35 }
 0x22f   : > { %v4530_v7 = vcombine.low %v4508_v52, %v4515_v25  ;;  %v4303_v23 = vcombine.low %v2146_v6, %v2150_v60  ;;  %v4304_v24 = vcombine.low %v2154_v2, %v2158_v45  ;;  %v9319_v59 = vpop.eup %8125  ;;  %v1452_v5 = vadd.f32 %v8772_v61, %v1366_v4 }
 0x230   : > { %v4531_v26 = vcombine.low %v4522_v46, %v4529_v10  ;;  %v4305_v17 = vcombine.low %v2162_v27, %v2166_v21  ;;  %v1421_v28 = vadd.f32 %v8772_v61, %v1273_v8  ;;  %v4312_v22 = vrot.slane %v4302_v19, %v8806_v49  ;;  %v1276_v8 = vpop.xlane.xlu1 %1275 }
 0x231   : > { %v4538_v29 = vrot.slane %v4530_v7, %v8806_v49  ;;  %v4319_v33 = vrot.slane %v4303_v23, %v8806_v49  ;;  %v4326_v34 = vrot.slane %v4304_v24, %v8806_v49  ;;  %8129 = vrcp.f32 %v1706_v15 }
 0x232   : > { %v4545_v43 = vrot.slane %v4531_v26, %v8806_v49  ;;  %v4333_v47 = vrot.slane %v4305_v17, %v8806_v49  ;;  %v7867_v35 = vmul.f32 -1.442695, %v1452_v5  ;;  %v8128_v58 = vpop.eup %8127  ;;  %v7836_v52 = vmul.f32 -1.442695, %v1421_v28 }
 0x233   : > { %v4334_v51 = vcombine.low %v4312_v22, %v4319_v33  ;;  %v2170_v6 = vrot.slane %v8932_v31, %v8493_v39  ;;  %v2174_v25 = vrot.slane %v8932_v31, %v8499_v41  ;;  %8131 = vpow2.f32 %v7866_v50 }
 0x234   : > { %v4546_v60 = vcombine.low %v4538_v29, %v4545_v43  ;;  %v4335_v2 = vcombine.low %v4326_v34, %v4333_v47  ;;  %8133 = vrcp.f32 %v9275_v30  ;;  %v2178_v45 = vrot.slane %v8932_v31, %v8786_v40  ;;  %v1369_v30 = vpop.xlane.xlu0 %1368 }
 0x235   : > { %v4342_v15 = vrot.slane %v4334_v51, %v8806_v49  ;;  %v2182_v4 = vrot.slane %v8932_v31, %v8791_v55  ;;  %8135 = vpow2.f32 %v7867_v35  ;;  %v2186_v50 = vrot.slane %v8932_v31, %v8794_v42 }
 0x236   : > { %7129 = vperm.xlu0 %7929, %v4546_v60   ;;  %v4349_v46 = vrot.slane %v4335_v2, %v8806_v49  ;;  %v2190_v10 = vrot.slane %v8932_v31, %v8797_v56  ;;  %8137 = vpow2.f32 %v7836_v52  ;;  %v2194_v27 = vrot.slane %v8932_v31, %v8800_v44 }
 0x237   : > { %v2198_v21 = vrot.slane %v8932_v31, %v8803_v1  ;;  %v4351_v7 = vcombine.low %v2170_v6, %v2174_v25  ;;  %v4352_v23 = vcombine.low %v2178_v45, %v2182_v4  ;;  %v1422_v26 = vadd.f32 %v8772_v61, %v1276_v8 }
 0x238   : > { %v4350_v19 = vcombine.low %v4342_v15, %v4349_v46  ;;  %v4353_v24 = vcombine.low %v2186_v50, %v2190_v10  ;;  %v1453_v28 = vadd.f32 %v8772_v61, %v1369_v30  ;;  %v2330_v29 = vrot.slane %v9058_v54, %v8493_v39 }
 0x239   : > { %v4354_v17 = vcombine.low %v2194_v27, %v2198_v21  ;;  %v4361_v5 = vrot.slane %v4351_v7, %v8806_v49  ;;  %v4368_v22 = vrot.slane %v4352_v23, %v8806_v49  ;;  %v7837_v31 = vmul.f32 -1.442695, %v1422_v26 }
 0x23a   : > { %7117 = vperm.xlu1 %7930, %v4350_v19   ;;  %v4375_v33 = vrot.slane %v4353_v24, %v8806_v49  ;;  %v2334_v34 = vrot.slane %v9058_v54, %v8499_v41  ;;  %v7868_v47 = vmul.f32 -1.442695, %v1453_v28  ;;  %v2338_v35 = vrot.slane %v9058_v54, %v8786_v40 }
 0x23b   : > { %v4382_v43 = vrot.slane %v4354_v17, %v8806_v49  ;;  %v2342_v51 = vrot.slane %v9058_v54, %v8791_v55  ;;  %v9362_v52 = vpop.eup %8129  ;;  %v1676_v6 = vadd.f32 1.0, %v8128_v58  ;;  %v4383_v25 = vcombine.low %v4361_v5, %v4368_v22 }
 0x23c   : > { %v2346_v60 = vrot.slane %v9058_v54, %v8794_v42  ;;  %v2350_v2 = vrot.slane %v9058_v54, %v8797_v56  ;;  %8139 = vpow2.f32 %v7837_v31  ;;  %v2354_v45 = vrot.slane %v9058_v54, %v8800_v44 }
 0x23d   : > { %v4384_v15 = vcombine.low %v4375_v33, %v4382_v43  ;;  %v2358_v4 = vrot.slane %v9058_v54, %v8803_v1  ;;  %v8132_v8 = vpop.eup %8131  ;;  %v4391_v46 = vrot.slane %v4383_v25, %v8806_v49  ;;  %v4596_v50 = vcombine.low %v2330_v29, %v2334_v34  ;;  %v1372_v43 = vpop.xlane.xlu1 %1371 }
 0x23e   : > { %v4597_v58 = vcombine.low %v2338_v35, %v2342_v51  ;;  %v4598_v10 = vcombine.low %v2346_v60, %v2350_v2  ;;  %v9373_v30 = vpop.eup %8133  ;;  %8141 = vpow2.f32 %v7868_v47  ;;  %v3194_v7 = vrot.slane %v8950_v62, %v8493_v39 }
 0x23f   : > { %v4398_v27 = vrot.slane %v4384_v15, %v8806_v49  ;;  %v4599_v21 = vcombine.low %v2354_v45, %v2358_v4  ;;  %v8136_v19 = vpop.eup %8135  ;;  %v4606_v23 = vrot.slane %v4596_v50, %v8806_v49  ;;  %v3198_v26 = vrot.slane %v8950_v62, %v8499_v41  ;;  %v1279_v45 = vpop.xlane.xlu0 %1278 }
 0x240   : > { %v4613_v54 = vrot.slane %v4597_v58, %v8806_v49  ;;  %v4620_v24 = vrot.slane %v4598_v10, %v8806_v49  ;;  %v8138_v17 = vpop.eup %8137  ;;  %v1707_v5 = vadd.f32 1.0, %v8132_v8  ;;  %v3202_v22 = vrot.slane %v8950_v62, %v8786_v40 }
 0x241   : > { %v4399_v28 = vcombine.low %v4391_v46, %v4398_v27  ;;  %v4627_v29 = vrot.slane %v4599_v21, %v8806_v49  ;;  %8143 = vrcp.f32 %v1676_v6  ;;  %v3206_v31 = vrot.slane %v8950_v62, %v8791_v55 }
 0x242   : > { %v4628_v33 = vcombine.low %v4606_v23, %v4613_v54  ;;  %v3210_v34 = vrot.slane %v8950_v62, %v8794_v42  ;;  %v3214_v35 = vrot.slane %v8950_v62, %v8797_v56  ;;  %v3218_v51 = vrot.slane %v8950_v62, %v8800_v44 }
 0x243   : > { %7120 = vperm.xlu1 %7930, %v4399_v28   ;;  %v4629_v47 = vcombine.low %v4620_v24, %v4627_v29  ;;  %v3222_v25 = vrot.slane %v8950_v62, %v8803_v1  ;;  %v1708_v6 = vadd.f32 1.0, %v8136_v19  ;;  %v5919_v2 = vcombine.low %v3194_v7, %v3198_v26 }
 0x244   : > { %v4636_v60 = vrot.slane %v4628_v33, %v8806_v49  ;;  %v5920_v15 = vcombine.low %v3202_v22, %v3206_v31  ;;  %v5921_v8 = vcombine.low %v3210_v34, %v3214_v35  ;;  %v1454_v50 = vadd.f32 %v8772_v61, %v1372_v43 }
 0x245   : > { %v4643_v4 = vrot.slane %v4629_v47, %v8806_v49  ;;  %v5922_v46 = vcombine.low %v3218_v51, %v3222_v25  ;;  %8145 = vrcp.f32 %v1707_v5  ;;  %v1677_v58 = vadd.f32 1.0, %v8138_v17  ;;  %v1282_v51 = vpop.xlane.xlu1 %1281 }
 0x246   : > { %v5929_v10 = vrot.slane %v5919_v2, %v8806_v49  ;;  %v5936_v27 = vrot.slane %v5920_v15, %v8806_v49  ;;  %v8140_v21 = vpop.eup %8139  ;;  %v5943_v19 = vrot.slane %v5921_v8, %v8806_v49  ;;  %v1423_v23 = vadd.f32 %v8772_v61, %v1279_v45 }
 0x247   : > { %v4644_v62 = vcombine.low %v4636_v60, %v4643_v4  ;;  %v5950_v7 = vrot.slane %v5922_v46, %v8806_v49  ;;  %8147 = vrcp.f32 %v1708_v6  ;;  %v2234_v24 = vrot.slane %v8994_v18, %v8493_v39 }
 0x248   : > { %v5951_v54 = vcombine.low %v5929_v10, %v5936_v27  ;;  %v8142_v26 = vpop.eup %8141  ;;  %v7869_v5 = vmul.f32 -1.442695, %v1454_v50  ;;  %v2238_v28 = vrot.slane %v8994_v18, %v8499_v41  ;;  %v2242_v29 = vrot.slane %v8994_v18, %v8786_v40  ;;  %v1375_v27 = vpop.xlane.xlu0 %1374 }
 0x249   : > { %7135 = vperm.xlu0 %7929, %v4644_v62   ;;  %v5952_v17 = vcombine.low %v5943_v19, %v5950_v7  ;;  %8149 = vrcp.f32 %v1677_v58  ;;  %v2246_v33 = vrot.slane %v8994_v18, %v8791_v55  ;;  %v2250_v31 = vrot.slane %v8994_v18, %v8794_v42 }
 0x24a   : > { %v5959_v22 = vrot.slane %v5951_v54, %v8806_v49  ;;  %v7838_v43 = vmul.f32 -1.442695, %v1423_v23  ;;  %v2254_v47 = vrot.slane %v8994_v18, %v8797_v56  ;;  %v2258_v35 = vrot.slane %v8994_v18, %v8800_v44 }
 0x24b   : > { %v5966_v34 = vrot.slane %v5952_v17, %v8806_v49  ;;  %v9420_v25 = vpop.eup %8143  ;;  %v1678_v6 = vadd.f32 1.0, %v8140_v21  ;;  %v2262_v60 = vrot.slane %v8994_v18, %v8803_v1  ;;  %v4449_v2 = vcombine.low %v2234_v24, %v2238_v28 }
 0x24c   : > { %v4450_v15 = vcombine.low %v2242_v29, %v2246_v33  ;;  %v1709_v45 = vadd.f32 1.0, %v8142_v26  ;;  %8151 = vpow2.f32 %v7869_v5  ;;  %v4451_v8 = vcombine.low %v2250_v31, %v2254_v47 }
 0x24d   : > { %v5967_v4 = vcombine.low %v5959_v22, %v5966_v34  ;;  %v4452_v46 = vcombine.low %v2258_v35, %v2262_v60  ;;  %v4459_v50 = vrot.slane %v4449_v2, %v8806_v49  ;;  %v1424_v10 = vadd.f32 %v8772_v61, %v1282_v51 }
 0x24e   : > { %v4466_v58 = vrot.slane %v4450_v15, %v8806_v49  ;;  %8153 = vpow2.f32 %v7838_v43  ;;  %v4473_v21 = vrot.slane %v4451_v8, %v8806_v49  ;;  %v2394_v18 = vrot.slane %v9139_v36, %v8493_v39 }
 0x24f   : > { %7216 = vperm.xlu1 %7930, %v5967_v4   ;;  %v2398_v62 = vrot.slane %v9139_v36, %v8499_v41  ;;  %v9432_v19 = vpop.eup %8145  ;;  %v4480_v7 = vrot.slane %v4452_v46, %v8806_v49  ;;  %v2402_v54 = vrot.slane %v9139_v36, %v8786_v40  ;;  %v2406_v24 = vrot.slane %v9139_v36, %v8791_v55 }
 0x250   : > { %v4481_v23 = vcombine.low %v4459_v50, %v4466_v58  ;;  %v1455_v26 = vadd.f32 %v8772_v61, %v1375_v27  ;;  %v2410_v17 = vrot.slane %v9139_v36, %v8794_v42  ;;  %v2414_v5 = vrot.slane %v9139_v36, %v8797_v56 }
 0x251   : > { %v2418_v28 = vrot.slane %v9139_v36, %v8800_v44  ;;  %v9446_v29 = vpop.eup %8147  ;;  %v4482_v22 = vcombine.low %v4473_v21, %v4480_v7  ;;  %v7839_v31 = vmul.f32 -1.442695, %v1424_v10  ;;  %v2422_v34 = vrot.slane %v9139_v36, %v8803_v1 }
 0x252   : > { %v4489_v33 = vrot.slane %v4481_v23, %v8806_v49  ;;  %v4694_v43 = vcombine.low %v2394_v18, %v2398_v62  ;;  %v4695_v47 = vcombine.low %v2402_v54, %v2406_v24  ;;  %v4696_v35 = vcombine.low %v2410_v17, %v2414_v5  ;;  %v1378_v54 = vpop.xlane.xlu1 %1377 }
 0x253   : > { %v3258_v51 = vrot.slane %v9006_v11, %v8493_v39  ;;  %v9453_v60 = vpop.eup %8149  ;;  %v4496_v2 = vrot.slane %v4482_v22, %v8806_v49  ;;  %v4697_v15 = vcombine.low %v2418_v28, %v2422_v34  ;;  %v3262_v4 = vrot.slane %v9006_v11, %v8499_v41  ;;  %v1285_v28 = vpop.xlane.xlu0 %1284 }
 0x254   : > { %v3266_v8 = vrot.slane %v9006_v11, %v8786_v40  ;;  %v4704_v46 = vrot.slane %v4694_v43, %v8806_v49  ;;  %v4711_v36 = vrot.slane %v4695_v47, %v8806_v49  ;;  %v4718_v50 = vrot.slane %v4696_v35, %v8806_v49 }
 0x255   : > { %v3270_v58 = vrot.slane %v9006_v11, %v8791_v55  ;;  %8155 = vrcp.f32 %v1678_v6  ;;  %v4497_v10 = vcombine.low %v4489_v33, %v4496_v2  ;;  %v4725_v27 = vrot.slane %v4697_v15, %v8806_v49 }
 0x256   : > { %v3274_v21 = vrot.slane %v9006_v11, %v8794_v42  ;;  %v8152_v18 = vpop.eup %8151  ;;  %8157 = vpow2.f32 %v7839_v31  ;;  %v4726_v62 = vcombine.low %v4704_v46, %v4711_v36  ;;  %v3278_v7 = vrot.slane %v9006_v11, %v8797_v56 }
 0x257   : > { %v3282_v23 = vrot.slane %v9006_v11, %v8800_v44  ;;  %7126 = vperm.xlu1 %7930, %v4497_v10   ;;  %v7870_v24 = vmul.f32 -1.442695, %v1455_v26  ;;  %v4727_v17 = vcombine.low %v4718_v50, %v4725_v27  ;;  %v3286_v6 = vrot.slane %v9006_v11, %v8803_v1 }
 0x258   : > { %v6017_v5 = vcombine.low %v3258_v51, %v3262_v4  ;;  %v8154_v22 = vpop.eup %8153  ;;  %8159 = vrcp.f32 %v1709_v45  ;;  %v4734_v33 = vrot.slane %v4726_v62, %v8806_v49  ;;  %v6018_v31 = vcombine.low %v3266_v8, %v3270_v58 }
 0x259   : > { %v6019_v34 = vcombine.low %v3274_v21, %v3278_v7  ;;  %v4741_v43 = vrot.slane %v4727_v17, %v8806_v49  ;;  %v6020_v47 = vcombine.low %v3282_v23, %v3286_v6  ;;  %v1456_v2 = vadd.f32 %v8772_v61, %v1378_v54  ;;  %v1288_v54 = vpop.xlane.xlu1 %1287 }
 0x25a   : > { %v6027_v35 = vrot.slane %v6017_v5, %v8806_v49  ;;  %v1710_v26 = vadd.f32 1.0, %v8152_v18  ;;  %v6034_v15 = vrot.slane %v6018_v31, %v8806_v49  ;;  %v1425_v51 = vadd.f32 %v8772_v61, %v1285_v28 }
 0x25b   : > { %v6041_v11 = vrot.slane %v6019_v34, %v8806_v49  ;;  %8161 = vpow2.f32 %v7870_v24  ;;  %v4742_v45 = vcombine.low %v4734_v33, %v4741_v43  ;;  %v6048_v4 = vrot.slane %v6020_v47, %v8806_v49  ;;  %v1381_v24 = vpop.xlane.xlu0 %1380 }
 0x25c   : > { %v7871_v8 = vmul.f32 -1.442695, %v1456_v2  ;;  %v6049_v46 = vcombine.low %v6027_v35, %v6034_v15  ;;  %v7840_v36 = vmul.f32 -1.442695, %v1425_v51  ;;  %v3290_v50 = vrot.slane %v9044_v48, %v8493_v39 }
 0x25d   : > { %v3294_v58 = vrot.slane %v9044_v48, %v8499_v41  ;;  %v1679_v10 = vadd.f32 1.0, %v8154_v22  ;;  %7141 = vperm.xlu0 %7929, %v4742_v45   ;;  %v6050_v27 = vcombine.low %v6041_v11, %v6048_v4  ;;  %v3298_v21 = vrot.slane %v9044_v48, %v8786_v40 }
 0x25e   : > { %v3302_v18 = vrot.slane %v9044_v48, %v8791_v55  ;;  %8163 = vrcp.f32 %v1710_v26  ;;  %v6057_v62 = vrot.slane %v6049_v46, %v8806_v49  ;;  %v3306_v7 = vrot.slane %v9044_v48, %v8794_v42 }
 0x25f   : > { %v3310_v23 = vrot.slane %v9044_v48, %v8797_v56  ;;  %v9495_v17 = vpop.eup %8155  ;;  %v6064_v6 = vrot.slane %v6050_v27, %v8806_v49  ;;  %8165 = vpow2.f32 %v7871_v8  ;;  %v3314_v5 = vrot.slane %v9044_v48, %v8800_v44 }
 0x260   : > { %v3318_v28 = vrot.slane %v9044_v48, %v8803_v1  ;;  %v8158_v22 = vpop.eup %8157  ;;  %8167 = vpow2.f32 %v7840_v36  ;;  %v6066_v33 = vcombine.low %v3290_v50, %v3294_v58  ;;  %v6067_v31 = vcombine.low %v3298_v21, %v3302_v18 }
 0x261   : > { %v6068_v34 = vcombine.low %v3306_v7, %v3310_v23  ;;  %v6065_v43 = vcombine.low %v6057_v62, %v6064_v6  ;;  %v1426_v35 = vadd.f32 %v8772_v61, %v1288_v54  ;;  %v1457_v2 = vadd.f32 %v8772_v61, %v1381_v24 }
 0x262   : > { %v6069_v47 = vcombine.low %v3314_v5, %v3318_v28  ;;  %v9504_v26 = vpop.eup %8159  ;;  %v6076_v15 = vrot.slane %v6066_v33, %v8806_v49  ;;  %v6083_v11 = vrot.slane %v6067_v31, %v8806_v49  ;;  %v2458_v48 = vrot.slane %v9215_v53, %v8493_v39 }
 0x263   : > { %v6090_v51 = vrot.slane %v6068_v34, %v8806_v49  ;;  %8169 = vrcp.f32 %v1679_v10  ;;  %v1680_v45 = vadd.f32 1.0, %v8158_v22  ;;  %7222 = vperm.xlu1 %7930, %v6065_v43   ;;  %v2462_v8 = vrot.slane %v9215_v53, %v8499_v41 }
 0x264   : > { %v6097_v4 = vrot.slane %v6069_v47, %v8806_v49  ;;  %v6098_v46 = vcombine.low %v6076_v15, %v6083_v11  ;;  %v2466_v36 = vrot.slane %v9215_v53, %v8786_v40  ;;  %v2470_v50 = vrot.slane %v9215_v53, %v8791_v55 }
 0x265   : > { %v2474_v58 = vrot.slane %v9215_v53, %v8794_v42  ;;  %v8162_v27 = vpop.eup %8161  ;;  %v7841_v10 = vmul.f32 -1.442695, %v1426_v35  ;;  %v2478_v18 = vrot.slane %v9215_v53, %v8797_v56  ;;  %v2482_v62 = vrot.slane %v9215_v53, %v8800_v44 }
 0x266   : > { %v6099_v21 = vcombine.low %v6090_v51, %v6097_v4  ;;  %v6106_v7 = vrot.slane %v6098_v46, %v8806_v49  ;;  %v7872_v23 = vmul.f32 -1.442695, %v1457_v2  ;;  %v2486_v54 = vrot.slane %v9215_v53, %v8803_v1 }
 0x267   : > { %v4792_v24 = vcombine.low %v2458_v48, %v2462_v8  ;;  %v4793_v5 = vcombine.low %v2466_v36, %v2470_v50  ;;  %v4794_v28 = vcombine.low %v2474_v58, %v2478_v18  ;;  %v2298_v22 = vrot.slane %v9050_v57, %v8493_v39 }
 0x268   : > { %v6113_v6 = vrot.slane %v6099_v21, %v8806_v49  ;;  %v9530_v33 = vpop.eup %8163  ;;  %v4795_v31 = vcombine.low %v2482_v62, %v2486_v54  ;;  %v2302_v43 = vrot.slane %v9050_v57, %v8499_v41  ;;  %v2306_v47 = vrot.slane %v9050_v57, %v8786_v40  ;;  %v1384_v62 = vpop.xlane.xlu1 %1383 }
 0x269   : > { %v4802_v34 = vrot.slane %v4792_v24, %v8806_v49  ;;  %v8166_v53 = vpop.eup %8165  ;;  %v4809_v2 = vrot.slane %v4793_v5, %v8806_v49  ;;  %v4816_v15 = vrot.slane %v4794_v28, %v8806_v49  ;;  %v2310_v11 = vrot.slane %v9050_v57, %v8791_v55 }
 0x26a   : > { %v6114_v35 = vcombine.low %v6106_v7, %v6113_v6  ;;  %v8168_v51 = vpop.eup %8167  ;;  %v1711_v48 = vadd.f32 1.0, %v8162_v27  ;;  %v4823_v4 = vrot.slane %v4795_v31, %v8806_v49  ;;  %v2314_v8 = vrot.slane %v9050_v57, %v8794_v42 }
 0x26b   : > { %v2318_v46 = vrot.slane %v9050_v57, %v8797_v56  ;;  %8171 = vrcp.f32 %v1680_v45  ;;  %v4824_v36 = vcombine.low %v4802_v34, %v4809_v2  ;;  %v2322_v50 = vrot.slane %v9050_v57, %v8800_v44 }
 0x26c   : > { %7225 = vperm.xlu1 %7930, %v6114_v35   ;;  %v2326_v58 = vrot.slane %v9050_v57, %v8803_v1  ;;  %8173 = vpow2.f32 %v7841_v10  ;;  %v4825_v21 = vcombine.low %v4816_v15, %v4823_v4  ;;  %v4547_v27 = vcombine.low %v2298_v22, %v2302_v43 }
 0x26d   : > { %v4548_v18 = vcombine.low %v2306_v47, %v2310_v11  ;;  %v9550_v7 = vpop.eup %8169  ;;  %8175 = vpow2.f32 %v7872_v23  ;;  %v4832_v54 = vrot.slane %v4824_v36, %v8806_v49  ;;  %v4549_v24 = vcombine.low %v2314_v8, %v2318_v46 }
 0x26e   : > { %v4550_v45 = vcombine.low %v2322_v50, %v2326_v58  ;;  %v1712_v6 = vadd.f32 1.0, %v8166_v53  ;;  %v4839_v5 = vrot.slane %v4825_v21, %v8806_v49  ;;  %v4557_v28 = vrot.slane %v4547_v27, %v8806_v49 }
 0x26f   : > { %v4564_v31 = vrot.slane %v4548_v18, %v8806_v49  ;;  %v1681_v57 = vadd.f32 1.0, %v8168_v51  ;;  %v4571_v10 = vrot.slane %v4549_v24, %v8806_v49  ;;  %v1458_v34 = vadd.f32 %v8772_v61, %v1384_v62 }
 0x270   : > { %v4578_v22 = vrot.slane %v4550_v45, %v8806_v49  ;;  %v4840_v43 = vcombine.low %v4832_v54, %v4839_v5  ;;  %v3482_v47 = vrot.slane %v9270_v3, %v8493_v39  ;;  %v3486_v53 = vrot.slane %v9270_v3, %v8499_v41 }
 0x271   : > { %v4579_v23 = vcombine.low %v4557_v28, %v4564_v31  ;;  %8177 = vrcp.f32 %v1711_v48  ;;  %v3490_v2 = vrot.slane %v9270_v3, %v8786_v40  ;;  %v3494_v15 = vrot.slane %v9270_v3, %v8791_v55 }
 0x272   : > { %v4580_v35 = vcombine.low %v4571_v10, %v4578_v22  ;;  %8179 = vrcp.f32 %v1712_v6  ;;  %7147 = vperm.xlu0 %7929, %v4840_v43   ;;  %v3498_v51 = vrot.slane %v9270_v3, %v8794_v42  ;;  %v3502_v4 = vrot.slane %v9270_v3, %v8797_v56 }
 0x273   : > { %v4587_v11 = vrot.slane %v4579_v23, %v8806_v49  ;;  %8181 = vrcp.f32 %v1681_v57  ;;  %v3506_v8 = vrot.slane %v9270_v3, %v8800_v44  ;;  %v3510_v46 = vrot.slane %v9270_v3, %v8803_v1 }
 0x274   : > { %v4594_v48 = vrot.slane %v4580_v35, %v8806_v49  ;;  %v7873_v36 = vmul.f32 -1.442695, %v1458_v34  ;;  %v6360_v50 = vcombine.low %v3482_v47, %v3486_v53  ;;  %v6361_v58 = vcombine.low %v3490_v2, %v3494_v15  ;;  %v1291_v35 = vpop.xlane.xlu0 %1290 }
 0x275   : > { %v6362_v21 = vcombine.low %v3498_v51, %v3502_v4  ;;  %v9577_v27 = vpop.eup %8171  ;;  %v6363_v62 = vcombine.low %v3506_v8, %v3510_v46  ;;  %v3322_v54 = vrot.slane %v9063_v9, %v8493_v39  ;;  %v3326_v24 = vrot.slane %v9063_v9, %v8499_v41 }
 0x276   : > { %v4595_v18 = vcombine.low %v4587_v11, %v4594_v48  ;;  %v8174_v45 = vpop.eup %8173  ;;  %v6370_v6 = vrot.slane %v6360_v50, %v8806_v49  ;;  %v6377_v5 = vrot.slane %v6361_v58, %v8806_v49  ;;  %v3330_v28 = vrot.slane %v9063_v9, %v8786_v40  ;;  %v1294_v50 = vpop.xlane.xlu1 %1293 }
 0x277   : > { %v6384_v3 = vrot.slane %v6362_v21, %v8806_v49  ;;  %v8176_v31 = vpop.eup %8175  ;;  %v6391_v57 = vrot.slane %v6363_v62, %v8806_v49  ;;  %v3334_v10 = vrot.slane %v9063_v9, %v8791_v55  ;;  %v3338_v22 = vrot.slane %v9063_v9, %v8794_v42 }
 0x278   : > { %7132 = vperm.xlu1 %7930, %v4595_v18   ;;  %v3342_v34 = vrot.slane %v9063_v9, %v8797_v56  ;;  %v6392_v43 = vcombine.low %v6370_v6, %v6377_v5  ;;  %v3346_v23 = vrot.slane %v9063_v9, %v8800_v44  ;;  %v3350_v47 = vrot.slane %v9063_v9, %v8803_v1 }
 0x279   : > { %v6115_v53 = vcombine.low %v3322_v54, %v3326_v24  ;;  %v1682_v2 = vadd.f32 1.0, %v8174_v45  ;;  %v6393_v15 = vcombine.low %v6384_v3, %v6391_v57  ;;  %v6116_v11 = vcombine.low %v3330_v28, %v3334_v10 }
 0x27a   : > { %v6117_v51 = vcombine.low %v3338_v22, %v3342_v34  ;;  %v1713_v4 = vadd.f32 1.0, %v8176_v31  ;;  %v6400_v48 = vrot.slane %v6392_v43, %v8806_v49  ;;  %v6118_v8 = vcombine.low %v3346_v23, %v3350_v47 }
 0x27b   : > { %v6125_v46 = vrot.slane %v6115_v53, %v8806_v49  ;;  %v9601_v58 = vpop.eup %8177  ;;  %v6407_v21 = vrot.slane %v6393_v15, %v8806_v49  ;;  %v6132_v18 = vrot.slane %v6116_v11, %v8806_v49  ;;  %v1427_v62 = vadd.f32 %v8772_v61, %v1291_v35 }
 0x27c   : > { %v6139_v9 = vrot.slane %v6117_v51, %v8806_v49  ;;  %v9607_v54 = vpop.eup %8179  ;;  %8183 = vpow2.f32 %v7873_v36  ;;  %v6146_v24 = vrot.slane %v6118_v8, %v8806_v49  ;;  %v2522_v45 = vrot.slane %v9317_v16, %v8493_v39 }
 0x27d   : > { %v2526_v6 = vrot.slane %v9317_v16, %v8499_v41  ;;  %v9614_v5 = vpop.eup %8181  ;;  %v6408_v3 = vcombine.low %v6400_v48, %v6407_v21  ;;  %v6147_v28 = vcombine.low %v6125_v46, %v6132_v18  ;;  %v1428_v31 = vadd.f32 %v8772_v61, %v1294_v50 }
 0x27e   : > { %v2530_v57 = vrot.slane %v9317_v16, %v8786_v40  ;;  %8185 = vrcp.f32 %v1682_v2  ;;  %v6148_v10 = vcombine.low %v6139_v9, %v6146_v24  ;;  %v2534_v36 = vrot.slane %v9317_v16, %v8791_v55  ;;  %v1387_v9 = vpop.xlane.xlu0 %1386 }
 0x27f   : > { %v2538_v22 = vrot.slane %v9317_v16, %v8794_v42  ;;  %7243 = vperm.xlu0 %7929, %v6408_v3   ;;  %v6155_v34 = vrot.slane %v6147_v28, %v8806_v49  ;;  %v7842_v43 = vmul.f32 -1.442695, %v1427_v62  ;;  %v2542_v23 = vrot.slane %v9317_v16, %v8797_v56 }
 0x280   : > { %v2546_v47 = vrot.slane %v9317_v16, %v8800_v44  ;;  %v6162_v53 = vrot.slane %v6148_v10, %v8806_v49  ;;  %v2550_v35 = vrot.slane %v9317_v16, %v8803_v1  ;;  %v4890_v2 = vcombine.low %v2522_v45, %v2526_v6 }
 0x281   : > { %v4891_v15 = vcombine.low %v2530_v57, %v2534_v36  ;;  %v7843_v11 = vmul.f32 -1.442695, %v1428_v31  ;;  %v4892_v51 = vcombine.low %v2538_v22, %v2542_v23  ;;  %v3354_v48 = vrot.slane %v9095_v20, %v8493_v39  ;;  %v1390_v57 = vpop.xlane.xlu1 %1389 }
 0x282   : > { %v3358_v8 = vrot.slane %v9095_v20, %v8499_v41  ;;  %v6163_v46 = vcombine.low %v6155_v34, %v6162_v53  ;;  %v4893_v50 = vcombine.low %v2546_v47, %v2550_v35  ;;  %v4900_v21 = vrot.slane %v4890_v2, %v8806_v49 }
 0x283   : > { %v4907_v18 = vrot.slane %v4891_v15, %v8806_v49  ;;  %v4914_v62 = vrot.slane %v4892_v51, %v8806_v49  ;;  %v3362_v16 = vrot.slane %v9095_v20, %v8786_v40  ;;  %v3366_v24 = vrot.slane %v9095_v20, %v8791_v55 }
 0x284   : > { %v3370_v45 = vrot.slane %v9095_v20, %v8794_v42  ;;  %7228 = vperm.xlu1 %7930, %v6163_v46   ;;  %v4921_v6 = vrot.slane %v4893_v50, %v8806_v49  ;;  %v3374_v28 = vrot.slane %v9095_v20, %v8797_v56  ;;  %v3378_v31 = vrot.slane %v9095_v20, %v8800_v44 }
 0x285   : > { %v4922_v3 = vcombine.low %v4900_v21, %v4907_v18  ;;  %v3382_v10 = vrot.slane %v9095_v20, %v8803_v1  ;;  %v6164_v36 = vcombine.low %v3354_v48, %v3358_v8  ;;  %v6165_v22 = vcombine.low %v3362_v16, %v3366_v24 }
 0x286   : > { %v1459_v34 = vadd.f32 %v8772_v61, %v1387_v9  ;;  %v8184_v23 = vpop.eup %8183  ;;  %8187 = vrcp.f32 %v1713_v4  ;;  %v4923_v47 = vcombine.low %v4914_v62, %v4921_v6  ;;  %v6166_v35 = vcombine.low %v3370_v45, %v3374_v28 }
 0x287   : > { %v4930_v53 = vrot.slane %v4922_v3, %v8806_v49  ;;  %v6167_v2 = vcombine.low %v3378_v31, %v3382_v10  ;;  %v6174_v15 = vrot.slane %v6164_v36, %v8806_v49  ;;  %v6181_v51 = vrot.slane %v6165_v22, %v8806_v49 }
 0x288   : > { %v1460_v46 = vadd.f32 %v8772_v61, %v1390_v57  ;;  %v9656_v50 = vpop.eup %8185  ;;  %8189 = vpow2.f32 %v7842_v43  ;;  %v4937_v20 = vrot.slane %v4923_v47, %v8806_v49  ;;  %v6188_v48 = vrot.slane %v6166_v35, %v8806_v49 }
 0x289   : > { %v7874_v8 = vmul.f32 -1.442695, %v1459_v34  ;;  %8191 = vpow2.f32 %v7843_v11  ;;  %v6195_v4 = vrot.slane %v6167_v2, %v8806_v49  ;;  %v6196_v21 = vcombine.low %v6174_v15, %v6181_v51 }
 0x28a   : > { %v1714_v18 = vadd.f32 1.0, %v8184_v23  ;;  %v4938_v9 = vcombine.low %v4930_v53, %v4937_v20  ;;  %v3546_v62 = vrot.slane %v9362_v52, %v8493_v39  ;;  %v3550_v16 = vrot.slane %v9362_v52, %v8499_v41 }
 0x28b   : > { %v6197_v24 = vcombine.low %v6188_v48, %v6195_v4  ;;  %v6204_v43 = vrot.slane %v6196_v21, %v8806_v49  ;;  %v7875_v45 = vmul.f32 -1.442695, %v1460_v46  ;;  %v3554_v6 = vrot.slane %v9362_v52, %v8786_v40 }
 0x28c   : > { %7153 = vperm.xlu0 %7929, %v4938_v9   ;;  %8193 = vpow2.f32 %v7874_v8  ;;  %v3558_v11 = vrot.slane %v9362_v52, %v8791_v55  ;;  %v3562_v3 = vrot.slane %v9362_v52, %v8794_v42  ;;  %v3566_v28 = vrot.slane %v9362_v52, %v8797_v56 }
 0x28d   : > { %v6211_v31 = vrot.slane %v6197_v24, %v8806_v49  ;;  %v3570_v57 = vrot.slane %v9362_v52, %v8800_v44  ;;  %v3574_v10 = vrot.slane %v9362_v52, %v8803_v1  ;;  %v6458_v36 = vcombine.low %v3546_v62, %v3550_v16 }
 0x28e   : > { %v6459_v22 = vcombine.low %v3554_v6, %v3558_v11  ;;  %v6460_v34 = vcombine.low %v3562_v3, %v3566_v28  ;;  %v2362_v23 = vrot.slane %v9126_v14, %v8493_v39  ;;  %v2366_v47 = vrot.slane %v9126_v14, %v8499_v41 }
 0x28f   : > { %v6212_v53 = vcombine.low %v6204_v43, %v6211_v31  ;;  %v6461_v35 = vcombine.low %v3570_v57, %v3574_v10  ;;  %v6468_v2 = vrot.slane %v6458_v36, %v8806_v49  ;;  %v2370_v15 = vrot.slane %v9126_v14, %v8786_v40 }
 0x290   : > { %v9686_v51 = vpop.eup %8187  ;;  %v6475_v52 = vrot.slane %v6459_v22, %v8806_v49  ;;  %v6482_v46 = vrot.slane %v6460_v34, %v8806_v49  ;;  %v2374_v20 = vrot.slane %v9126_v14, %v8791_v55  ;;  %v2378_v48 = vrot.slane %v9126_v14, %v8794_v42 }
 0x291   : > { %7231 = vperm.xlu1 %7930, %v6212_v53   ;;  %v6489_v8 = vrot.slane %v6461_v35, %v8806_v49  ;;  %v2382_v4 = vrot.slane %v9126_v14, %v8797_v56  ;;  %v2386_v21 = vrot.slane %v9126_v14, %v8800_v44  ;;  %v2390_v9 = vrot.slane %v9126_v14, %v8803_v1 }
 0x292   : > { %v8190_v62 = vpop.eup %8189  ;;  %8195 = vpow2.f32 %v7875_v45  ;;  %v6490_v16 = vcombine.low %v6468_v2, %v6475_v52  ;;  %v4645_v24 = vcombine.low %v2362_v23, %v2366_v47  ;;  %v4646_v43 = vcombine.low %v2370_v15, %v2374_v20 }
 0x293   : > { %v8192_v6 = vpop.eup %8191  ;;  %v6491_v11 = vcombine.low %v6482_v46, %v6489_v8  ;;  %v4647_v3 = vcombine.low %v2378_v48, %v2382_v4  ;;  %v4648_v28 = vcombine.low %v2386_v21, %v2390_v9  ;;  %v2586_v31 = vrot.slane %v9420_v25, %v8493_v39 }
 0x294   : > { %v6498_v57 = vrot.slane %v6490_v16, %v8806_v49  ;;  %v4655_v10 = vrot.slane %v4645_v24, %v8806_v49  ;;  %v4662_v36 = vrot.slane %v4646_v43, %v8806_v49  ;;  %v2590_v14 = vrot.slane %v9420_v25, %v8499_v41 }
 0x295   : > { %v6505_v45 = vrot.slane %v6491_v11, %v8806_v49  ;;  %v4669_v22 = vrot.slane %v4647_v3, %v8806_v49  ;;  %v4676_v34 = vrot.slane %v4648_v28, %v8806_v49  ;;  %v2594_v23 = vrot.slane %v9420_v25, %v8786_v40 }
 0x296   : > { %v8194_v47 = vpop.eup %8193  ;;  %8197 = vrcp.f32 %v1714_v18  ;;  %v4677_v53 = vcombine.low %v4655_v10, %v4662_v36  ;;  %v2598_v35 = vrot.slane %v9420_v25, %v8791_v55  ;;  %v2602_v2 = vrot.slane %v9420_v25, %v8794_v42 }
 0x297   : > { %v1683_v15 = vadd.f32 1.0, %v8190_v62  ;;  %v6506_v52 = vcombine.low %v6498_v57, %v6505_v45  ;;  %v4678_v46 = vcombine.low %v4669_v22, %v4676_v34  ;;  %v2606_v20 = vrot.slane %v9420_v25, %v8797_v56 }
 0x298   : > { %v4685_v48 = vrot.slane %v4677_v53, %v8806_v49  ;;  %v2610_v8 = vrot.slane %v9420_v25, %v8800_v44  ;;  %v2614_v18 = vrot.slane %v9420_v25, %v8803_v1  ;;  %v4988_v4 = vcombine.low %v2586_v31, %v2590_v14 }
 0x299   : > { %v1684_v21 = vadd.f32 1.0, %v8192_v6  ;;  %7249 = vperm.xlu0 %7929, %v6506_v52   ;;  %v4692_v9 = vrot.slane %v4678_v46, %v8806_v49  ;;  %v4989_v16 = vcombine.low %v2594_v23, %v2598_v35  ;;  %v4990_v62 = vcombine.low %v2602_v2, %v2606_v20 }
 0x29a   : > { %v4991_v24 = vcombine.low %v2610_v8, %v2614_v18  ;;  %v4998_v43 = vrot.slane %v4988_v4, %v8806_v49  ;;  %v3386_v11 = vrot.slane %v9159_v12, %v8493_v39  ;;  %v3390_v3 = vrot.slane %v9159_v12, %v8499_v41  ;;  %v1300_v8 = vpop.xlane.xlu1 %1299 }
 0x29b   : > { %v4693_v28 = vcombine.low %v4685_v48, %v4692_v9  ;;  %v5005_v57 = vrot.slane %v4989_v16, %v8806_v49  ;;  %v5012_v25 = vrot.slane %v4990_v62, %v8806_v49  ;;  %v3394_v6 = vrot.slane %v9159_v12, %v8786_v40 }
 0x29c   : > { %v8196_v31 = vpop.eup %8195  ;;  %v5019_v10 = vrot.slane %v4991_v24, %v8806_v49  ;;  %v3398_v36 = vrot.slane %v9159_v12, %v8791_v55  ;;  %v3402_v14 = vrot.slane %v9159_v12, %v8794_v42  ;;  %v3406_v45 = vrot.slane %v9159_v12, %v8797_v56 }
 0x29d   : > { %7138 = vperm.xlu1 %7930, %v4693_v28   ;;  %v5020_v22 = vcombine.low %v4998_v43, %v5005_v57  ;;  %v3410_v34 = vrot.slane %v9159_v12, %v8800_v44  ;;  %v3414_v23 = vrot.slane %v9159_v12, %v8803_v1  ;;  %v6213_v53 = vcombine.low %v3386_v11, %v3390_v3 }
 0x29e   : > { %8199 = vrcp.f32 %v1683_v15  ;;  %v5021_v35 = vcombine.low %v5012_v25, %v5019_v10  ;;  %v6214_v2 = vcombine.low %v3394_v6, %v3398_v36  ;;  %v6215_v52 = vcombine.low %v3402_v14, %v3406_v45  ;;  %v1297_v15 = vpop.xlane.xlu0 %1296 }
 0x29f   : > { %8201 = vrcp.f32 %v1684_v21  ;;  %v5028_v46 = vrot.slane %v5020_v22, %v8806_v49  ;;  %v6216_v20 = vcombine.low %v3410_v34, %v3414_v23  ;;  %v6223_v48 = vrot.slane %v6213_v53, %v8806_v49 }
 0x2a0   : > { %v9747_v18 = vpop.eup %8197  ;;  %v1715_v4 = vadd.f32 1.0, %v8194_v47  ;;  %v5035_v9 = vrot.slane %v5021_v35, %v8806_v49  ;;  %v6230_v16 = vrot.slane %v6214_v2, %v8806_v49  ;;  %v6237_v12 = vrot.slane %v6215_v52, %v8806_v49 }
 0x2a1   : > { %v1716_v62 = vadd.f32 1.0, %v8196_v31  ;;  %v6244_v24 = vrot.slane %v6216_v20, %v8806_v49  ;;  %v3610_v21 = vrot.slane %v9446_v29, %v8493_v39  ;;  %v3614_v43 = vrot.slane %v9446_v29, %v8499_v41 }
 0x2a2   : > { %v5036_v11 = vcombine.low %v5028_v46, %v5035_v9  ;;  %v6245_v3 = vcombine.low %v6223_v48, %v6230_v16  ;;  %v1430_v47 = vadd.f32 %v8772_v61, %v1300_v8  ;;  %v3618_v28 = vrot.slane %v9446_v29, %v8786_v40 }
 0x2a3   : > { %v6246_v57 = vcombine.low %v6237_v12, %v6244_v24  ;;  %v1429_v25 = vadd.f32 %v8772_v61, %v1297_v15  ;;  %v3622_v6 = vrot.slane %v9446_v29, %v8791_v55  ;;  %v3626_v31 = vrot.slane %v9446_v29, %v8794_v42 }
 0x2a4   : > { %7159 = vperm.xlu0 %7929, %v5036_v11   ;;  %v6253_v10 = vrot.slane %v6245_v3, %v8806_v49  ;;  %v3630_v36 = vrot.slane %v9446_v29, %v8797_v56  ;;  %v3634_v14 = vrot.slane %v9446_v29, %v8800_v44  ;;  %v3638_v45 = vrot.slane %v9446_v29, %v8803_v1 }
 0x2a5   : > { %v6260_v22 = vrot.slane %v6246_v57, %v8806_v49  ;;  %v6556_v34 = vcombine.low %v3610_v21, %v3614_v43  ;;  %v6557_v23 = vcombine.low %v3618_v28, %v3622_v6  ;;  %v2426_v53 = vrot.slane %v9177_v0, %v8493_v39 }
 0x2a6   : > { %v6558_v35 = vcombine.low %v3626_v31, %v3630_v36  ;;  %v6559_v2 = vcombine.low %v3634_v14, %v3638_v45  ;;  %v2430_v52 = vrot.slane %v9177_v0, %v8499_v41  ;;  %v2434_v46 = vrot.slane %v9177_v0, %v8786_v40 }
 0x2a7   : > { %v6261_v20 = vcombine.low %v6253_v10, %v6260_v22  ;;  %v6566_v48 = vrot.slane %v6556_v34, %v8806_v49  ;;  %v6573_v29 = vrot.slane %v6557_v23, %v8806_v49  ;;  %v2438_v8 = vrot.slane %v9177_v0, %v8791_v55 }
 0x2a8   : > { %v9783_v9 = vpop.eup %8199  ;;  %v6580_v16 = vrot.slane %v6558_v35, %v8806_v49  ;;  %v6587_v12 = vrot.slane %v6559_v2, %v8806_v49  ;;  %v2442_v15 = vrot.slane %v9177_v0, %v8794_v42  ;;  %v2446_v24 = vrot.slane %v9177_v0, %v8797_v56 }
 0x2a9   : > { %v9791_v21 = vpop.eup %8201  ;;  %7234 = vperm.xlu1 %7930, %v6261_v20   ;;  %v6588_v43 = vcombine.low %v6566_v48, %v6573_v29  ;;  %v2450_v11 = vrot.slane %v9177_v0, %v8800_v44  ;;  %v2454_v3 = vrot.slane %v9177_v0, %v8803_v1  ;;  %v4743_v28 = vcombine.low %v2426_v53, %v2430_v52 }
 0x2aa   : > { %v7845_v57 = vmul.f32 -1.442695, %v1430_v47  ;;  %v6589_v6 = vcombine.low %v6580_v16, %v6587_v12  ;;  %v4744_v31 = vcombine.low %v2434_v46, %v2438_v8  ;;  %v4745_v10 = vcombine.low %v2442_v15, %v2446_v24  ;;  %v1396_v47 = vpop.xlane.xlu1 %1395 }
 0x2ab   : > { %v7844_v36 = vmul.f32 -1.442695, %v1429_v25  ;;  %v6596_v14 = vrot.slane %v6588_v43, %v8806_v49  ;;  %v4746_v45 = vcombine.low %v2450_v11, %v2454_v3  ;;  %v4753_v22 = vrot.slane %v4743_v28, %v8806_v49  ;;  %v1393_v25 = vpop.xlane.xlu0 %1392 }
 0x2ac   : > { %8203 = vrcp.f32 %v1715_v4  ;;  %v6603_v34 = vrot.slane %v6589_v6, %v8806_v49  ;;  %v4760_v23 = vrot.slane %v4744_v31, %v8806_v49  ;;  %v4767_v35 = vrot.slane %v4745_v10, %v8806_v49 }
 0x2ad   : > { %8205 = vrcp.f32 %v1716_v62  ;;  %v4774_v0 = vrot.slane %v4746_v45, %v8806_v49  ;;  %v2650_v52 = vrot.slane %v9495_v17, %v8493_v39  ;;  %v2654_v4 = vrot.slane %v9495_v17, %v8499_v41 }
 0x2ae   : > { %8207 = vpow2.f32 %v7845_v57  ;;  %v6604_v53 = vcombine.low %v6596_v14, %v6603_v34  ;;  %v4775_v2 = vcombine.low %v4753_v22, %v4760_v23  ;;  %v2658_v20 = vrot.slane %v9495_v17, %v8786_v40 }
 0x2af   : > { %8209 = vpow2.f32 %v7844_v36  ;;  %v4776_v46 = vcombine.low %v4767_v35, %v4774_v0  ;;  %v1462_v48 = vadd.f32 %v8772_v61, %v1396_v47  ;;  %v2662_v29 = vrot.slane %v9495_v17, %v8791_v55 }
 0x2b0   : > { %7255 = vperm.xlu0 %7929, %v6604_v53   ;;  %v4783_v62 = vrot.slane %v4775_v2, %v8806_v49  ;;  %v2666_v8 = vrot.slane %v9495_v17, %v8794_v42  ;;  %v1461_v12 = vadd.f32 %v8772_v61, %v1393_v25  ;;  %v2670_v15 = vrot.slane %v9495_v17, %v8797_v56 }
 0x2b1   : > { %v4790_v16 = vrot.slane %v4776_v46, %v8806_v49  ;;  %v2674_v24 = vrot.slane %v9495_v17, %v8800_v44  ;;  %v2678_v43 = vrot.slane %v9495_v17, %v8803_v1  ;;  %v5086_v11 = vcombine.low %v2650_v52, %v2654_v4 }
 0x2b2   : > { %v5087_v3 = vcombine.low %v2658_v20, %v2662_v29  ;;  %v3450_v28 = vrot.slane %v9219_v13, %v8493_v39  ;;  %v5088_v6 = vcombine.low %v2666_v8, %v2670_v15  ;;  %v3454_v31 = vrot.slane %v9219_v13, %v8499_v41 }
 0x2b3   : > { %v4791_v57 = vcombine.low %v4783_v62, %v4790_v16  ;;  %v3458_v61 = vrot.slane %v9219_v13, %v8786_v40  ;;  %v5089_v10 = vcombine.low %v2674_v24, %v2678_v43  ;;  %v5096_v36 = vrot.slane %v5086_v11, %v8806_v49 }
 0x2b4   : > { %v5103_v14 = vrot.slane %v5087_v3, %v8806_v49  ;;  %v3462_v17 = vrot.slane %v9219_v13, %v8791_v55  ;;  %v5110_v45 = vrot.slane %v5088_v6, %v8806_v49  ;;  %v3466_v22 = vrot.slane %v9219_v13, %v8794_v42 }
 0x2b5   : > { %7144 = vperm.xlu1 %7930, %v4791_v57   ;;  %v3470_v34 = vrot.slane %v9219_v13, %v8797_v56  ;;  %v3474_v23 = vrot.slane %v9219_v13, %v8800_v44  ;;  %v5117_v0 = vrot.slane %v5089_v10, %v8806_v49  ;;  %v3478_v53 = vrot.slane %v9219_v13, %v8803_v1 }
 0x2b6   : > { %v9840_v35 = vpop.eup %8203  ;;  %v5118_v47 = vcombine.low %v5096_v36, %v5103_v14  ;;  %v6311_v2 = vcombine.low %v3450_v28, %v3454_v31  ;;  %v7876_v52 = vmul.f32 -1.442695, %v1461_v12  ;;  %v6312_v46 = vcombine.low %v3458_v61, %v3462_v17 }
 0x2b7   : > { %v9845_v25 = vpop.eup %8205  ;;  %v6313_v4 = vcombine.low %v3466_v22, %v3470_v34  ;;  %v3674_v20 = vrot.slane %v9530_v33, %v8493_v39  ;;  %v5119_v29 = vcombine.low %v5110_v45, %v5117_v0  ;;  %v6314_v16 = vcombine.low %v3474_v23, %v3478_v53 }
 0x2b8   : > { %v9849_v62 = vpop.eup %8207  ;;  %v5126_v8 = vrot.slane %v5118_v47, %v8806_v49  ;;  %v6321_v15 = vrot.slane %v6311_v2, %v8806_v49  ;;  %v6328_v13 = vrot.slane %v6312_v46, %v8806_v49  ;;  %v3678_v12 = vrot.slane %v9530_v33, %v8499_v41 }
 0x2b9   : > { %v8210_v24 = vpop.eup %8209  ;;  %v6335_v43 = vrot.slane %v6313_v4, %v8806_v49  ;;  %v3682_v11 = vrot.slane %v9530_v33, %v8786_v40  ;;  %v5133_v3 = vrot.slane %v5119_v29, %v8806_v49  ;;  %v6342_v28 = vrot.slane %v6314_v16, %v8806_v49 }
 0x2ba   : > { %v3686_v57 = vrot.slane %v9530_v33, %v8791_v55  ;;  %v3690_v6 = vrot.slane %v9530_v33, %v8794_v42  ;;  %v9865_v31 = vmul.f32 -1.442695, %v1462_v48  ;;  %v6343_v61 = vcombine.low %v6321_v15, %v6328_v13 }
 0x2bb   : > { %v3694_v10 = vrot.slane %v9530_v33, %v8797_v56  ;;  %v3698_v36 = vrot.slane %v9530_v33, %v8800_v44  ;;  %v9871_v14 = vadd.f32 1.0, %v8210_v24  ;;  %v5134_v17 = vcombine.low %v5126_v8, %v5133_v3 }
 0x2bc   : > { %v6344_v45 = vcombine.low %v6335_v43, %v6342_v28  ;;  %v3702_v22 = vrot.slane %v9530_v33, %v8803_v1  ;;  %v6351_v34 = vrot.slane %v6343_v61, %v8806_v49  ;;  %v6654_v23 = vcombine.low %v3674_v20, %v3678_v12 }
 0x2bd   : > { %v6655_v0 = vcombine.low %v3682_v11, %v3686_v57  ;;  %v6656_v48 = vcombine.low %v3690_v6, %v3694_v10  ;;  %8211 = vpow2.f32 %v7876_v52  ;;  %7165 = vperm.xlu0 %7929, %v5134_v17   ;;  %v2490_v2 = vrot.slane %v9302_v32, %v8493_v39 }
 0x2be   : > { %v6358_v47 = vrot.slane %v6344_v45, %v8806_v49  ;;  %v6657_v53 = vcombine.low %v3698_v36, %v3702_v22  ;;  %v6664_v46 = vrot.slane %v6654_v23, %v8806_v49  ;;  %v2494_v33 = vrot.slane %v9302_v32, %v8499_v41 }
 0x2bf   : > { %v6671_v4 = vrot.slane %v6655_v0, %v8806_v49  ;;  %v6678_v29 = vrot.slane %v6656_v48, %v8806_v49  ;;  %v2498_v52 = vrot.slane %v9302_v32, %v8786_v40  ;;  %v2502_v16 = vrot.slane %v9302_v32, %v8791_v55 }
 0x2c0   : > { %v6359_v20 = vcombine.low %v6351_v34, %v6358_v47  ;;  %v6685_v8 = vrot.slane %v6657_v53, %v8806_v49  ;;  %v2506_v24 = vrot.slane %v9302_v32, %v8794_v42  ;;  %v2510_v13 = vrot.slane %v9302_v32, %v8797_v56 }
 0x2c1   : > { %v6686_v15 = vcombine.low %v6664_v46, %v6671_v4  ;;  %v2514_v43 = vrot.slane %v9302_v32, %v8800_v44  ;;  %v2518_v11 = vrot.slane %v9302_v32, %v8803_v1  ;;  %v4841_v3 = vcombine.low %v2490_v2, %v2494_v33 }
 0x2c2   : > { %7240 = vperm.xlu1 %7930, %v6359_v20   ;;  %v6687_v12 = vcombine.low %v6678_v29, %v6685_v8  ;;  %v4842_v28 = vcombine.low %v2498_v52, %v2502_v16  ;;  %v4843_v6 = vcombine.low %v2506_v24, %v2510_v13  ;;  %v2714_v61 = vrot.slane %v9577_v27, %v8493_v39 }
 0x2c3   : > { %v6694_v57 = vrot.slane %v6686_v15, %v8806_v49  ;;  %v2718_v10 = vrot.slane %v9577_v27, %v8499_v41  ;;  %v4844_v17 = vcombine.low %v2514_v43, %v2518_v11  ;;  %v4851_v45 = vrot.slane %v4841_v3, %v8806_v49 }
 0x2c4   : > { %v6701_v36 = vrot.slane %v6687_v12, %v8806_v49  ;;  %v4858_v22 = vrot.slane %v4842_v28, %v8806_v49  ;;  %v4865_v32 = vrot.slane %v4843_v6, %v8806_v49  ;;  %v2722_v34 = vrot.slane %v9577_v27, %v8786_v40 }
 0x2c5   : > { %v2726_v23 = vrot.slane %v9577_v27, %v8791_v55  ;;  %v2730_v0 = vrot.slane %v9577_v27, %v8794_v42  ;;  %v4872_v47 = vrot.slane %v4844_v17, %v8806_v49  ;;  %v2734_v2 = vrot.slane %v9577_v27, %v8797_v56 }
 0x2c6   : > { %v6702_v48 = vcombine.low %v6694_v57, %v6701_v36  ;;  %v4873_v53 = vcombine.low %v4851_v45, %v4858_v22  ;;  %v2738_v46 = vrot.slane %v9577_v27, %v8800_v44  ;;  %v2742_v4 = vrot.slane %v9577_v27, %v8803_v1 }
 0x2c7   : > { %v5184_v29 = vcombine.low %v2714_v61, %v2718_v10  ;;  %v5185_v33 = vcombine.low %v2722_v34, %v2726_v23  ;;  %v9919_v20 = vpop.eup %8211  ;;  %v4874_v8 = vcombine.low %v4865_v32, %v4872_v47  ;;  %v5186_v16 = vcombine.low %v2730_v0, %v2734_v2 }
 0x2c8   : > { %7261 = vperm.xlu0 %7929, %v6702_v48   ;;  %v4881_v52 = vrot.slane %v4873_v53, %v8806_v49  ;;  %v3514_v15 = vrot.slane %v9319_v59, %v8493_v39  ;;  %v5187_v24 = vcombine.low %v2738_v46, %v2742_v4  ;;  %v3518_v27 = vrot.slane %v9319_v59, %v8499_v41 }
 0x2c9   : > { %v5194_v13 = vrot.slane %v5184_v29, %v8806_v49  ;;  %v5201_v43 = vrot.slane %v5185_v33, %v8806_v49  ;;  %v4888_v12 = vrot.slane %v4874_v8, %v8806_v49  ;;  %v5208_v11 = vrot.slane %v5186_v16, %v8806_v49 }
 0x2ca   : > { %v3522_v3 = vrot.slane %v9319_v59, %v8786_v40  ;;  %v3526_v28 = vrot.slane %v9319_v59, %v8791_v55  ;;  %v5215_v57 = vrot.slane %v5187_v24, %v8806_v49  ;;  %v3530_v61 = vrot.slane %v9319_v59, %v8794_v42 }
 0x2cb   : > { %v5216_v6 = vcombine.low %v5194_v13, %v5201_v43  ;;  %v3534_v10 = vrot.slane %v9319_v59, %v8797_v56  ;;  %v4889_v36 = vcombine.low %v4881_v52, %v4888_v12  ;;  %v3538_v17 = vrot.slane %v9319_v59, %v8800_v44 }
 0x2cc   : > { %v3542_v45 = vrot.slane %v9319_v59, %v8803_v1  ;;  %v6409_v22 = vcombine.low %v3514_v15, %v3518_v27  ;;  %v5217_v32 = vcombine.low %v5208_v11, %v5215_v57  ;;  %v6410_v23 = vcombine.low %v3522_v3, %v3526_v28 }
 0x2cd   : > { %v5224_v34 = vrot.slane %v5216_v6, %v8806_v49  ;;  %v6411_v0 = vcombine.low %v3530_v61, %v3534_v10  ;;  %7150 = vperm.xlu1 %7930, %v4889_v36   ;;  %v3738_v53 = vrot.slane %v9607_v54, %v8493_v39  ;;  %v3742_v2 = vrot.slane %v9607_v54, %v8499_v41 }
 0x2ce   : > { %v6412_v48 = vcombine.low %v3538_v17, %v3542_v45  ;;  %v6419_v47 = vrot.slane %v6409_v22, %v8806_v49  ;;  %v5231_v46 = vrot.slane %v5217_v32, %v8806_v49  ;;  %v6426_v59 = vrot.slane %v6410_v23, %v8806_v49 }
 0x2cf   : > { %v6433_v4 = vrot.slane %v6411_v0, %v8806_v49  ;;  %v3746_v29 = vrot.slane %v9607_v54, %v8786_v40  ;;  %v3750_v8 = vrot.slane %v9607_v54, %v8791_v55  ;;  %v3754_v52 = vrot.slane %v9607_v54, %v8794_v42 }
 0x2d0   : > { %v6440_v33 = vrot.slane %v6412_v48, %v8806_v49  ;;  %v3758_v16 = vrot.slane %v9607_v54, %v8797_v56  ;;  %v5232_v15 = vcombine.low %v5224_v34, %v5231_v46  ;;  %v6441_v24 = vcombine.low %v6419_v47, %v6426_v59 }
 0x2d1   : > { %v3762_v13 = vrot.slane %v9607_v54, %v8800_v44  ;;  %v3766_v43 = vrot.slane %v9607_v54, %v8803_v1  ;;  %v6752_v12 = vcombine.low %v3738_v53, %v3742_v2  ;;  %v6753_v11 = vcombine.low %v3746_v29, %v3750_v8 }
 0x2d2   : > { %v6442_v27 = vcombine.low %v6433_v4, %v6440_v33  ;;  %v6754_v3 = vcombine.low %v3754_v52, %v3758_v16  ;;  %7171 = vperm.xlu0 %7929, %v5232_v15   ;;  %v6449_v28 = vrot.slane %v6441_v24, %v8806_v49  ;;  %v2554_v6 = vrot.slane %v9373_v30, %v8493_v39 }
 0x2d3   : > { %v6755_v57 = vcombine.low %v3762_v13, %v3766_v43  ;;  %v2558_v61 = vrot.slane %v9373_v30, %v8499_v41  ;;  %v6762_v36 = vrot.slane %v6752_v12, %v8806_v49  ;;  %v6769_v54 = vrot.slane %v6753_v11, %v8806_v49 }
 0x2d4   : > { %v6456_v10 = vrot.slane %v6442_v27, %v8806_v49  ;;  %v6776_v17 = vrot.slane %v6754_v3, %v8806_v49  ;;  %v2562_v22 = vrot.slane %v9373_v30, %v8786_v40  ;;  %v2566_v32 = vrot.slane %v9373_v30, %v8791_v55 }
 0x2d5   : > { %v6783_v45 = vrot.slane %v6755_v57, %v8806_v49  ;;  %v2570_v34 = vrot.slane %v9373_v30, %v8794_v42  ;;  %v6784_v0 = vcombine.low %v6762_v36, %v6769_v54  ;;  %v2574_v48 = vrot.slane %v9373_v30, %v8797_v56 }
 0x2d6   : > { %v6457_v23 = vcombine.low %v6449_v28, %v6456_v10  ;;  %v2578_v47 = vrot.slane %v9373_v30, %v8800_v44  ;;  %v2582_v2 = vrot.slane %v9373_v30, %v8803_v1  ;;  %v4939_v46 = vcombine.low %v2554_v6, %v2558_v61 }
 0x2d7   : > { %v6785_v53 = vcombine.low %v6776_v17, %v6783_v45  ;;  %v4940_v59 = vcombine.low %v2562_v22, %v2566_v32  ;;  %v6792_v4 = vrot.slane %v6784_v0, %v8806_v49  ;;  %v4941_v29 = vcombine.low %v2570_v34, %v2574_v48 }
 0x2d8   : > { %7246 = vperm.xlu1 %7930, %v6457_v23   ;;  %v3578_v33 = vrot.slane %v9432_v19, %v8493_v39  ;;  %v3582_v8 = vrot.slane %v9432_v19, %v8499_v41  ;;  %v4942_v16 = vcombine.low %v2578_v47, %v2582_v2  ;;  %v4949_v15 = vrot.slane %v4939_v46, %v8806_v49 }
 0x2d9   : > { %v6799_v52 = vrot.slane %v6785_v53, %v8806_v49  ;;  %v4956_v24 = vrot.slane %v4940_v59, %v8806_v49  ;;  %v4963_v30 = vrot.slane %v4941_v29, %v8806_v49  ;;  %v3586_v13 = vrot.slane %v9432_v19, %v8786_v40 }
 0x2da   : > { %v3590_v43 = vrot.slane %v9432_v19, %v8791_v55  ;;  %v3594_v27 = vrot.slane %v9432_v19, %v8794_v42  ;;  %v4970_v11 = vrot.slane %v4942_v16, %v8806_v49  ;;  %v3598_v28 = vrot.slane %v9432_v19, %v8797_v56 }
 0x2db   : > { %v6800_v12 = vcombine.low %v6792_v4, %v6799_v52  ;;  %v4971_v3 = vcombine.low %v4949_v15, %v4956_v24  ;;  %v3602_v57 = vrot.slane %v9432_v19, %v8800_v44  ;;  %v3606_v6 = vrot.slane %v9432_v19, %v8803_v1 }
 0x2dc   : > { %v6507_v61 = vcombine.low %v3578_v33, %v3582_v8  ;;  %v6508_v10 = vcombine.low %v3586_v13, %v3590_v43  ;;  %v4972_v36 = vcombine.low %v4963_v30, %v4970_v11  ;;  %v6509_v17 = vcombine.low %v3594_v27, %v3598_v28 }
 0x2dd   : > { %7267 = vperm.xlu0 %7929, %v6800_v12   ;;  %v4979_v54 = vrot.slane %v4971_v3, %v8806_v49  ;;  %v3770_v45 = vrot.slane %v9686_v51, %v8493_v39  ;;  %v6510_v22 = vcombine.low %v3602_v57, %v3606_v6  ;;  %v3774_v23 = vrot.slane %v9686_v51, %v8499_v41 }
 0x2de   : > { %v6517_v32 = vrot.slane %v6507_v61, %v8806_v49  ;;  %v6524_v34 = vrot.slane %v6508_v10, %v8806_v49  ;;  %v4986_v19 = vrot.slane %v4972_v36, %v8806_v49  ;;  %v6531_v0 = vrot.slane %v6509_v17, %v8806_v49 }
 0x2df   : > { %v3778_v48 = vrot.slane %v9686_v51, %v8786_v40  ;;  %v3782_v47 = vrot.slane %v9686_v51, %v8791_v55  ;;  %v6538_v53 = vrot.slane %v6510_v22, %v8806_v49  ;;  %v3786_v46 = vrot.slane %v9686_v51, %v8794_v42 }
 0x2e0   : > { %v6539_v2 = vcombine.low %v6517_v32, %v6524_v34  ;;  %v3790_v59 = vrot.slane %v9686_v51, %v8797_v56  ;;  %v4987_v4 = vcombine.low %v4979_v54, %v4986_v19  ;;  %v3794_v29 = vrot.slane %v9686_v51, %v8800_v44 }
 0x2e1   : > { %v3798_v33 = vrot.slane %v9686_v51, %v8803_v1  ;;  %v6801_v8 = vcombine.low %v3770_v45, %v3774_v23  ;;  %v6540_v52 = vcombine.low %v6531_v0, %v6538_v53  ;;  %v6802_v15 = vcombine.low %v3778_v48, %v3782_v47 }
 0x2e2   : > { %v6547_v16 = vrot.slane %v6539_v2, %v8806_v49  ;;  %v6803_v24 = vcombine.low %v3786_v46, %v3790_v59  ;;  %7156 = vperm.xlu1 %7930, %v4987_v4   ;;  %v2618_v43 = vrot.slane %v9453_v60, %v8493_v39  ;;  %v2622_v27 = vrot.slane %v9453_v60, %v8499_v41 }
 0x2e3   : > { %v6804_v30 = vcombine.low %v3794_v29, %v3798_v33  ;;  %v6811_v13 = vrot.slane %v6801_v8, %v8806_v49  ;;  %v6554_v12 = vrot.slane %v6540_v52, %v8806_v49  ;;  %v6818_v51 = vrot.slane %v6802_v15, %v8806_v49 }
 0x2e4   : > { %v6825_v11 = vrot.slane %v6803_v24, %v8806_v49  ;;  %v2626_v3 = vrot.slane %v9453_v60, %v8786_v40  ;;  %v2630_v57 = vrot.slane %v9453_v60, %v8791_v55  ;;  %v2634_v6 = vrot.slane %v9453_v60, %v8794_v42 }
 0x2e5   : > { %v6832_v28 = vrot.slane %v6804_v30, %v8806_v49  ;;  %v2638_v61 = vrot.slane %v9453_v60, %v8797_v56  ;;  %v6555_v10 = vcombine.low %v6547_v16, %v6554_v12  ;;  %v6833_v36 = vcombine.low %v6811_v13, %v6818_v51 }
 0x2e6   : > { %v2642_v54 = vrot.slane %v9453_v60, %v8800_v44  ;;  %v2646_v17 = vrot.slane %v9453_v60, %v8803_v1  ;;  %v5037_v22 = vcombine.low %v2618_v43, %v2622_v27  ;;  %v5038_v32 = vcombine.low %v2626_v3, %v2630_v57 }
 0x2e7   : > { %v6834_v45 = vcombine.low %v6825_v11, %v6832_v28  ;;  %v5039_v34 = vcombine.low %v2634_v6, %v2638_v61  ;;  %7252 = vperm.xlu1 %7930, %v6555_v10   ;;  %v6841_v23 = vrot.slane %v6833_v36, %v8806_v49  ;;  %v2778_v0 = vrot.slane %v9656_v50, %v8493_v39 }
 0x2e8   : > { %v5040_v19 = vcombine.low %v2642_v54, %v2646_v17  ;;  %v2782_v48 = vrot.slane %v9656_v50, %v8499_v41  ;;  %v5047_v53 = vrot.slane %v5037_v22, %v8806_v49  ;;  %v5054_v60 = vrot.slane %v5038_v32, %v8806_v49 }
 0x2e9   : > { %v6848_v47 = vrot.slane %v6834_v45, %v8806_v49  ;;  %v5061_v2 = vrot.slane %v5039_v34, %v8806_v49  ;;  %v2786_v59 = vrot.slane %v9656_v50, %v8786_v40  ;;  %v2790_v4 = vrot.slane %v9656_v50, %v8791_v55 }
 0x2ea   : > { %v5068_v46 = vrot.slane %v5040_v19, %v8806_v49  ;;  %v2794_v29 = vrot.slane %v9656_v50, %v8794_v42  ;;  %v5069_v8 = vcombine.low %v5047_v53, %v5054_v60  ;;  %v2798_v52 = vrot.slane %v9656_v50, %v8797_v56 }
 0x2eb   : > { %v6849_v33 = vcombine.low %v6841_v23, %v6848_v47  ;;  %v2802_v16 = vrot.slane %v9656_v50, %v8800_v44  ;;  %v2806_v24 = vrot.slane %v9656_v50, %v8803_v1  ;;  %v5282_v30 = vcombine.low %v2778_v0, %v2782_v48 }
 0x2ec   : > { %v5070_v15 = vcombine.low %v5061_v2, %v5068_v46  ;;  %v5283_v13 = vcombine.low %v2786_v59, %v2790_v4  ;;  %v5077_v43 = vrot.slane %v5069_v8, %v8806_v49  ;;  %v5284_v27 = vcombine.low %v2794_v29, %v2798_v52  ;;  %v10104_v59 = vpop.permute.xlu1 %7192 }
 0x2ed   : > { %7270 = vperm.xlu0 %7929, %v6849_v33   ;;  %v3642_v12 = vrot.slane %v9504_v26, %v8493_v39  ;;  %v3646_v51 = vrot.slane %v9504_v26, %v8499_v41  ;;  %v5285_v3 = vcombine.low %v2802_v16, %v2806_v24  ;;  %v5292_v28 = vrot.slane %v5282_v30, %v8806_v49 }
 0x2ee   : > { %v5084_v11 = vrot.slane %v5070_v15, %v8806_v49  ;;  %v5299_v57 = vrot.slane %v5283_v13, %v8806_v49  ;;  %v5306_v50 = vrot.slane %v5284_v27, %v8806_v49  ;;  %v3650_v6 = vrot.slane %v9504_v26, %v8786_v40 }
 0x2ef   : > { %v3654_v61 = vrot.slane %v9504_v26, %v8791_v55  ;;  %v3658_v10 = vrot.slane %v9504_v26, %v8794_v42  ;;  %v5313_v54 = vrot.slane %v5285_v3, %v8806_v49  ;;  %v3662_v45 = vrot.slane %v9504_v26, %v8797_v56 }
 0x2f0   : > { %v5085_v36 = vcombine.low %v5077_v43, %v5084_v11  ;;  %v5314_v17 = vcombine.low %v5292_v28, %v5299_v57  ;;  %v3666_v22 = vrot.slane %v9504_v26, %v8800_v44  ;;  %v3670_v32 = vrot.slane %v9504_v26, %v8803_v1 }
 0x2f1   : > { %v6605_v34 = vcombine.low %v3642_v12, %v3646_v51  ;;  %v6606_v23 = vcombine.low %v3650_v6, %v3654_v61  ;;  %v5315_v19 = vcombine.low %v5306_v50, %v5313_v54  ;;  %v6607_v48 = vcombine.low %v3658_v10, %v3662_v45 }
 0x2f2   : > { %7162 = vperm.xlu1 %7930, %v5085_v36   ;;  %v5322_v0 = vrot.slane %v5314_v17, %v8806_v49  ;;  %v3802_v47 = vrot.slane %v9747_v18, %v8493_v39  ;;  %v6608_v53 = vcombine.low %v3666_v22, %v3670_v32  ;;  %v3806_v46 = vrot.slane %v9747_v18, %v8499_v41  ;;  %v10132_v36 = vpop.permute.xlu1 %7099 }
 0x2f3   : > { %v6615_v60 = vrot.slane %v6605_v34, %v8806_v49  ;;  %v6622_v2 = vrot.slane %v6606_v23, %v8806_v49  ;;  %v5329_v26 = vrot.slane %v5315_v19, %v8806_v49  ;;  %v6629_v4 = vrot.slane %v6607_v48, %v8806_v49 }
 0x2f4   : > { %v3810_v29 = vrot.slane %v9747_v18, %v8786_v40  ;;  %v3814_v33 = vrot.slane %v9747_v18, %v8791_v55  ;;  %v6636_v8 = vrot.slane %v6608_v53, %v8806_v49  ;;  %v3818_v16 = vrot.slane %v9747_v18, %v8794_v42 }
 0x2f5   : > { %v6637_v52 = vcombine.low %v6615_v60, %v6622_v2  ;;  %v3822_v15 = vrot.slane %v9747_v18, %v8797_v56  ;;  %v5330_v24 = vcombine.low %v5322_v0, %v5329_v26  ;;  %v3826_v30 = vrot.slane %v9747_v18, %v8800_v44 }
 0x2f6   : > { %v3830_v13 = vrot.slane %v9747_v18, %v8803_v1  ;;  %v6850_v43 = vcombine.low %v3802_v47, %v3806_v46  ;;  %v6638_v27 = vcombine.low %v6629_v4, %v6636_v8  ;;  %v6851_v51 = vcombine.low %v3810_v29, %v3814_v33 }
 0x2f7   : > { %v6645_v12 = vrot.slane %v6637_v52, %v8806_v49  ;;  %v6852_v11 = vcombine.low %v3818_v16, %v3822_v15  ;;  %7177 = vperm.xlu0 %7929, %v5330_v24   ;;  %v2682_v57 = vrot.slane %v9550_v7, %v8493_v39  ;;  %v2686_v50 = vrot.slane %v9550_v7, %v8499_v41  ;;  %v10161_v24 = vpop.permute.xlu1 %7102 }
 0x2f8   : > { %v6853_v3 = vcombine.low %v3826_v30, %v3830_v13  ;;  %v6860_v28 = vrot.slane %v6850_v43, %v8806_v49  ;;  %v6652_v6 = vrot.slane %v6638_v27, %v8806_v49  ;;  %v6867_v18 = vrot.slane %v6851_v51, %v8806_v49 }
 0x2f9   : > { %v6874_v61 = vrot.slane %v6852_v11, %v8806_v49  ;;  %v2690_v10 = vrot.slane %v9550_v7, %v8786_v40  ;;  %v2694_v17 = vrot.slane %v9550_v7, %v8791_v55  ;;  %v2698_v45 = vrot.slane %v9550_v7, %v8794_v42 }
 0x2fa   : > { %v6881_v54 = vrot.slane %v6853_v3, %v8806_v49  ;;  %v2702_v22 = vrot.slane %v9550_v7, %v8797_v56  ;;  %v6653_v32 = vcombine.low %v6645_v12, %v6652_v6  ;;  %v6882_v34 = vcombine.low %v6860_v28, %v6867_v18 }
 0x2fb   : > { %v2706_v23 = vrot.slane %v9550_v7, %v8800_v44  ;;  %v2710_v19 = vrot.slane %v9550_v7, %v8803_v1  ;;  %v5135_v48 = vcombine.low %v2682_v57, %v2686_v50  ;;  %v5136_v47 = vcombine.low %v2690_v10, %v2694_v17 }
 0x2fc   : > { %v6883_v0 = vcombine.low %v6874_v61, %v6881_v54  ;;  %v5137_v53 = vcombine.low %v2698_v45, %v2702_v22  ;;  %7258 = vperm.xlu1 %7930, %v6653_v32   ;;  %v6890_v60 = vrot.slane %v6882_v34, %v8806_v49  ;;  %v3834_v46 = vrot.slane %v9840_v35, %v8493_v39 }
 0x2fd   : > { %v5138_v2 = vcombine.low %v2706_v23, %v2710_v19  ;;  %v3838_v26 = vrot.slane %v9840_v35, %v8499_v41  ;;  %v5145_v29 = vrot.slane %v5135_v48, %v8806_v49  ;;  %v5152_v7 = vrot.slane %v5136_v47, %v8806_v49 }
 0x2fe   : > { %v6897_v4 = vrot.slane %v6883_v0, %v8806_v49  ;;  %v5159_v33 = vrot.slane %v5137_v53, %v8806_v49  ;;  %v3842_v52 = vrot.slane %v9840_v35, %v8786_v40  ;;  %v3846_v16 = vrot.slane %v9840_v35, %v8791_v55  ;;  %v10187_v0 = vpop.permute.xlu1 %7198 }
 0x2ff   : > { %v5166_v8 = vrot.slane %v5138_v2, %v8806_v49  ;;  %v3850_v15 = vrot.slane %v9840_v35, %v8794_v42  ;;  %v5167_v13 = vcombine.low %v5145_v29, %v5152_v7  ;;  %v3854_v43 = vrot.slane %v9840_v35, %v8797_v56 }
 0x300   : > { %v6898_v30 = vcombine.low %v6890_v60, %v6897_v4  ;;  %v3858_v27 = vrot.slane %v9840_v35, %v8800_v44  ;;  %v3862_v51 = vrot.slane %v9840_v35, %v8803_v1  ;;  %v6899_v11 = vcombine.low %v3834_v46, %v3838_v26 }
 0x301   : > { %v5168_v12 = vcombine.low %v5159_v33, %v5166_v8  ;;  %v6900_v3 = vcombine.low %v3842_v52, %v3846_v16  ;;  %v5175_v28 = vrot.slane %v5167_v13, %v8806_v49  ;;  %v6901_v57 = vcombine.low %v3850_v15, %v3854_v43 }
 0x302   : > { %7273 = vperm.xlu0 %7929, %v6898_v30   ;;  %v3706_v50 = vrot.slane %v9601_v58, %v8493_v39  ;;  %v3710_v6 = vrot.slane %v9601_v58, %v8499_v41  ;;  %v6902_v61 = vcombine.low %v3858_v27, %v3862_v51  ;;  %v6909_v10 = vrot.slane %v6899_v11, %v8806_v49 }
 0x303   : > { %v5182_v18 = vrot.slane %v5168_v12, %v8806_v49  ;;  %v6916_v54 = vrot.slane %v6900_v3, %v8806_v49  ;;  %v6923_v35 = vrot.slane %v6901_v57, %v8806_v49  ;;  %v3714_v17 = vrot.slane %v9601_v58, %v8786_v40 }
 0x304   : > { %v3718_v45 = vrot.slane %v9601_v58, %v8791_v55  ;;  %v3722_v22 = vrot.slane %v9601_v58, %v8794_v42  ;;  %v6930_v34 = vrot.slane %v6902_v61, %v8806_v49  ;;  %v3726_v19 = vrot.slane %v9601_v58, %v8797_v56 }
 0x305   : > { %v5183_v32 = vcombine.low %v5175_v28, %v5182_v18  ;;  %v6931_v23 = vcombine.low %v6909_v10, %v6916_v54  ;;  %v3730_v48 = vrot.slane %v9601_v58, %v8800_v44  ;;  %v3734_v47 = vrot.slane %v9601_v58, %v8803_v1  ;;  %v10215_v28 = vpop.permute.xlu1 %7105 }
 0x306   : > { %v6703_v53 = vcombine.low %v3706_v50, %v3710_v6  ;;  %v6704_v60 = vcombine.low %v3714_v17, %v3718_v45  ;;  %v6932_v2 = vcombine.low %v6923_v35, %v6930_v34  ;;  %v6705_v26 = vcombine.low %v3722_v22, %v3726_v19 }
 0x307   : > { %7168 = vperm.xlu1 %7930, %v5183_v32   ;;  %v6939_v46 = vrot.slane %v6931_v23, %v8806_v49  ;;  %v2842_v4 = vrot.slane %v9791_v21, %v8493_v39  ;;  %v6706_v29 = vcombine.low %v3730_v48, %v3734_v47  ;;  %v2846_v8 = vrot.slane %v9791_v21, %v8499_v41 }
 0x308   : > { %v6713_v7 = vrot.slane %v6703_v53, %v8806_v49  ;;  %v6720_v33 = vrot.slane %v6704_v60, %v8806_v49  ;;  %v6946_v58 = vrot.slane %v6932_v2, %v8806_v49  ;;  %v6727_v52 = vrot.slane %v6705_v26, %v8806_v49 }
 0x309   : > { %v2850_v16 = vrot.slane %v9791_v21, %v8786_v40  ;;  %v2854_v15 = vrot.slane %v9791_v21, %v8791_v55  ;;  %v6734_v30 = vrot.slane %v6706_v29, %v8806_v49  ;;  %v2858_v43 = vrot.slane %v9791_v21, %v8794_v42  ;;  %v10241_v2 = vpop.permute.xlu1 %7108 }
 0x30a   : > { %v6735_v13 = vcombine.low %v6713_v7, %v6720_v33  ;;  %v2862_v27 = vrot.slane %v9791_v21, %v8797_v56  ;;  %v6947_v12 = vcombine.low %v6939_v46, %v6946_v58  ;;  %v2866_v51 = vrot.slane %v9791_v21, %v8800_v44 }
 0x30b   : > { %v2870_v11 = vrot.slane %v9791_v21, %v8803_v1  ;;  %v5380_v3 = vcombine.low %v2842_v4, %v2846_v8  ;;  %v6736_v57 = vcombine.low %v6727_v52, %v6734_v30  ;;  %v5381_v6 = vcombine.low %v2850_v16, %v2854_v15 }
 0x30c   : > { %v6743_v50 = vrot.slane %v6735_v13, %v8806_v49  ;;  %v5382_v18 = vcombine.low %v2858_v43, %v2862_v27  ;;  %v1717_v61 = vadd.f32 1.0, %v9919_v20  ;;  %7276 = vperm.xlu0 %7929, %v6947_v12   ;;  %v2746_v35 = vrot.slane %v9614_v5, %v8493_v39 }
 0x30d   : > { %v5383_v10 = vcombine.low %v2866_v51, %v2870_v11  ;;  %v5390_v54 = vrot.slane %v5380_v3, %v8806_v49  ;;  %v6750_v17 = vrot.slane %v6736_v57, %v8806_v49  ;;  %v5397_v21 = vrot.slane %v5381_v6, %v8806_v49 }
 0x30e   : > { %v5404_v45 = vrot.slane %v5382_v18, %v8806_v49  ;;  %v2750_v22 = vrot.slane %v9614_v5, %v8499_v41  ;;  %8213 = vpow2.f32 %v9865_v31  ;;  %v2754_v32 = vrot.slane %v9614_v5, %v8786_v40 }
 0x30f   : > { %v5411_v20 = vrot.slane %v5383_v10, %v8806_v49  ;;  %v2758_v34 = vrot.slane %v9614_v5, %v8791_v55  ;;  %v6751_v23 = vcombine.low %v6743_v50, %v6750_v17  ;;  %v5412_v19 = vcombine.low %v5390_v54, %v5397_v21 }
 0x310   : > { %v2762_v48 = vrot.slane %v9614_v5, %v8794_v42  ;;  %v2766_v47 = vrot.slane %v9614_v5, %v8797_v56  ;;  %8215 = vrcp.f32 %v1717_v61  ;;  %v2770_v31 = vrot.slane %v9614_v5, %v8800_v44  ;;  %v10266_v61 = vpop.permute.xlu1 %7204 }
 0x311   : > { %v5413_v53 = vcombine.low %v5404_v45, %v5411_v20  ;;  %v2774_v60 = vrot.slane %v9614_v5, %v8803_v1  ;;  %7264 = vperm.xlu1 %7930, %v6751_v23   ;;  %v5420_v46 = vrot.slane %v5412_v19, %v8806_v49  ;;  %v5233_v26 = vcombine.low %v2746_v35, %v2750_v22 }
 0x312   : > { %v5234_v4 = vcombine.low %v2754_v32, %v2758_v34  ;;  %v5235_v29 = vcombine.low %v2762_v48, %v2766_v47  ;;  %v3866_v8 = vrot.slane %v9845_v25, %v8493_v39  ;;  %v3870_v58 = vrot.slane %v9845_v25, %v8499_v41 }
 0x313   : > { %v5427_v7 = vrot.slane %v5413_v53, %v8806_v49  ;;  %v5236_v33 = vcombine.low %v2770_v31, %v2774_v60  ;;  %v5243_v52 = vrot.slane %v5233_v26, %v8806_v49  ;;  %v3874_v15 = vrot.slane %v9845_v25, %v8786_v40 }
 0x314   : > { %v5250_v5 = vrot.slane %v5234_v4, %v8806_v49  ;;  %v5257_v16 = vrot.slane %v5235_v29, %v8806_v49  ;;  %v3878_v43 = vrot.slane %v9845_v25, %v8791_v55  ;;  %v3882_v27 = vrot.slane %v9845_v25, %v8794_v42  ;;  %v10293_v4 = vpop.permute.xlu1 %7111 }
 0x315   : > { %v5428_v30 = vcombine.low %v5420_v46, %v5427_v7  ;;  %v5264_v13 = vrot.slane %v5236_v33, %v8806_v49  ;;  %v3886_v51 = vrot.slane %v9845_v25, %v8797_v56  ;;  %v3890_v11 = vrot.slane %v9845_v25, %v8800_v44 }
 0x316   : > { %v5265_v12 = vcombine.low %v5243_v52, %v5250_v5  ;;  %v3894_v3 = vrot.slane %v9845_v25, %v8803_v1  ;;  %v1686_v57 = vadd.f32 1.0, %v9849_v62  ;;  %v6948_v6 = vcombine.low %v3866_v8, %v3870_v58 }
 0x317   : > { %7183 = vperm.xlu0 %7929, %v5428_v30   ;;  %v5266_v50 = vcombine.low %v5257_v16, %v5264_v13  ;;  %v6949_v18 = vcombine.low %v3874_v15, %v3878_v43  ;;  %8217 = vrcp.f32 %v9871_v14  ;;  %v6950_v54 = vcombine.low %v3882_v27, %v3886_v51 }
 0x318   : > { %v5273_v10 = vrot.slane %v5265_v12, %v8806_v49  ;;  %v6951_v35 = vcombine.low %v3890_v11, %v3894_v3  ;;  %v8214_v17 = vpop.eup %8213  ;;  %v6958_v45 = vrot.slane %v6948_v6, %v8806_v49  ;;  %v1702_v62 = vadd.f32 1.0, %v9133_v63 }
 0x319   : > { %v5280_v21 = vrot.slane %v5266_v50, %v8806_v49  ;;  %v6965_v25 = vrot.slane %v6949_v18, %v8806_v49  ;;  %v6972_v22 = vrot.slane %v6950_v54, %v8806_v49  ;;  %v2810_v14 = vrot.slane %v9783_v9, %v8493_v39 }
 0x31a   : > { %v6979_v20 = vrot.slane %v6951_v35, %v8806_v49  ;;  %v8216_v32 = vpop.eup %8215  ;;  %v2814_v19 = vrot.slane %v9783_v9, %v8499_v41  ;;  %v2818_v48 = vrot.slane %v9783_v9, %v8786_v40  ;;  %8219 = vrcp.f32 %v1686_v57  ;;  %v10308_v35 = vpop.permute.xlu1 %7114 }
 0x31b   : > { %v5281_v34 = vcombine.low %v5273_v10, %v5280_v21  ;;  %v6980_v23 = vcombine.low %v6958_v45, %v6965_v25  ;;  %v2822_v63 = vrot.slane %v9783_v9, %v8791_v55  ;;  %v2826_v53 = vrot.slane %v9783_v9, %v8794_v42 }
 0x31c   : > { %v6981_v47 = vcombine.low %v6972_v22, %v6979_v20  ;;  %v2830_v60 = vrot.slane %v9783_v9, %v8797_v56  ;;  %v2834_v46 = vrot.slane %v9783_v9, %v8800_v44  ;;  %v2838_v26 = vrot.slane %v9783_v9, %v8803_v1 }
 0x31d   : > { %7174 = vperm.xlu1 %7930, %v5281_v34   ;;  %v6988_v31 = vrot.slane %v6980_v23, %v8806_v49  ;;  %v1718_v29 = vadd.f32 1.0, %v8214_v17  ;;  %v5331_v33 = vcombine.low %v2810_v14, %v2814_v19  ;;  %v5332_v8 = vcombine.low %v2818_v48, %v2822_v63 }
 0x31e   : > { %v6995_v7 = vrot.slane %v6981_v47, %v8806_v49  ;;  %v5333_v58 = vcombine.low %v2826_v53, %v2830_v60  ;;  %v5334_v52 = vcombine.low %v2834_v46, %v2838_v26  ;;  %v3898_v5 = vrot.slane %v8216_v32, %v8493_v39 }
 0x31f   : > { %v3902_v16 = vrot.slane %v8216_v32, %v8499_v41  ;;  %v5341_v30 = vrot.slane %v5331_v33, %v8806_v49  ;;  %v5348_v13 = vrot.slane %v5332_v8, %v8806_v49  ;;  %v3906_v9 = vrot.slane %v8216_v32, %v8786_v40 }
 0x320   : > { %v6996_v15 = vcombine.low %v6988_v31, %v6995_v7  ;;  %v5355_v43 = vrot.slane %v5333_v58, %v8806_v49  ;;  %v5362_v27 = vrot.slane %v5334_v52, %v8806_v49  ;;  %v3910_v12 = vrot.slane %v8216_v32, %v8791_v55  ;;  %v10328_v52 = vpop.permute.xlu1 %7210 }
 0x321   : > { %v3914_v51 = vrot.slane %v8216_v32, %v8794_v42  ;;  %v8218_v11 = vpop.eup %8217  ;;  %v5363_v3 = vcombine.low %v5341_v30, %v5348_v13  ;;  %v3918_v57 = vrot.slane %v8216_v32, %v8797_v56  ;;  %v3922_v50 = vrot.slane %v8216_v32, %v8800_v44 }
 0x322   : > { %7279 = vperm.xlu0 %7929, %v6996_v15   ;;  %v3926_v6 = vrot.slane %v8216_v32, %v8803_v1  ;;  %8221 = vrcp.f32 %v1702_v62  ;;  %v5364_v18 = vcombine.low %v5355_v43, %v5362_v27  ;;  %v6997_v10 = vcombine.low %v3898_v5, %v3902_v16  ;;  %v10315_v62 = vpop.permute.xlu0 %7096 }
 0x323   : > { %v6998_v54 = vcombine.low %v3906_v9, %v3910_v12  ;;  %8223 = vrcp.f32 %v1718_v29  ;;  %v5371_v17 = vrot.slane %v5363_v3, %v8806_v49  ;;  %v6999_v21 = vcombine.low %v3914_v51, %v3918_v57 }
 0x324   : > { %v7000_v45 = vcombine.low %v3922_v50, %v3926_v6  ;;  %v5378_v25 = vrot.slane %v5364_v18, %v8806_v49  ;;  %v7007_v22 = vrot.slane %v6997_v10, %v8806_v49  ;;  %v2874_v14 = vrot.slane %v8218_v11, %v8493_v39  ;;  %v8220_v32 = vpop.eup %8219 }
 0x325   : > { %v7014_v20 = vrot.slane %v6998_v54, %v8806_v49  ;;  %v7021_v34 = vrot.slane %v6999_v21, %v8806_v49  ;;  %v2878_v19 = vrot.slane %v8218_v11, %v8499_v41  ;;  %v2882_v48 = vrot.slane %v8218_v11, %v8786_v40 }
 0x326   : > { %v7028_v23 = vrot.slane %v7000_v45, %v8806_v49  ;;  %v5379_v47 = vcombine.low %v5371_v17, %v5378_v25  ;;  %v2886_v53 = vrot.slane %v8218_v11, %v8791_v55  ;;  %v2890_v31 = vrot.slane %v8218_v11, %v8794_v42  ;;  %v10336_v12 = vpop.permute.xlu0 %7195 }
 0x327   : > { %v7029_v63 = vcombine.low %v7007_v22, %v7014_v20  ;;  %v2894_v46 = vrot.slane %v8218_v11, %v8797_v56  ;;  %v2898_v26 = vrot.slane %v8218_v11, %v8800_v44  ;;  %v2902_v29 = vrot.slane %v8218_v11, %v8803_v1 }
 0x328   : > { %v7030_v60 = vcombine.low %v7021_v34, %v7028_v23  ;;  %7180 = vperm.xlu1 %7930, %v5379_v47   ;;  %v5429_v33 = vcombine.low %v2874_v14, %v2878_v19  ;;  %v5430_v8 = vcombine.low %v2882_v48, %v2886_v53  ;;  %v2906_v58 = vrot.slane %v8220_v32, %v8493_v39  ;;  %v10345_v34 = vpop.permute.xlu1 %7117 }
 0x329   : > { %v7037_v7 = vrot.slane %v7029_v63, %v8806_v49  ;;  %v5431_v16 = vcombine.low %v2890_v31, %v2894_v46  ;;  %v5432_v15 = vcombine.low %v2898_v26, %v2902_v29  ;;  %v2910_v30 = vrot.slane %v8220_v32, %v8499_v41 }
 0x32a   : > { %v7044_v5 = vrot.slane %v7030_v60, %v8806_v49  ;;  %v5439_v13 = vrot.slane %v5429_v33, %v8806_v49  ;;  %v5446_v9 = vrot.slane %v5430_v8, %v8806_v49  ;;  %v2914_v43 = vrot.slane %v8220_v32, %v8786_v40  ;;  %v10350_v47 = vpop.permute.xlu0 %7201 }
 0x32b   : > { %v2918_v27 = vrot.slane %v8220_v32, %v8791_v55  ;;  %v5453_v11 = vrot.slane %v5431_v16, %v8806_v49  ;;  %v5460_v3 = vrot.slane %v5432_v15, %v8806_v49  ;;  %v2922_v57 = vrot.slane %v8220_v32, %v8794_v42 }
 0x32c   : > { %v7045_v51 = vcombine.low %v7037_v7, %v7044_v5  ;;  %v8222_v50 = vpop.eup %8221  ;;  %v5461_v6 = vcombine.low %v5439_v13, %v5446_v9  ;;  %v2926_v18 = vrot.slane %v8220_v32, %v8797_v56  ;;  %v2930_v10 = vrot.slane %v8220_v32, %v8800_v44 }
 0x32d   : > { %v2934_v54 = vrot.slane %v8220_v32, %v8803_v1  ;;  %v8224_v17 = vpop.eup %8223  ;;  %v5462_v21 = vcombine.low %v5453_v11, %v5460_v3  ;;  %v5478_v45 = vcombine.low %v2906_v58, %v2910_v30  ;;  %v5479_v25 = vcombine.low %v2914_v43, %v2918_v27  ;;  %v10366_v27 = vpop.permute.xlu1 %7120 }
 0x32e   : > { %7282 = vperm.xlu0 %7929, %v7045_v51   ;;  %v5469_v22 = vrot.slane %v5461_v6, %v8806_v49  ;;  %v5480_v20 = vcombine.low %v2922_v57, %v2926_v18  ;;  %v3418_v53 = vrot.slane %v8222_v50, %v8493_v39  ;;  %v3422_v31 = vrot.slane %v8222_v50, %v8499_v41  ;;  %v10363_v15 = vpop.permute.xlu0 %7207 }
 0x32f   : > { %v5481_v14 = vcombine.low %v2930_v10, %v2934_v54  ;;  %v5476_v23 = vrot.slane %v5462_v21, %v8806_v49  ;;  %v5488_v19 = vrot.slane %v5478_v45, %v8806_v49  ;;  %v5495_v48 = vrot.slane %v5479_v25, %v8806_v49 }
 0x330   : > { %v5502_v32 = vrot.slane %v5480_v20, %v8806_v49  ;;  %v3426_v26 = vrot.slane %v8222_v50, %v8786_v40  ;;  %v3430_v7 = vrot.slane %v8222_v50, %v8791_v55  ;;  %v3434_v33 = vrot.slane %v8222_v50, %v8794_v42 }
 0x331   : > { %v5509_v63 = vrot.slane %v5481_v14, %v8806_v49  ;;  %v5477_v60 = vcombine.low %v5469_v22, %v5476_v23  ;;  %v5510_v46 = vcombine.low %v5488_v19, %v5495_v48  ;;  %v3438_v8 = vrot.slane %v8222_v50, %v8797_v56 }
 0x332   : > { %v3442_v5 = vrot.slane %v8222_v50, %v8800_v44  ;;  %v3446_v16 = vrot.slane %v8222_v50, %v8803_v1  ;;  %v6262_v13 = vcombine.low %v3418_v53, %v3422_v31  ;;  %v6263_v9 = vcombine.low %v3426_v26, %v3430_v7 }
 0x333   : > { %v5511_v29 = vcombine.low %v5502_v32, %v5509_v63  ;;  %7186 = vperm.xlu1 %7930, %v5477_v60   ;;  %v5518_v58 = vrot.slane %v5510_v46, %v8806_v49  ;;  %v6264_v43 = vcombine.low %v3434_v33, %v3438_v8  ;;  %v3930_v11 = vrot.slane %v8224_v17, %v8493_v39  ;;  %v10378_v39 = vpop.permute.xlu0 %7213 }
 0x334   : > { %v6265_v51 = vcombine.low %v3442_v5, %v3446_v16  ;;  %v3934_v3 = vrot.slane %v8224_v17, %v8499_v41  ;;  %v3938_v57 = vrot.slane %v8224_v17, %v8786_v40  ;;  %v6272_v18 = vrot.slane %v6262_v13, %v8806_v49 }
 0x335   : > { %v5525_v30 = vrot.slane %v5511_v29, %v8806_v49  ;;  %v6279_v50 = vrot.slane %v6263_v9, %v8806_v49  ;;  %v6286_v10 = vrot.slane %v6264_v43, %v8806_v49  ;;  %v3942_v21 = vrot.slane %v8224_v17, %v8791_v55 }
 0x336   : > { %v6293_v54 = vrot.slane %v6265_v51, %v8806_v49  ;;  %v3946_v45 = vrot.slane %v8224_v17, %v8794_v42  ;;  %v3950_v25 = vrot.slane %v8224_v17, %v8797_v56  ;;  %v3954_v40 = vrot.slane %v8224_v17, %v8800_v44  ;;  %v10384_v42 = vpop.permute.xlu1 %7216 }
 0x337   : > { %v5526_v6 = vcombine.low %v5518_v58, %v5525_v30  ;;  %v6294_v41 = vcombine.low %v6272_v18, %v6279_v50  ;;  %v3958_v22 = vrot.slane %v8224_v17, %v8803_v1  ;;  %v7046_v20 = vcombine.low %v3930_v11, %v3934_v3  ;;  %v10390_v31 = vpop.permute.xlu0 %7123 }
 0x338   : > { %v6295_v14 = vcombine.low %v6286_v10, %v6293_v54  ;;  %v7047_v23 = vcombine.low %v3938_v57, %v3942_v21  ;;  %v7048_v19 = vcombine.low %v3946_v45, %v3950_v25 }
 0x339   : > { %7189 = vperm.xlu0 %7929, %v5526_v6   ;;  %v6302_v48 = vrot.slane %v6294_v41, %v8806_v49  ;;  %v7049_v32 = vcombine.low %v3954_v40, %v3958_v22  ;;  %v7056_v55 = vrot.slane %v7046_v20, %v8806_v49 }
 0x33a   : > { %v6309_v56 = vrot.slane %v6295_v14, %v8806_v49  ;;  %v7063_v63 = vrot.slane %v7047_v23, %v8806_v49  ;;  %v7070_v53 = vrot.slane %v7048_v19, %v8806_v49  ;;  %v10394_v29 = vpop.permute.xlu1 %7126  ;;  %v10451_v19 = vand.u32 127, %v10726_v37 }
 0x33b   : > { %v7077_v44 = vrot.slane %v7049_v32, %v8806_v49  ;;  %v10396_v33 = vpop.permute.xlu0 %7219 }
 0x33c   : > { %v6310_v1 = vcombine.low %v6302_v48, %v6309_v56  ;;  %v7078_v17 = vcombine.low %v7056_v55, %v7063_v63  ;;  %v7293_v32 = vadd.s32 4294967288, %v10451_v19  ;;  %v7300_v56 = vadd.s32 4294967280, %v10451_v19 }
 0x33d   : > { %v7079_v60 = vcombine.low %v7070_v53, %v7077_v44  ;;  %v7307_v53 = vadd.s32 4294967272, %v10451_v19  ;;  %v7314_v44 = vadd.s32 4294967264, %v10451_v19 }
 0x33e   : > { %7237 = vperm.xlu1 %7930, %v6310_v1   ;;  %v7086_v46 = vrot.slane %v7078_v17, %v8806_v49  ;;  %v10398_v8 = vpop.permute.xlu1 %7222  ;;  %v10460_v63 = vsub.s32 %v7293_v32, %v8490_v38  ;;  %v7291_v17 = vsub.s32 %v10451_v19, %v8490_v38 }
 0x33f   : > { %v7093_v26 = vrot.slane %v7079_v60, %v8806_v49  ;;  %v10400_v58 = vpop.permute.xlu0 %7129  ;;  %v7303_v60 = vsub.s32 %v7300_v56, %v8490_v38  ;;  %v10477_v37 = vsub.s32 %v7307_v53, %v8490_v38  ;;  %v10480_v49 = vsub.s32 %v7314_v44, %v8490_v38 }
 0x340   : > { %v7297_v32 = vrot.slane %v10132_v36, %v10460_v63  ;;  %v7335_v53 = vadd.s32 4294967240, %v10451_v19 }
 0x341   : > { %v7094_v7 = vcombine.low %v7086_v46, %v7093_v26  ;;  %v7480_v46 = vrot.slane %v10104_v59, %v7291_v17  ;;  %v7484_v26 = vrot.slane %v10336_v12, %v10460_v63  ;;  %v7489_v56 = vrot.slane %v10187_v0, %v7303_v60 }
 0x342   : > { %v10402_v5 = vpop.permute.xlu1 %7225  ;;  %v7292_v59 = vrot.slane %v10315_v62, %v7291_v17  ;;  %v7311_v36 = vrot.slane %v10215_v28, %v10477_v37  ;;  %v7318_v0 = vrot.slane %v10241_v2, %v10480_v49  ;;  %v7499_v28 = vrot.slane %v10266_v61, %v10480_v49 }
 0x343   : > { %7285 = vperm.xlu0 %7929, %v7094_v7   ;;  %v10404_v16 = vpop.permute.xlu0 %7135  ;;  %v10510_v2 = vsub.s32 %v7335_v53, %v8490_v38 }
 0x344   : > { %v7299_v44 = vsel %vm7298_vm1, %v7297_v32, %v7292_v59 }
 0x346   : > { %v10408_v13 = vpop.permute.xlu1 %7132 }
 0x347   : > { %v10406_v30 = vpop.permute.xlu0 %7141 }
 0x348   : > { %10732 = vst [vmem:[#allocation7_spill] sm:$0xff] %v10406_v30  ;;  %v7321_v30 = vadd.s32 4294967256, %v10451_v19 }
 0x34a   : > { %v10412_v43 = vpop.permute.xlu1 %7228 }
 0x34b   : > { %v10410_v9 = vpop.permute.xlu0 %7147 }
 0x34c   : > { %v7405_v53 = vrot.slane %v10410_v9, %v10460_v63 }
 0x34e   : > { %v10416_v11 = vpop.permute.xlu1 %7231 }
 0x34f   : > { %v10414_v51 = vpop.permute.xlu0 %7243  ;;  %10733 = vst [vmem:[#allocation8_spill] sm:$0xff] %v10416_v11  ;;  %v7494_v11 = vrot.slane %v10350_v47, %v10477_v37 }
 0x352   : > { %v10420_v57 = vpop.permute.xlu1 %7138 }
 0x353   : > { %v10418_v3 = vpop.permute.xlu0 %7153  ;;  %10734 = vst [vmem:[#allocation9_spill] sm:$0xff] %v10420_v57  ;;  %v7485_v57 = vsel %vm7298_vm1, %v7484_v26, %v7480_v46 }
 0x354   : > { %v7490_v62 = vsel %vm7305_vm2, %v7489_v56, %v7485_v57 }
 0x355   : > { %v7495_v56 = vsel %vm7312_vm3, %v7494_v11, %v7490_v62 }
 0x356   : > { %v10424_v18 = vpop.permute.xlu1 %7234 }
 0x357   : > { %v10422_v6 = vpop.permute.xlu0 %7249  ;;  %10735 = vst [vmem:[#allocation10_spill] sm:$0xff] %v10424_v18  ;;  %v7304_v18 = vrot.slane %v10161_v24, %v7303_v60  ;;  %v10498_v24 = vsub.s32 %v7321_v30, %v8490_v38  ;;  %v7328_v30 = vadd.s32 4294967248, %v10451_v19 }
 0x359   : > { %v7306_v26 = vsel %vm7305_vm2, %v7304_v18, %v7299_v44  ;;  %v7325_v47 = vrot.slane %v10293_v4, %v10498_v24  ;;  %v7500_v4 = vsel %vm7319_vm4, %v7499_v28, %v7495_v56  ;;  %v7331_v62 = vsub.s32 %v7328_v30, %v8490_v38 }
 0x35a   : > { %v10428_v10 = vpop.permute.xlu1 %7144  ;;  %v7313_v32 = vsel %vm7312_vm3, %v7311_v36, %v7306_v26  ;;  %v7349_v36 = vadd.s32 4294967224, %v10451_v19  ;;  %v7563_v28 = vrot.slane %v10414_v51, %v10460_v63  ;;  %v7415_v51 = vrot.slane %v10418_v3, %v10477_v37 }
 0x35b   : > { %v10426_v50 = vpop.permute.xlu0 %7159  ;;  %v7401_v57 = vrot.slane %v10428_v10, %v7291_v17  ;;  %v7320_v61 = vsel %vm7319_vm4, %v7318_v0, %v7313_v32  ;;  %v7504_v10 = vrot.slane %v10363_v15, %v10498_v24  ;;  %v7573_v3 = vrot.slane %v10422_v6, %v10477_v37 }
 0x35c   : > { %v7327_v11 = vsel %vm7326_vm5, %v7325_v47, %v7320_v61  ;;  %v7363_v47 = vadd.s32 4294967208, %v10451_v19  ;;  %v7509_v61 = vrot.slane %v10328_v52, %v7331_v62 }
 0x35d   : > { %v7406_v9 = vsel %vm7298_vm1, %v7405_v53, %v7401_v57  ;;  %v7332_v57 = vrot.slane %v10308_v35, %v7331_v62  ;;  %v7425_v35 = vrot.slane %v10426_v50, %v10498_v24 }
 0x35e   : > { %v10432_v21 = vpop.permute.xlu1 %7240 }
 0x35f   : > { %v10430_v54 = vpop.permute.xlu0 %7255  ;;  %v7559_v44 = vrot.slane %v10432_v21, %v7291_v17  ;;  %v7505_v21 = vsel %vm7326_vm5, %v7504_v10, %v7500_v4  ;;  %v10541_v17 = vsub.s32 %v7349_v36, %v8490_v38  ;;  %v7356_v36 = vadd.s32 4294967216, %v10451_v19 }
 0x360   : > { %v7583_v50 = vrot.slane %v10430_v54, %v10498_v24 }
 0x361   : > { %v7564_v63 = vsel %vm7298_vm1, %v7563_v28, %v7559_v44  ;;  %v7524_v52 = vrot.slane %v10396_v33, %v10541_v17  ;;  %v10576_v44 = vsub.s32 %v7363_v47, %v8490_v38 }
 0x362   : > { %v10436_v25 = vpop.permute.xlu1 %7150 }
 0x363   : > { %v10434_v45 = vpop.permute.xlu0 %7165  ;;  %v7410_v59 = vrot.slane %v10436_v25, %v7303_v60  ;;  %v7514_v25 = vrot.slane %v10378_v39, %v10510_v2  ;;  %v7342_v39 = vadd.s32 4294967232, %v10451_v19 }
 0x364   : > { %v7435_v54 = vrot.slane %v10434_v45, %v10510_v2 }
 0x365   : > { %v7411_v15 = vsel %vm7305_vm2, %v7410_v59, %v7406_v9 }
 0x366   : > { %v10440_v40 = vpop.permute.xlu1 %7246  ;;  %v7416_v56 = vsel %vm7312_vm3, %v7415_v51, %v7411_v15  ;;  %v7370_v15 = vadd.s32 4294967200, %v10451_v19 }
 0x367   : > { %v10438_v41 = vpop.permute.xlu0 %7261  ;;  %v7568_v0 = vrot.slane %v10440_v40, %v7303_v60  ;;  %v7339_v60 = vrot.slane %v10345_v34, %v10510_v2  ;;  %v7377_v34 = vadd.s32 4294967192, %v10451_v19 }
 0x369   : > { %v7569_v32 = vsel %vm7305_vm2, %v7568_v0, %v7564_v63  ;;  %v7510_v0 = vsel %vm7333_vm6, %v7509_v61, %v7505_v21  ;;  %v10583_v33 = vsub.s32 %v7377_v34, %v8490_v38  ;;  %v7359_v21 = vsub.s32 %v7356_v36, %v8490_v38 }
 0x36a   : > { %v10444_v20 = vpop.permute.xlu1 %7156  ;;  %v7574_v37 = vsel %vm7312_vm3, %v7573_v3, %v7569_v32  ;;  %v7515_v51 = vsel %vm7340_vm7, %v7514_v25, %v7510_v0  ;;  %v7391_v3 = vadd.s32 4294967176, %v10451_v19  ;;  %v10736_v0 = vld [vmem:[#allocation8_spill] sm:$0xff] }
 0x36b   : > { %v10442_v22 = vpop.permute.xlu0 %7171  ;;  %v7420_v40 = vrot.slane %v10444_v20, %v10480_v49  ;;  %v7381_v47 = vrot.slane %v10404_v16, %v10583_v33 }
 0x36d   : > { %v7421_v59 = vsel %vm7319_vm4, %v7420_v40, %v7416_v56 }
 0x36e   : > { %v10448_v23 = vpop.permute.xlu1 %7252  ;;  %v7426_v10 = vsel %vm7326_vm5, %v7425_v35, %v7421_v59 }
 0x36f   : > { %v10446_v14 = vpop.permute.xlu0 %7267  ;;  %v7578_v20 = vrot.slane %v10448_v23, %v10480_v49  ;;  %v7353_v49 = vrot.slane %v10390_v31, %v10541_v17  ;;  %v7345_v23 = vsub.s32 %v7342_v39, %v8490_v38  ;;  %v7334_v31 = vsel %vm7333_vm6, %v7332_v57, %v7327_v11 }
 0x370   : > { %v7341_v11 = vsel %vm7340_vm7, %v7339_v60, %v7334_v31  ;;  %v7603_v56 = vrot.slane %v10446_v14, %v10541_v17 }
 0x371   : > { %v7579_v53 = vsel %vm7319_vm4, %v7578_v20, %v7574_v37  ;;  %v7519_v60 = vrot.slane %v10384_v42, %v7345_v23  ;;  %v7384_v42 = vadd.s32 4294967184, %v10451_v19 }
 0x372   : > { %v10456_v55 = vpop.permute.xlu1 %7162  ;;  %v7584_v24 = vsel %vm7326_vm5, %v7583_v50, %v7579_v53 }
 0x373   : > { %v10453_v48 = vpop.permute.xlu0 %7270  ;;  %v7430_v4 = vrot.slane %v10456_v55, %v7331_v62  ;;  %v7520_v61 = vsel %vm7347_vm8, %v7519_v60, %v7515_v51  ;;  %v10739_v60 = vld [vmem:[#allocation7_spill] sm:$0xff] }
 0x374   : > { %v7525_v36 = vsel %vm7354_vm9, %v7524_v52, %v7520_v61  ;;  %v10741_v61 = vlaneseq }
 0x375   : > { %v7431_v28 = vsel %vm7333_vm6, %v7430_v4, %v7426_v10 }
 0x376   : > { %v7436_v45 = vsel %vm7340_vm7, %v7435_v54, %v7431_v28  ;;  %v7544_v28 = vrot.slane %v10736_v0, %v10583_v33  ;;  %vm7662_vm0 = vcmp.lt.s32.totalorder %v10741_v61, 512 }
 0x377   : > { %v10464_v1 = vpop.permute.xlu0 %7177 }
 0x378   : > { %v7455_v19 = vrot.slane %v10464_v1, %v10576_v44 }
 0x37b   : > { %v10472_v7 = vpop.permute.xlu1 %7258 }
 0x37c   : > { %v7588_v55 = vrot.slane %v10472_v7, %v7331_v62  ;;  %v7346_v62 = vrot.slane %v10366_v27, %v7345_v23  ;;  %v7593_v27 = vrot.slane %v10438_v41, %v10510_v2  ;;  %v7360_v41 = vrot.slane %v10394_v29, %v7359_v21 }
 0x37d   : > { %v7373_v2 = vsub.s32 %v7370_v15, %v8490_v38  ;;  %v7529_v29 = vrot.slane %v10398_v8, %v7359_v21  ;;  %v7387_v8 = vsub.s32 %v7384_v42, %v8490_v38 }
 0x37e   : > { %v7589_v40 = vsel %vm7333_vm6, %v7588_v55, %v7584_v24 }
 0x37f   : > { %v7594_v25 = vsel %vm7340_vm7, %v7593_v27, %v7589_v40  ;;  %v7374_v37 = vrot.slane %v10408_v13, %v7373_v2  ;;  %v7530_v1 = vsel %vm7361_vm10, %v7529_v29, %v7525_v36  ;;  %v7539_v10 = vrot.slane %v10412_v43, %v7373_v2 }
 0x381   : > { %v10486_v12 = vpop.permute.xlu0 %7273 }
 0x386   : > { %v10503_v46 = vpop.permute.xlu1 %7168 }
 0x387   : > { %v7440_v9 = vrot.slane %v10503_v46, %v7345_v23  ;;  %v7367_v46 = vrot.slane %v10400_v58, %v10576_v44  ;;  %v7445_v58 = vrot.slane %v10442_v22, %v10541_v17 }
 0x389   : > { %v7441_v32 = vsel %vm7347_vm8, %v7440_v9, %v7436_v45  ;;  %v10737_v9 = vld [vmem:[#allocation9_spill] sm:$0xff] }
 0x38a   : > { %v7446_v22 = vsel %vm7354_vm9, %v7445_v58, %v7441_v32 }
 0x38b   : > { %v10517_v18 = vpop.permute.xlu0 %7276 }
 0x390   : > { %v10534_v26 = vpop.permute.xlu1 %7264 }
 0x391   : > { %v7598_v39 = vrot.slane %v10534_v26, %v7345_v23  ;;  %v7348_v26 = vsel %vm7347_vm8, %v7346_v62, %v7341_v11  ;;  %v7534_v23 = vrot.slane %v10402_v5, %v10576_v44  ;;  %v7388_v11 = vrot.slane %v10737_v9, %v7387_v8 }
 0x392   : > { %v7355_v4 = vsel %vm7354_vm9, %v7353_v49, %v7348_v26  ;;  %v7394_v49 = vsub.s32 %v7391_v3, %v8490_v38 }
 0x393   : > { %v7599_v57 = vsel %vm7347_vm8, %v7598_v39, %v7594_v25  ;;  %v7362_v17 = vsel %vm7361_vm10, %v7360_v41, %v7355_v4 }
 0x394   : > { %v7604_v35 = vsel %vm7354_vm9, %v7603_v56, %v7599_v57  ;;  %v7369_v13 = vsel %vm7368_vm11, %v7367_v46, %v7362_v17 }
 0x395   : > { %v7376_v52 = vsel %vm7375_vm12, %v7374_v37, %v7369_v13 }
 0x396   : > { %v10553_v30 = vpop.permute.xlu0 %7183  ;;  %v7383_v39 = vsel %vm7382_vm13, %v7381_v47, %v7376_v52 }
 0x397   : > { %v7465_v38 = vrot.slane %v10553_v30, %v10583_v33  ;;  %v7390_v27 = vsel %vm7389_vm14, %v7388_v11, %v7383_v39 }
 0x39c   : > { %v7175_v6 = vpop.permute.xlu1 %7174 }
 0x39d   : > { %v7450_v20 = vrot.slane %v7175_v6, %v7359_v21  ;;  %v7608_v6 = vrot.slane %v10453_v48, %v7359_v21  ;;  %v7613_v48 = vrot.slane %v10486_v12, %v10576_v44  ;;  %v7535_v12 = vsel %vm7368_vm11, %v7534_v23, %v7530_v1  ;;  %v10738_v44 = vld [vmem:[#allocation10_spill] sm:$0xff] }
 0x39e   : > { %v7549_v30 = vrot.slane %v10738_v44, %v7387_v8  ;;  %v7618_v21 = vrot.slane %v10517_v18, %v7373_v2  ;;  %v7540_v40 = vsel %vm7375_vm12, %v7539_v10, %v7535_v12  ;;  %v7395_v18 = vrot.slane %v10739_v60, %v7394_v49 }
 0x39f   : > { %v7451_v34 = vsel %vm7361_vm10, %v7450_v20, %v7446_v22  ;;  %v7609_v53 = vsel %vm7361_vm10, %v7608_v6, %v7604_v35  ;;  %v7545_v32 = vsel %vm7382_vm13, %v7544_v28, %v7540_v40 }
 0x3a0   : > { %v7456_v5 = vsel %vm7368_vm11, %v7455_v19, %v7451_v34  ;;  %v7614_v62 = vsel %vm7368_vm11, %v7613_v48, %v7609_v53  ;;  %v7550_v26 = vsel %vm7389_vm14, %v7549_v30, %v7545_v32 }
 0x3a1   : > { %v10587_v7 = vpop.permute.xlu0 %7279  ;;  %v7619_v45 = vsel %vm7375_vm12, %v7618_v21, %v7614_v62 }
 0x3a2   : > { %v7623_v46 = vrot.slane %v10587_v7, %v10583_v33  ;;  %v7397_v33 = vsel %vm7396_vm15, %v7395_v18, %v7390_v27 }
 0x3a4   : > { %v7624_v58 = vsel %vm7382_vm13, %v7623_v46, %v7619_v45 }
 0x3a7   : > { %v7181_v63 = vpop.permute.xlu1 %7180 }
 0x3a8   : > { %v7460_v59 = vrot.slane %v7181_v63, %v7373_v2 }
 0x3aa   : > { %v7461_v55 = vsel %vm7375_vm12, %v7460_v59, %v7456_v5 }
 0x3ab   : > { %v7466_v43 = vsel %vm7382_vm13, %v7465_v38, %v7461_v55 }
 0x3ad   : > { %v10616_v16 = vpop.permute.xlu0 %7282 }
 0x3ae   : > { %v7628_v63 = vrot.slane %v10616_v16, %v7387_v8  ;;  %v10740_v16 = vld [vmem:[#allocation6_spill] sm:$0xff] }
 0x3b0   : > { %v7629_v41 = vsel %vm7389_vm14, %v7628_v63, %v7624_v58 }
 0x3b2   : > { %v7187_v14 = vpop.permute.xlu1 %7186 }
 0x3b3   : > { %v7470_v31 = vrot.slane %v7187_v14, %v7387_v8 }
 0x3b5   : > { %v7471_v15 = vsel %vm7389_vm14, %v7470_v31, %v7466_v43 }
 0x3b8   : > { %v7190_v50 = vpop.permute.xlu0 %7189 }
 0x3b9   : > { %v7475_v54 = vrot.slane %v7190_v50, %v7394_v49 }
 0x3bb   : > { %v7476_v20 = vsel %vm7396_vm15, %v7475_v54, %v7471_v15 }
 0x3bc   : > { %v7635_v2 = vcombine.low %v7397_v33, %v7476_v20 }
 0x3bd   : > { %v7238_v24 = vpop.permute.xlu1 %7237 }
 0x3be   : > { %v7554_v51 = vrot.slane %v7238_v24, %v7394_v49  ;;  %v7643_v3 = vrot.slane %v7635_v2, %v10740_v16 }
 0x3c0   : > { %v7555_v7 = vsel %vm7396_vm15, %v7554_v51, %v7550_v26 }
 0x3c2   : > { %v7286_v47 = vpop.permute.xlu0 %7285 }
 0x3c3   : > { %v7633_v25 = vrot.slane %v7286_v47, %v7394_v49 }
 0x3c5   : > { %v7634_v42 = vsel %vm7396_vm15, %v7633_v25, %v7629_v41 }
 0x3c6   : > { %v7636_v57 = vcombine.low %v7555_v7, %v7634_v42 }
 0x3c8   : > { %v7650_v56 = vrot.slane %v7636_v57, %v10740_v16 }
 0x3ca   : > { %v7651_v22 = vcombine.low %v7643_v3, %v7650_v56 }
 0x3cc   : > { %v7658_v29 = vrot.slane %v7651_v22, %v10740_v16 }
 0x3ce   : > { %7664 = vst.msk [vmem:[%s219_s10] sm:$0xf] %vm7662_vm0, %v7658_v29 }
 0x3cf   : > { %8238 = shalt.err (!%p8235_p3)
}
 0x3d0   : > { %s8239_s8 = scalar_lea.hbm %s10678_s14, 64  ;;  %s8243_s26 = scalar_lea.hbm %s10725_s5, 128 }
 0x3d1   : > { %p8240_p4 = scmp.ne.s32.totalorder %s10678_s14, %s8239_s8  ;;  %p8244_p9 = scmp.lt.u32.totalorder %s10678_s14, %s10725_s5 }
 0x3d2   : > { %p8245_p10 = scmp.lt.u32.totalorder %s8243_s26, %s8239_s8  ;;  %p8247_p12 = scmp.lt.u32.totalorder %s8239_s8, %s10678_s14 }
 0x3d3   : > { %p8241_p7 = pnand %p8240_p4, %p8360_p5 }
 0x3d4   : > { %p8246_p11 = por %p8245_p10, %p8244_p9 }
 0x3d5   : > { %p8242_p8 = pneg %p8241_p7 }
 0x3d6   : > { %p8248_p13 = por %p8247_p12, %p8246_p11 }
 0x3d8   : > { %p8249_p0 = pnand %p8248_p13, %p8242_p8 }
 0x3da   : > { %8252 = shalt.err (!%p8249_p0)
}
 0x3db   : > { %7888 = dma.vmem_to_hbm [thread:$0]  (%p8360_p5), %s10680_s11, 64, %s10678_s14, %s7666_s15  }
 0x3dc PF: > { %p7894_p1 = scmp.ge.s32.totalorder %s8287_s23, 2  ;;  %s7692_s7 = sand.u32 1, %s8275_s20  }
 0x3dd   : > { %s7693_s9 = scalar_lea.sflag [#allocation4], %s7692_s7 }
 0x3de   : > { %p7891_p2 = pnand %p7894_p1, %p8364_p6 }
 0x3e0   : > { %8270 = dma.done.wait (!%p7891_p2), %s7693_s9, 64  }
 0x3e1   : > { %8272 = vsyncadd (!%p7891_p2), %s7693_s9, 4294967232  ;;  %p16_p3 = scmp.ge.s32.totalorder %s8348_s25, 4   ;;  %s10742_s20 = smov %s8279_s21 }
 0x3e2   : > { %s10743_s21 = smov %s8283_s22  ;;  %s10744_s22 = smov %s8358_s28 }
 0x3e3   : > { %s10745_s23 = smov %s8348_s25  ;;  %18 = sbr.rel (!%p16_p3) target bundleno = 5 (0x5), region = 75 }
 0x3ea   :  { %7698 = vsyncpa [#allocation4], 1 }
 0x3eb   :  { %7700 = vsyncpa [#allocation4 + $0x1], 1 }

</bundles_post_ra>
